<compile_context>
chip_gen: v7x
topology: tpu7x:2x2x1
jax: 0.10.0
libtpu: 0.0.40
codegen_flags: <defaults>
</compile_context>

<pallas_src>
import jax
import jax.numpy as jnp
from jax import lax
from jax.experimental import pallas as pl
from jax.experimental.pallas import tpu as pltpu


# Set to jnp.bfloat16 on v6e/v7x for ~4x MXU throughput on the MLP / BondFFN matmuls
# (LayerNorm stats, gathers, scatter and accumulation stay f32).  Kept at f32 here so
# the runnable script matches the f32 reference to 1e-3 on every TPU generation.
MXU_DTYPE = jnp.float32
LANES = 128            # lane-dense output width (force occupies lanes 0..2)


# ----------------------------- in-kernel math ---------------------------------

def _mm(x, w):
    return jnp.dot(x.astype(MXU_DTYPE), w.astype(MXU_DTYPE),
                   preferred_element_type=jnp.float32)


def _mlp_packed(x, w1, vec, w2, scalar_out):
    """MolDiff MLP: Linear -> LayerNorm -> ReLU -> Linear.
    vec rows: [b1, gamma, beta, b2] each [1, hidden] (b2 scalar broadcast if out=1)."""
    h = _mm(x, w1) + vec[0:1, :]
    mu = jnp.mean(h, axis=-1, keepdims=True)
    var = jnp.mean(jnp.square(h - mu), axis=-1, keepdims=True)
    h = (h - mu) * lax.rsqrt(var + 1e-5) * vec[1:2, :] + vec[2:3, :]
    h = jnp.maximum(h, 0.0)
    y = _mm(h, w2)
    return y + (vec[3:4, 0:1] if scalar_out else vec[3:4, :])


# ------------------------------- kernel ----------------------------------------

def _pos_force_kernel(idxl_ref, idxr_ref, hf_ref,            # tiled over edges
                      hnode_ref, pospad_ref, isfrag_ref,     # VMEM-resident node data
                      lw1_ref, lvec_ref, lw2_ref,            # left MLP
                      rw1_ref, rvec_ref, rw2_ref,            # right MLP
                      bw_ref, nw_ref, iw1_ref, ivec_ref, iw2_ref,  # BondFFN
                      out_ref):                              # resident [N, 128] accumulator
    i = pl.program_id(0)

    @pl.when(i == 0)
    def _init():
        out_ref[...] = jnp.zeros_like(out_ref)

    te = idxl_ref.shape[0]
    n = hnode_ref.shape[0]

    # Exact per-tile one-hots; padded edges carry index == n -> all-zero row.
    iota_n = lax.broadcasted_iota(jnp.int32, (te, n), 1)
    oh_l = (idxl_ref[...] == iota_n).astype(jnp.float32)          # [te, n]
    oh_r = (idxr_ref[...] == iota_n).astype(jnp.float32)          # [te, n]

    # In-kernel gathers via selection matmuls (exact in f32).
    hnode = hnode_ref[...]
    hl = jnp.dot(oh_l, hnode, preferred_element_type=jnp.float32)           # h_node[idx_l]
    hr = jnp.dot(oh_r, hnode, preferred_element_type=jnp.float32)           # h_node[idx_r]
    dpos = jnp.dot(oh_l - oh_r, pospad_ref[...],
                   preferred_element_type=jnp.float32)                      # [te, 128]
    frag = jnp.dot(oh_l, isfrag_ref[...], preferred_element_type=jnp.float32)  # [te, 1]

    # left_lin / right_lin MLPs
    left = _mlp_packed(hl, lw1_ref[...], lvec_ref[...], lw2_ref[...], False)
    right = _mlp_packed(hr, rw1_ref[...], rvec_ref[...], rw2_ref[...], False)
    node_in = left * right

    # BondFFN (use_gate=False): bond_linear * node_linear -> inter MLP -> scalar weight
    inter = _mm(hf_ref[...], bw_ref[...]) * _mm(node_in, nw_ref[...])
    weight = _mlp_packed(inter, iw1_ref[...], ivec_ref[...], iw2_ref[...], True)  # [te, 1]

    # force = weight * is_frag[left] * (pos_left - pos_right); lanes >= 3 are zero.
    force = (weight * frag) * dpos                                           # [te, 128]

    # Tiled scatter_sum: out[N, 128] += one_hot_left.T @ force
    out_ref[...] += lax.dot_general(oh_l, force, (((0,), (0,)), ((), ())),
                                    preferred_element_type=jnp.float32)


# ------------------------------- wrapper ----------------------------------------

def _pack_mlp(p):
    """Pack (b1, gamma, beta, b2) into one [4, hidden] array."""
    hdim = p["w1"].shape[1]
    b2 = p["b2"]
    row3 = b2 if b2.shape[1] == hdim else jnp.broadcast_to(b2[:, :1], (1, hdim))
    vec = jnp.concatenate([p["b1"], p["g1"], p["be1"], row3], axis=0)
    return p["w1"], vec, p["w2"]


def _resident_spec(a):
    nd = a.ndim
    return pl.BlockSpec(a.shape, lambda i, _nd=nd: (0,) * _nd)


def _relation_delta(p_left, p_right, p_ffn, h_node, pos_pad, isfrag_col,
                    h_rel, rel_index, tile_e):
    n, _ = h_node.shape
    e, f = h_rel.shape
    num_tiles = pl.cdiv(e, tile_e)
    ep = num_tiles * tile_e
    pad = ep - e

    # Pad with out-of-range index n -> all-zero one-hot row -> contributes nothing.
    idx_l = jnp.pad(rel_index[0].astype(jnp.int32), (0, pad), constant_values=n)[:, None]
    idx_r = jnp.pad(rel_index[1].astype(jnp.int32), (0, pad), constant_values=n)[:, None]
    hf = jnp.pad(h_rel.astype(jnp.float32), ((0, pad), (0, 0)))

    lw1, lvec, lw2 = _pack_mlp(p_left)
    rw1, rvec, rw2 = _pack_mlp(p_right)
    iw1, ivec, iw2 = _pack_mlp(p_ffn["inter"])

    args = (idx_l, idx_r, hf, h_node, pos_pad, isfrag_col,
            lw1, lvec, lw2, rw1, rvec, rw2,
            p_ffn["bond_w"], p_ffn["node_w"], iw1, ivec, iw2)

    in_specs = [
        pl.BlockSpec((tile_e, 1), lambda i: (i, 0)),   # idx_l
        pl.BlockSpec((tile_e, 1), lambda i: (i, 0)),   # idx_r
        pl.BlockSpec((tile_e, f), lambda i: (i, 0)),   # h_edge / h_bond
    ] + [_resident_spec(a) for a in args[3:]]          # node data + params stay resident

    return pl.pallas_call(
        _pos_force_kernel,
        out_shape=jax.ShapeDtypeStruct((n, LANES), jnp.float32),
        grid=(num_tiles,),
        in_specs=in_specs,
        # Same block index every step -> resident accumulator, lane-dense store.
        out_specs=pl.BlockSpec((n, LANES), lambda i: (0, 0)),
        compiler_params=pltpu.CompilerParams(
            # Reduction axis (accumulates into the resident output) -> "arbitrary".
            dimension_semantics=("arbitrary",),
            # Fits every generation's scoped VMEM (v5e 16MiB default raised, v6e/v7x 32MiB).
            # Re-derive tile_e for v7x's 64 MiB physical VMEM at production N.
            vmem_limit_bytes=32 * 1024 * 1024),
    )(*args)


def pos_predictor_forward(params, bond_dim, h_node, pos_node, h_bond, bond_index,
                          h_edge, edge_index, is_frag, tile_e=128):
    h_node = h_node.astype(jnp.float32)
    pos_pad = jnp.pad(pos_node.astype(jnp.float32),
                      ((0, 0), (0, LANES - pos_node.shape[1])))   # lane-dense pos
    isfrag_col = is_frag.astype(jnp.float32)[:, None]

    acc = _relation_delta(params["left_lin_edge"], params["right_lin_edge"],
                          params["edge_lin"], h_node, pos_pad, isfrag_col,
                          h_edge, edge_index, tile_e)
    if bond_dim > 0:
        acc = acc + _relation_delta(params["left_lin_bond"], params["right_lin_bond"],
                                    params["bond_lin"], h_node, pos_pad, isfrag_col,
                                    h_bond, bond_index, tile_e)
    return pos_node + acc[:, :pos_node.shape[1]] / 10.0


# -------------------- pure-JAX f32 reference (same math) -------------------------

def _mlp_fwd(x, w1, b1, g1, be1, w2, b2):
    h = jnp.dot(x, w1) + b1
    mu = jnp.mean(h, axis=-1, keepdims=True)
    var = jnp.mean((h - mu) ** 2, axis=-1, keepdims=True)
    h = (h - mu) * lax.rsqrt(var + 1e-5) * g1 + be1
    h = jnp.maximum(h, 0.0)
    return jnp.dot(h, w2) + b2


def _mlp_args(p):
    return (p["w1"], p["b1"], p["g1"], p["be1"], p["w2"], p["b2"])


def _relation_delta_ref(p_left, p_right, p_ffn, h_node, pos_node, h_rel, rel_index, is_frag):
    idx_l, idx_r = rel_index[0], rel_index[1]
    mask = is_frag[idx_l].astype(jnp.float32)[:, None]
    left = _mlp_fwd(h_node[idx_l], *_mlp_args(p_left))
    right = _mlp_fwd(h_node[idx_r], *_mlp_args(p_right))
    inter = (h_rel @ p_ffn["bond_w"]) * ((left * right) @ p_ffn["node_w"])
    weight = _mlp_fwd(inter, *_mlp_args(p_ffn["inter"]))
    force = weight * mask * (pos_node[idx_l] - pos_node[idx_r])
    return jnp.zeros((h_node.shape[0], 3), jnp.float32).at[idx_l].add(force)


def pos_predictor_reference(params, bond_dim, h_node, pos_node, h_bond, bond_index,
                            h_edge, edge_index, is_frag):
    delta = _relation_delta_ref(params["left_lin_edge"], params["right_lin_edge"],
                                params["edge_lin"], h_node, pos_node, h_edge,
                                edge_index, is_frag)
    if bond_dim > 0:
        delta = delta + _relation_delta_ref(
            params["left_lin_bond"], params["right_lin_bond"], params["bond_lin"],
            h_node, pos_node, h_bond, bond_index, is_frag)
    return pos_node + delta / 10.0


# ----------------------------- parameter init ------------------------------------

def _init_linear(key, in_dim, out_dim):
    s = 1.0 / jnp.sqrt(jnp.float32(in_dim))
    return jax.random.uniform(key, (in_dim, out_dim), jnp.float32, -s, s)


def _init_mlp(key, in_dim, out_dim, hidden_dim):
    k1, k2, k3, k4 = jax.random.split(key, 4)
    s1 = 1.0 / jnp.sqrt(jnp.float32(in_dim))
    s2 = 1.0 / jnp.sqrt(jnp.float32(hidden_dim))
    return dict(
        w1=_init_linear(k1, in_dim, hidden_dim),
        b1=jax.random.uniform(k2, (1, hidden_dim), jnp.float32, -s1, s1),
        g1=jnp.ones((1, hidden_dim), jnp.float32),
        be1=jnp.zeros((1, hidden_dim), jnp.float32),
        w2=_init_linear(k3, hidden_dim, out_dim),
        b2=jax.random.uniform(k4, (1, out_dim), jnp.float32, -s2, s2),
    )


def _init_bond_ffn(key, bond_dim, node_dim, inter_dim, out_dim):
    k1, k2, k3 = jax.random.split(key, 3)
    return dict(
        bond_w=_init_linear(k1, bond_dim, inter_dim),   # Linear(bond_dim, inter_dim, bias=False)
        node_w=_init_linear(k2, node_dim, inter_dim),   # Linear(node_dim, inter_dim, bias=False)
        inter=_init_mlp(k3, inter_dim, out_dim, inter_dim),
    )


def init_pos_predictor(key, node_dim, edge_dim, bond_dim):
    ks = jax.random.split(key, 6)
    params = dict(
        left_lin_edge=_init_mlp(ks[0], node_dim, edge_dim, edge_dim),
        right_lin_edge=_init_mlp(ks[1], node_dim, edge_dim, edge_dim),
        edge_lin=_init_bond_ffn(ks[2], edge_dim, edge_dim, node_dim, 1),
    )
    if bond_dim > 0:
        params["left_lin_bond"] = _init_mlp(ks[3], node_dim, bond_dim, bond_dim)
        params["right_lin_bond"] = _init_mlp(ks[4], node_dim, bond_dim, bond_dim)
        params["bond_lin"] = _init_bond_ffn(ks[5], bond_dim, bond_dim, node_dim, 1)
    return params


# ----------------------------------- main ----------------------------------------

if __name__ == "__main__":
    node_dim, edge_dim, bond_dim = 32, 32, 16
    N, E, B = 64, 320, 192          # E/B chosen so the edge grid has 3 tiles, bond 2

    key = jax.random.PRNGKey(0)
    ks = jax.random.split(key, 8)
    h_node = jax.random.normal(ks[0], (N, node_dim), jnp.float32)
    pos_node = jax.random.normal(ks[1], (N, 3), jnp.float32)
    h_edge = jax.random.normal(ks[2], (E, edge_dim), jnp.float32)
    h_bond = jax.random.normal(ks[3], (B, bond_dim), jnp.float32)
    edge_index = jax.random.randint(ks[4], (2, E), 0, N, jnp.int32)
    bond_index = jax.random.randint(ks[5], (2, B), 0, N, jnp.int32)
    is_frag = jax.random.bernoulli(ks[6], 0.5, (N,))

    params = init_pos_predictor(ks[7], node_dim, edge_dim, bond_dim)

    pos_update = pos_predictor_forward(params, bond_dim, h_node, pos_node, h_bond,
                                       bond_index, h_edge, edge_index, is_frag)
    jax.block_until_ready(pos_update)

    ref = pos_predictor_reference(params, bond_dim, h_node, pos_node, h_bond,
                                  bond_index, h_edge, edge_index, is_frag)
    assert pos_update.shape == (N, 3)
    assert jnp.allclose(pos_update, ref, atol=1e-3, rtol=1e-3), "mismatch vs reference"

    print("KERNEL_OK")
</pallas_src>

<mosaic_0001>
module attributes {stable_mosaic.version = 11 : i64} {
  func.func @_pos_force_kernel(%arg0: i32, %arg1: memref<128x1xi32, #tpu.memory_space<vmem>>, %arg2: memref<128x1xi32, #tpu.memory_space<vmem>>, %arg3: memref<128x32xf32, #tpu.memory_space<vmem>>, %arg4: memref<64x32xf32, #tpu.memory_space<vmem>>, %arg5: memref<64x128xf32, #tpu.memory_space<vmem>>, %arg6: memref<64x1xf32, #tpu.memory_space<vmem>>, %arg7: memref<32x32xf32, #tpu.memory_space<vmem>>, %arg8: memref<4x32xf32, #tpu.memory_space<vmem>>, %arg9: memref<32x32xf32, #tpu.memory_space<vmem>>, %arg10: memref<32x32xf32, #tpu.memory_space<vmem>>, %arg11: memref<4x32xf32, #tpu.memory_space<vmem>>, %arg12: memref<32x32xf32, #tpu.memory_space<vmem>>, %arg13: memref<32x32xf32, #tpu.memory_space<vmem>>, %arg14: memref<32x32xf32, #tpu.memory_space<vmem>>, %arg15: memref<32x32xf32, #tpu.memory_space<vmem>>, %arg16: memref<4x32xf32, #tpu.memory_space<vmem>>, %arg17: memref<32x1xf32, #tpu.memory_space<vmem>>, %arg18: memref<64x128xf32, #tpu.memory_space<vmem>>) attributes {dimension_semantics = [#tpu.dimension_semantics<arbitrary>], iteration_bounds = array<i64: 3>, scalar_prefetch = 0 : i64, scratch_operands = 0 : i64, tpu.core_type = #tpu.core_type<tc>, window_params = [{transform_indices = @transform_0, window_bounds = array<i64: 128, 1>}, {transform_indices = @transform_1, window_bounds = array<i64: 128, 1>}, {transform_indices = @transform_2, window_bounds = array<i64: 128, 32>}, {pipeline_mode = #tpu.pipeline_mode<synchronous>, transform_indices = @transform_3, window_bounds = array<i64: 64, 32>}, {pipeline_mode = #tpu.pipeline_mode<synchronous>, transform_indices = @transform_4, window_bounds = array<i64: 64, 128>}, {pipeline_mode = #tpu.pipeline_mode<synchronous>, transform_indices = @transform_5, window_bounds = array<i64: 64, 1>}, {pipeline_mode = #tpu.pipeline_mode<synchronous>, transform_indices = @transform_6, window_bounds = array<i64: 32, 32>}, {pipeline_mode = #tpu.pipeline_mode<synchronous>, transform_indices = @transform_7, window_bounds = array<i64: 4, 32>}, {pipeline_mode = #tpu.pipeline_mode<synchronous>, transform_indices = @transform_8, window_bounds = array<i64: 32, 32>}, {pipeline_mode = #tpu.pipeline_mode<synchronous>, transform_indices = @transform_9, window_bounds = array<i64: 32, 32>}, {pipeline_mode = #tpu.pipeline_mode<synchronous>, transform_indices = @transform_10, window_bounds = array<i64: 4, 32>}, {pipeline_mode = #tpu.pipeline_mode<synchronous>, transform_indices = @transform_11, window_bounds = array<i64: 32, 32>}, {pipeline_mode = #tpu.pipeline_mode<synchronous>, transform_indices = @transform_12, window_bounds = array<i64: 32, 32>}, {pipeline_mode = #tpu.pipeline_mode<synchronous>, transform_indices = @transform_13, window_bounds = array<i64: 32, 32>}, {pipeline_mode = #tpu.pipeline_mode<synchronous>, transform_indices = @transform_14, window_bounds = array<i64: 32, 32>}, {pipeline_mode = #tpu.pipeline_mode<synchronous>, transform_indices = @transform_15, window_bounds = array<i64: 4, 32>}, {pipeline_mode = #tpu.pipeline_mode<synchronous>, transform_indices = @transform_16, window_bounds = array<i64: 32, 1>}, {pipeline_mode = #tpu.pipeline_mode<synchronous>, transform_indices = @transform_17, window_bounds = array<i64: 64, 128>}]} {
    %c0_i32 = arith.constant 0 : i32
    %0 = arith.cmpi eq, %arg0, %c0_i32 : i32
    %1 = arith.extui %0 : i1 to i32
    %c0_i32_0 = arith.constant 0 : i32
    %2 = arith.cmpi ne, %1, %c0_i32_0 : i32
    scf.if %2 {
      %cst_68 = arith.constant 0.000000e+00 : f32
      %147 = vector.broadcast %cst_68 : f32 to vector<64x128xf32>
      %c0_69 = arith.constant 0 : index
      %c0_70 = arith.constant 0 : index
      %148 = vector.load %arg18[%c0_69, %c0_70] : memref<64x128xf32, #tpu.memory_space<vmem>>, vector<64x128xf32>
      tpu.vector_store %arg18[%c0_69, %c0_70], %147 {strides = array<i32>} : memref<64x128xf32, #tpu.memory_space<vmem>>, vector<64x128xf32>,
    } else {
    }
    %3 = tpu.iota {dimensions = array<i32: 1>} : vector<128x64xi32>
    %c0 = arith.constant 0 : index
    %c0_1 = arith.constant 0 : index
    %4 = vector.load %arg1[%c0, %c0_1] : memref<128x1xi32, #tpu.memory_space<vmem>>, vector<128x1xi32>
    %5 = vector.broadcast %4 : vector<128x1xi32> to vector<128x64xi32>
    %6 = arith.cmpi eq, %5, %3 : vector<128x64xi32>
    %7 = arith.extui %6 : vector<128x64xi1> to vector<128x64xi32>
    %8 = arith.sitofp %7 : vector<128x64xi32> to vector<128x64xf32>
    %c0_2 = arith.constant 0 : index
    %c0_3 = arith.constant 0 : index
    %9 = vector.load %arg2[%c0_2, %c0_3] : memref<128x1xi32, #tpu.memory_space<vmem>>, vector<128x1xi32>
    %10 = vector.broadcast %9 : vector<128x1xi32> to vector<128x64xi32>
    %11 = arith.cmpi eq, %10, %3 : vector<128x64xi32>
    %12 = arith.extui %11 : vector<128x64xi1> to vector<128x64xi32>
    %13 = arith.sitofp %12 : vector<128x64xi32> to vector<128x64xf32>
    %c0_4 = arith.constant 0 : index
    %c0_5 = arith.constant 0 : index
    %14 = vector.load %arg4[%c0_4, %c0_5] : memref<64x32xf32, #tpu.memory_space<vmem>>, vector<64x32xf32>
    %cst = arith.constant dense<0.000000e+00> : vector<128x32xf32>
    %15 = tpu.matmul %8, %14, %cst {dimension_numbers = #tpu.dot_dimension_numbers<[1], [0], [0], [1], [0, 0, 1, 1], [], []>} : vector<128x64xf32>, vector<64x32xf32>, vector<128x32xf32> -> vector<128x32xf32>
    %cst_6 = arith.constant dense<0.000000e+00> : vector<128x32xf32>
    %16 = tpu.matmul %13, %14, %cst_6 {dimension_numbers = #tpu.dot_dimension_numbers<[1], [0], [0], [1], [0, 0, 1, 1], [], []>} : vector<128x64xf32>, vector<64x32xf32>, vector<128x32xf32> -> vector<128x32xf32>
    %17 = arith.subf %8, %13 : vector<128x64xf32>
    %c0_7 = arith.constant 0 : index
    %c0_8 = arith.constant 0 : index
    %18 = vector.load %arg5[%c0_7, %c0_8] : memref<64x128xf32, #tpu.memory_space<vmem>>, vector<64x128xf32>
    %cst_9 = arith.constant dense<0.000000e+00> : vector<128x128xf32>
    %19 = tpu.matmul %17, %18, %cst_9 {dimension_numbers = #tpu.dot_dimension_numbers<[1], [0], [0], [1], [0, 0, 1, 1], [], []>} : vector<128x64xf32>, vector<64x128xf32>, vector<128x128xf32> -> vector<128x128xf32>
    %c0_10 = arith.constant 0 : index
    %c0_11 = arith.constant 0 : index
    %20 = vector.load %arg6[%c0_10, %c0_11] : memref<64x1xf32, #tpu.memory_space<vmem>>, vector<64x1xf32>
    %cst_12 = arith.constant dense<0.000000e+00> : vector<128x1xf32>
    %21 = tpu.matmul %8, %20, %cst_12 {dimension_numbers = #tpu.dot_dimension_numbers<[1], [0], [0], [1], [0, 0, 1, 1], [], []>} : vector<128x64xf32>, vector<64x1xf32>, vector<128x1xf32> -> vector<128x1xf32>
    %c0_13 = arith.constant 0 : index
    %c0_14 = arith.constant 0 : index
    %22 = vector.load %arg7[%c0_13, %c0_14] : memref<32x32xf32, #tpu.memory_space<vmem>>, vector<32x32xf32>
    %c0_15 = arith.constant 0 : index
    %c0_16 = arith.constant 0 : index
    %23 = vector.load %arg8[%c0_15, %c0_16] : memref<4x32xf32, #tpu.memory_space<vmem>>, vector<4x32xf32>
    %c0_17 = arith.constant 0 : index
    %c0_18 = arith.constant 0 : index
    %24 = vector.load %arg9[%c0_17, %c0_18] : memref<32x32xf32, #tpu.memory_space<vmem>>, vector<32x32xf32>
    %cst_19 = arith.constant dense<0.000000e+00> : vector<128x32xf32>
    %25 = tpu.matmul %15, %22, %cst_19 {dimension_numbers = #tpu.dot_dimension_numbers<[1], [0], [0], [1], [0, 0, 1, 1], [], []>} : vector<128x32xf32>, vector<32x32xf32>, vector<128x32xf32> -> vector<128x32xf32>
    %26 = vector.extract_strided_slice %23 {offsets = [0, 0], sizes = [1, 32], strides = [1, 1]} : vector<4x32xf32> to vector<1x32xf32>
    %27 = vector.broadcast %26 : vector<1x32xf32> to vector<128x32xf32>
    %28 = arith.addf %25, %27 : vector<128x32xf32>
    %cst_20 = arith.constant dense<0.000000e+00> : vector<128xf32>
    %29 = vector.multi_reduction <add>, %28, %cst_20 [1] : vector<128x32xf32> to vector<128xf32>
    %30 = vector.shape_cast %29 : vector<128xf32> to vector<128x1xf32>
    %cst_21 = arith.constant 3.200000e+01 : f32
    %31 = vector.broadcast %cst_21 : f32 to vector<128x1xf32>
    %32 = arith.divf %30, %31 : vector<128x1xf32>
    %33 = vector.broadcast %32 : vector<128x1xf32> to vector<128x32xf32>
    %34 = arith.subf %28, %33 : vector<128x32xf32>
    %35 = arith.mulf %34, %34 : vector<128x32xf32>
    %cst_22 = arith.constant dense<0.000000e+00> : vector<128xf32>
    %36 = vector.multi_reduction <add>, %35, %cst_22 [1] : vector<128x32xf32> to vector<128xf32>
    %37 = vector.shape_cast %36 : vector<128xf32> to vector<128x1xf32>
    %cst_23 = arith.constant 3.200000e+01 : f32
    %38 = vector.broadcast %cst_23 : f32 to vector<128x1xf32>
    %39 = arith.divf %37, %38 : vector<128x1xf32>
    %40 = vector.broadcast %32 : vector<128x1xf32> to vector<128x32xf32>
    %41 = arith.subf %28, %40 : vector<128x32xf32>
    %cst_24 = arith.constant 9.99999974E-6 : f32
    %42 = vector.broadcast %cst_24 : f32 to vector<128x1xf32>
    %43 = arith.addf %39, %42 : vector<128x1xf32>
    %44 = math.rsqrt %43 : vector<128x1xf32>
    %45 = vector.broadcast %44 : vector<128x1xf32> to vector<128x32xf32>
    %46 = arith.mulf %41, %45 : vector<128x32xf32>
    %47 = vector.extract_strided_slice %23 {offsets = [1, 0], sizes = [1, 32], strides = [1, 1]} : vector<4x32xf32> to vector<1x32xf32>
    %48 = vector.broadcast %47 : vector<1x32xf32> to vector<128x32xf32>
    %49 = arith.mulf %46, %48 : vector<128x32xf32>
    %50 = vector.extract_strided_slice %23 {offsets = [2, 0], sizes = [1, 32], strides = [1, 1]} : vector<4x32xf32> to vector<1x32xf32>
    %51 = vector.broadcast %50 : vector<1x32xf32> to vector<128x32xf32>
    %52 = arith.addf %49, %51 : vector<128x32xf32>
    %cst_25 = arith.constant 0.000000e+00 : f32
    %53 = vector.broadcast %cst_25 : f32 to vector<128x32xf32>
    %54 = arith.maximumf %52, %53 : vector<128x32xf32>
    %cst_26 = arith.constant dense<0.000000e+00> : vector<128x32xf32>
    %55 = tpu.matmul %54, %24, %cst_26 {dimension_numbers = #tpu.dot_dimension_numbers<[1], [0], [0], [1], [0, 0, 1, 1], [], []>} : vector<128x32xf32>, vector<32x32xf32>, vector<128x32xf32> -> vector<128x32xf32>
    %56 = vector.extract_strided_slice %23 {offsets = [3, 0], sizes = [1, 32], strides = [1, 1]} : vector<4x32xf32> to vector<1x32xf32>
    %57 = vector.broadcast %56 : vector<1x32xf32> to vector<128x32xf32>
    %58 = arith.addf %55, %57 : vector<128x32xf32>
    %c0_27 = arith.constant 0 : index
    %c0_28 = arith.constant 0 : index
    %59 = vector.load %arg10[%c0_27, %c0_28] : memref<32x32xf32, #tpu.memory_space<vmem>>, vector<32x32xf32>
    %c0_29 = arith.constant 0 : index
    %c0_30 = arith.constant 0 : index
    %60 = vector.load %arg11[%c0_29, %c0_30] : memref<4x32xf32, #tpu.memory_space<vmem>>, vector<4x32xf32>
    %c0_31 = arith.constant 0 : index
    %c0_32 = arith.constant 0 : index
    %61 = vector.load %arg12[%c0_31, %c0_32] : memref<32x32xf32, #tpu.memory_space<vmem>>, vector<32x32xf32>
    %cst_33 = arith.constant dense<0.000000e+00> : vector<128x32xf32>
    %62 = tpu.matmul %16, %59, %cst_33 {dimension_numbers = #tpu.dot_dimension_numbers<[1], [0], [0], [1], [0, 0, 1, 1], [], []>} : vector<128x32xf32>, vector<32x32xf32>, vector<128x32xf32> -> vector<128x32xf32>
    %63 = vector.extract_strided_slice %60 {offsets = [0, 0], sizes = [1, 32], strides = [1, 1]} : vector<4x32xf32> to vector<1x32xf32>
    %64 = vector.broadcast %63 : vector<1x32xf32> to vector<128x32xf32>
    %65 = arith.addf %62, %64 : vector<128x32xf32>
    %cst_34 = arith.constant dense<0.000000e+00> : vector<128xf32>
    %66 = vector.multi_reduction <add>, %65, %cst_34 [1] : vector<128x32xf32> to vector<128xf32>
    %67 = vector.shape_cast %66 : vector<128xf32> to vector<128x1xf32>
    %cst_35 = arith.constant 3.200000e+01 : f32
    %68 = vector.broadcast %cst_35 : f32 to vector<128x1xf32>
    %69 = arith.divf %67, %68 : vector<128x1xf32>
    %70 = vector.broadcast %69 : vector<128x1xf32> to vector<128x32xf32>
    %71 = arith.subf %65, %70 : vector<128x32xf32>
    %72 = arith.mulf %71, %71 : vector<128x32xf32>
    %cst_36 = arith.constant dense<0.000000e+00> : vector<128xf32>
    %73 = vector.multi_reduction <add>, %72, %cst_36 [1] : vector<128x32xf32> to vector<128xf32>
    %74 = vector.shape_cast %73 : vector<128xf32> to vector<128x1xf32>
    %cst_37 = arith.constant 3.200000e+01 : f32
    %75 = vector.broadcast %cst_37 : f32 to vector<128x1xf32>
    %76 = arith.divf %74, %75 : vector<128x1xf32>
    %77 = vector.broadcast %69 : vector<128x1xf32> to vector<128x32xf32>
    %78 = arith.subf %65, %77 : vector<128x32xf32>
    %cst_38 = arith.constant 9.99999974E-6 : f32
    %79 = vector.broadcast %cst_38 : f32 to vector<128x1xf32>
    %80 = arith.addf %76, %79 : vector<128x1xf32>
    %81 = math.rsqrt %80 : vector<128x1xf32>
    %82 = vector.broadcast %81 : vector<128x1xf32> to vector<128x32xf32>
    %83 = arith.mulf %78, %82 : vector<128x32xf32>
    %84 = vector.extract_strided_slice %60 {offsets = [1, 0], sizes = [1, 32], strides = [1, 1]} : vector<4x32xf32> to vector<1x32xf32>
    %85 = vector.broadcast %84 : vector<1x32xf32> to vector<128x32xf32>
    %86 = arith.mulf %83, %85 : vector<128x32xf32>
    %87 = vector.extract_strided_slice %60 {offsets = [2, 0], sizes = [1, 32], strides = [1, 1]} : vector<4x32xf32> to vector<1x32xf32>
    %88 = vector.broadcast %87 : vector<1x32xf32> to vector<128x32xf32>
    %89 = arith.addf %86, %88 : vector<128x32xf32>
    %cst_39 = arith.constant 0.000000e+00 : f32
    %90 = vector.broadcast %cst_39 : f32 to vector<128x32xf32>
    %91 = arith.maximumf %89, %90 : vector<128x32xf32>
    %cst_40 = arith.constant dense<0.000000e+00> : vector<128x32xf32>
    %92 = tpu.matmul %91, %61, %cst_40 {dimension_numbers = #tpu.dot_dimension_numbers<[1], [0], [0], [1], [0, 0, 1, 1], [], []>} : vector<128x32xf32>, vector<32x32xf32>, vector<128x32xf32> -> vector<128x32xf32>
    %93 = vector.extract_strided_slice %60 {offsets = [3, 0], sizes = [1, 32], strides = [1, 1]} : vector<4x32xf32> to vector<1x32xf32>
    %94 = vector.broadcast %93 : vector<1x32xf32> to vector<128x32xf32>
    %95 = arith.addf %92, %94 : vector<128x32xf32>
    %96 = arith.mulf %58, %95 : vector<128x32xf32>
    %c0_41 = arith.constant 0 : index
    %c0_42 = arith.constant 0 : index
    %97 = vector.load %arg3[%c0_41, %c0_42] : memref<128x32xf32, #tpu.memory_space<vmem>>, vector<128x32xf32>
    %c0_43 = arith.constant 0 : index
    %c0_44 = arith.constant 0 : index
    %98 = vector.load %arg13[%c0_43, %c0_44] : memref<32x32xf32, #tpu.memory_space<vmem>>, vector<32x32xf32>
    %cst_45 = arith.constant dense<0.000000e+00> : vector<128x32xf32>
    %99 = tpu.matmul %97, %98, %cst_45 {dimension_numbers = #tpu.dot_dimension_numbers<[1], [0], [0], [1], [0, 0, 1, 1], [], []>} : vector<128x32xf32>, vector<32x32xf32>, vector<128x32xf32> -> vector<128x32xf32>
    %c0_46 = arith.constant 0 : index
    %c0_47 = arith.constant 0 : index
    %100 = vector.load %arg14[%c0_46, %c0_47] : memref<32x32xf32, #tpu.memory_space<vmem>>, vector<32x32xf32>
    %cst_48 = arith.constant dense<0.000000e+00> : vector<128x32xf32>
    %101 = tpu.matmul %96, %100, %cst_48 {dimension_numbers = #tpu.dot_dimension_numbers<[1], [0], [0], [1], [0, 0, 1, 1], [], []>} : vector<128x32xf32>, vector<32x32xf32>, vector<128x32xf32> -> vector<128x32xf32>
    %102 = arith.mulf %99, %101 : vector<128x32xf32>
    %c0_49 = arith.constant 0 : index
    %c0_50 = arith.constant 0 : index
    %103 = vector.load %arg15[%c0_49, %c0_50] : memref<32x32xf32, #tpu.memory_space<vmem>>, vector<32x32xf32>
    %c0_51 = arith.constant 0 : index
    %c0_52 = arith.constant 0 : index
    %104 = vector.load %arg16[%c0_51, %c0_52] : memref<4x32xf32, #tpu.memory_space<vmem>>, vector<4x32xf32>
    %c0_53 = arith.constant 0 : index
    %c0_54 = arith.constant 0 : index
    %105 = vector.load %arg17[%c0_53, %c0_54] : memref<32x1xf32, #tpu.memory_space<vmem>>, vector<32x1xf32>
    %cst_55 = arith.constant dense<0.000000e+00> : vector<128x32xf32>
    %106 = tpu.matmul %102, %103, %cst_55 {dimension_numbers = #tpu.dot_dimension_numbers<[1], [0], [0], [1], [0, 0, 1, 1], [], []>} : vector<128x32xf32>, vector<32x32xf32>, vector<128x32xf32> -> vector<128x32xf32>
    %107 = vector.extract_strided_slice %104 {offsets = [0, 0], sizes = [1, 32], strides = [1, 1]} : vector<4x32xf32> to vector<1x32xf32>
    %108 = vector.broadcast %107 : vector<1x32xf32> to vector<128x32xf32>
    %109 = arith.addf %106, %108 : vector<128x32xf32>
    %cst_56 = arith.constant dense<0.000000e+00> : vector<128xf32>
    %110 = vector.multi_reduction <add>, %109, %cst_56 [1] : vector<128x32xf32> to vector<128xf32>
    %111 = vector.shape_cast %110 : vector<128xf32> to vector<128x1xf32>
    %cst_57 = arith.constant 3.200000e+01 : f32
    %112 = vector.broadcast %cst_57 : f32 to vector<128x1xf32>
    %113 = arith.divf %111, %112 : vector<128x1xf32>
    %114 = vector.broadcast %113 : vector<128x1xf32> to vector<128x32xf32>
    %115 = arith.subf %109, %114 : vector<128x32xf32>
    %116 = arith.mulf %115, %115 : vector<128x32xf32>
    %cst_58 = arith.constant dense<0.000000e+00> : vector<128xf32>
    %117 = vector.multi_reduction <add>, %116, %cst_58 [1] : vector<128x32xf32> to vector<128xf32>
    %118 = vector.shape_cast %117 : vector<128xf32> to vector<128x1xf32>
    %cst_59 = arith.constant 3.200000e+01 : f32
    %119 = vector.broadcast %cst_59 : f32 to vector<128x1xf32>
    %120 = arith.divf %118, %119 : vector<128x1xf32>
    %121 = vector.broadcast %113 : vector<128x1xf32> to vector<128x32xf32>
    %122 = arith.subf %109, %121 : vector<128x32xf32>
    %cst_60 = arith.constant 9.99999974E-6 : f32
    %123 = vector.broadcast %cst_60 : f32 to vector<128x1xf32>
    %124 = arith.addf %120, %123 : vector<128x1xf32>
    %125 = math.rsqrt %124 : vector<128x1xf32>
    %126 = vector.broadcast %125 : vector<128x1xf32> to vector<128x32xf32>
    %127 = arith.mulf %122, %126 : vector<128x32xf32>
    %128 = vector.extract_strided_slice %104 {offsets = [1, 0], sizes = [1, 32], strides = [1, 1]} : vector<4x32xf32> to vector<1x32xf32>
    %129 = vector.broadcast %128 : vector<1x32xf32> to vector<128x32xf32>
    %130 = arith.mulf %127, %129 : vector<128x32xf32>
    %131 = vector.extract_strided_slice %104 {offsets = [2, 0], sizes = [1, 32], strides = [1, 1]} : vector<4x32xf32> to vector<1x32xf32>
    %132 = vector.broadcast %131 : vector<1x32xf32> to vector<128x32xf32>
    %133 = arith.addf %130, %132 : vector<128x32xf32>
    %cst_61 = arith.constant 0.000000e+00 : f32
    %134 = vector.broadcast %cst_61 : f32 to vector<128x32xf32>
    %135 = arith.maximumf %133, %134 : vector<128x32xf32>
    %cst_62 = arith.constant dense<0.000000e+00> : vector<128x1xf32>
    %136 = tpu.matmul %135, %105, %cst_62 {dimension_numbers = #tpu.dot_dimension_numbers<[1], [0], [0], [1], [0, 0, 1, 1], [], []>} : vector<128x32xf32>, vector<32x1xf32>, vector<128x1xf32> -> vector<128x1xf32>
    %137 = vector.extract_strided_slice %104 {offsets = [3, 0], sizes = [1, 1], strides = [1, 1]} : vector<4x32xf32> to vector<1x1xf32>
    %138 = vector.broadcast %137 : vector<1x1xf32> to vector<128x1xf32>
    %139 = arith.addf %136, %138 : vector<128x1xf32>
    %140 = arith.mulf %139, %21 : vector<128x1xf32>
    %141 = vector.broadcast %140 : vector<128x1xf32> to vector<128x128xf32>
    %142 = arith.mulf %141, %19 : vector<128x128xf32>
    %c0_63 = arith.constant 0 : index
    %c0_64 = arith.constant 0 : index
    %143 = vector.load %arg18[%c0_63, %c0_64] : memref<64x128xf32, #tpu.memory_space<vmem>>, vector<64x128xf32>
    %cst_65 = arith.constant dense<0.000000e+00> : vector<64x128xf32>
    %144 = tpu.matmul %8, %142, %cst_65 {dimension_numbers = #tpu.dot_dimension_numbers<[0], [0], [1], [1], [0, 1, 1, 1], [], []>} : vector<128x64xf32>, vector<128x128xf32>, vector<64x128xf32> -> vector<64x128xf32>
    %145 = arith.addf %143, %144 : vector<64x128xf32>
    %c0_66 = arith.constant 0 : index
    %c0_67 = arith.constant 0 : index
    %146 = vector.load %arg18[%c0_66, %c0_67] : memref<64x128xf32, #tpu.memory_space<vmem>>, vector<64x128xf32>
    tpu.vector_store %arg18[%c0_66, %c0_67], %145 {strides = array<i32>} : memref<64x128xf32, #tpu.memory_space<vmem>>, vector<64x128xf32>,
    return
  }
  func.func @transform_0(%arg0: i32) -> (i32, i32) {
    %c0_i32 = arith.constant 0 : i32
    %c0_i32_0 = arith.constant 0 : i32
    return %arg0, %c0_i32 : i32, i32
  }
  func.func @transform_1(%arg0: i32) -> (i32, i32) {
    %c0_i32 = arith.constant 0 : i32
    %c0_i32_0 = arith.constant 0 : i32
    return %arg0, %c0_i32 : i32, i32
  }
  func.func @transform_2(%arg0: i32) -> (i32, i32) {
    %c0_i32 = arith.constant 0 : i32
    %c0_i32_0 = arith.constant 0 : i32
    return %arg0, %c0_i32 : i32, i32
  }
  func.func @transform_3(%arg0: i32) -> (i32, i32) {
    %c0_i32 = arith.constant 0 : i32
    %c0_i32_0 = arith.constant 0 : i32
    %c0_i32_1 = arith.constant 0 : i32
    return %c0_i32, %c0_i32_0 : i32, i32
  }
  func.func @transform_4(%arg0: i32) -> (i32, i32) {
    %c0_i32 = arith.constant 0 : i32
    %c0_i32_0 = arith.constant 0 : i32
    %c0_i32_1 = arith.constant 0 : i32
    return %c0_i32, %c0_i32_0 : i32, i32
  }
  func.func @transform_5(%arg0: i32) -> (i32, i32) {
    %c0_i32 = arith.constant 0 : i32
    %c0_i32_0 = arith.constant 0 : i32
    %c0_i32_1 = arith.constant 0 : i32
    return %c0_i32, %c0_i32_0 : i32, i32
  }
  func.func @transform_6(%arg0: i32) -> (i32, i32) {
    %c0_i32 = arith.constant 0 : i32
    %c0_i32_0 = arith.constant 0 : i32
    %c0_i32_1 = arith.constant 0 : i32
    return %c0_i32, %c0_i32_0 : i32, i32
  }
  func.func @transform_7(%arg0: i32) -> (i32, i32) {
    %c0_i32 = arith.constant 0 : i32
    %c0_i32_0 = arith.constant 0 : i32
    %c0_i32_1 = arith.constant 0 : i32
    return %c0_i32, %c0_i32_0 : i32, i32
  }
  func.func @transform_8(%arg0: i32) -> (i32, i32) {
    %c0_i32 = arith.constant 0 : i32
    %c0_i32_0 = arith.constant 0 : i32
    %c0_i32_1 = arith.constant 0 : i32
    return %c0_i32, %c0_i32_0 : i32, i32
  }
  func.func @transform_9(%arg0: i32) -> (i32, i32) {
    %c0_i32 = arith.constant 0 : i32
    %c0_i32_0 = arith.constant 0 : i32
    %c0_i32_1 = arith.constant 0 : i32
    return %c0_i32, %c0_i32_0 : i32, i32
  }
  func.func @transform_10(%arg0: i32) -> (i32, i32) {
    %c0_i32 = arith.constant 0 : i32
    %c0_i32_0 = arith.constant 0 : i32
    %c0_i32_1 = arith.constant 0 : i32
    return %c0_i32, %c0_i32_0 : i32, i32
  }
  func.func @transform_11(%arg0: i32) -> (i32, i32) {
    %c0_i32 = arith.constant 0 : i32
    %c0_i32_0 = arith.constant 0 : i32
    %c0_i32_1 = arith.constant 0 : i32
    return %c0_i32, %c0_i32_0 : i32, i32
  }
  func.func @transform_12(%arg0: i32) -> (i32, i32) {
    %c0_i32 = arith.constant 0 : i32
    %c0_i32_0 = arith.constant 0 : i32
    %c0_i32_1 = arith.constant 0 : i32
    return %c0_i32, %c0_i32_0 : i32, i32
  }
  func.func @transform_13(%arg0: i32) -> (i32, i32) {
    %c0_i32 = arith.constant 0 : i32
    %c0_i32_0 = arith.constant 0 : i32
    %c0_i32_1 = arith.constant 0 : i32
    return %c0_i32, %c0_i32_0 : i32, i32
  }
  func.func @transform_14(%arg0: i32) -> (i32, i32) {
    %c0_i32 = arith.constant 0 : i32
    %c0_i32_0 = arith.constant 0 : i32
    %c0_i32_1 = arith.constant 0 : i32
    return %c0_i32, %c0_i32_0 : i32, i32
  }
  func.func @transform_15(%arg0: i32) -> (i32, i32) {
    %c0_i32 = arith.constant 0 : i32
    %c0_i32_0 = arith.constant 0 : i32
    %c0_i32_1 = arith.constant 0 : i32
    return %c0_i32, %c0_i32_0 : i32, i32
  }
  func.func @transform_16(%arg0: i32) -> (i32, i32) {
    %c0_i32 = arith.constant 0 : i32
    %c0_i32_0 = arith.constant 0 : i32
    %c0_i32_1 = arith.constant 0 : i32
    return %c0_i32, %c0_i32_0 : i32, i32
  }
  func.func @transform_17(%arg0: i32) -> (i32, i32) {
    %c0_i32 = arith.constant 0 : i32
    %c0_i32_0 = arith.constant 0 : i32
    %c0_i32_1 = arith.constant 0 : i32
    return %c0_i32, %c0_i32_0 : i32, i32
  }
}

</mosaic_0001>

<bundles_post_ra>
// kernel: tpu_custom_call.1
= control target key start
LH: loop header
LB: loop body
LE: loop exit
PB: predicated region body
PF: predicated region fallthrough
CT: control target
= control target key end

     0   :  { %s7275_s0 = inlined_call_operand.vmem [shape: s32[384,1], index: 0, kind: input, shape index: {}]   ;;  %s7276_s1 = inlined_call_operand.vmem [shape: s32[384,1], index: 1, kind: input, shape index: {}]   ;;  %s7277_s2 = inlined_call_operand.vmem [shape: f32[384,32], index: 2, kind: input, shape index: {}]   ;;  %s7278_s3 = inlined_call_operand.vmem [shape: f32[64,32], index: 3, kind: input, shape index: {}]   ;;  %s7279_s4 = inlined_call_operand.vmem [shape: f32[64,128], index: 4, kind: input, shape index: {}]   ;;  %s7280_s5 = inlined_call_operand.vmem [shape: f32[64,1], index: 5, kind: input, shape index: {}]   ;;  %s7281_s6 = inlined_call_operand.vmem [shape: f32[32,32], index: 6, kind: input, shape index: {}]   ;;  %s7282_s7 = inlined_call_operand.vmem [shape: f32[4,32], index: 7, kind: input, shape index: {}]   ;;  %s7283_s8 = inlined_call_operand.vmem [shape: f32[32,32], index: 8, kind: input, shape index: {}]   ;;  %s7284_s9 = inlined_call_operand.vmem [shape: f32[32,32], index: 9, kind: input, shape index: {}]   ;;  %s7285_s10 = inlined_call_operand.vmem [shape: f32[4,32], index: 10, kind: input, shape index: {}]   ;;  %s7286_s11 = inlined_call_operand.vmem [shape: f32[32,32], index: 11, kind: input, shape index: {}]   ;;  %s7287_s12 = inlined_call_operand.vmem [shape: f32[32,32], index: 12, kind: input, shape index: {}]   ;;  %s7288_s13 = inlined_call_operand.vmem [shape: f32[32,32], index: 13, kind: input, shape index: {}]   ;;  %s7289_s14 = inlined_call_operand.vmem [shape: f32[32,32], index: 14, kind: input, shape index: {}]   ;;  %s7290_s15 = inlined_call_operand.vmem [shape: f32[4,32], index: 15, kind: input, shape index: {}]   ;;  %s7291_s16 = inlined_call_operand.vmem [shape: f32[32,1], index: 16, kind: input, shape index: {}]   ;;  %s7292_s17 = inlined_call_operand.hbm [shape: f32[64,128], index: 17, kind: output, shape index: {}]  }
   0x1   :  { %7309 = sst [smem:[#allocation48_spill]] %s7275_s0 }
   0x2   :  { %7310 = sst [smem:[#allocation49_spill]] %s7276_s1 }
   0x3   :  { %22 = vsyncpa [#allocation3], 0  ;;  %s5771_s24 = smov 0  }
   0x4 LB: > { %s5777_s25 = sadd.s32 4294967295, %s5673_s24   ;;  %p4377_p0 = scmp.ge.s32.totalorder %s5673_s24, 1  ;;  %s5673_s24 = sphi %s5771_s24, %s28_s24  }
   0x5   : > { %p506_p1 = scmp.lt.s32.totalorder %s5673_s24, 4 }
   0x7   : > { %p507_p2 = pnand %p4377_p0, %p506_p1 }
   0x9   : > { %510 = sbr.rel (%p507_p2) target bundleno = 2572 (0xa0c), region = 88 }
  0x10   : > { %s4378_s26 = sshll.u32 %s5777_s25, 4  ;;  %s7311_s0 = sld [smem:[#allocation48_spill]] }
  0x11   : > { %p564_p3 = scmp.lt.s32.totalorder %s4378_s26, 47  ;;  %s7312_s1 = sld [smem:[#allocation49_spill]] }
  0x12   : > { %p4384_p4 = scmp.ne.s32.totalorder %s5777_s25, 0 }
  0x13   : > { %s7400_s26 = smov (!%p564_p3, %s4378_s26), 47  ;;  %v5675_v0 = vmov (!%p4384_p4), 0.0  }
  0x14   : > { %s4379_s27 = sshll.u32 %s7400_s26, 3  ;;  %584 = sbr.rel (%p4384_p4) target bundleno = 27 (0x1b), region = 92  ;;  %585 = vst [vmem:[#allocation2] sm:$0xff] (!%p4384_p4), %v5675_v0  ;;  %586 = vst [vmem:[#allocation2 + $0x8] sm:$0xff] (!%p4384_p4), %v5675_v0 }
  0x15   : > { %s5795_s23 = scalar_lea.vmem %s7277_s2, %s4379_s27  ;;  %587 = vst [vmem:[#allocation2 + $0x10] sm:$0xff] (!%p4384_p4), %v5675_v0  ;;  %588 = vst [vmem:[#allocation2 + $0x18] sm:$0xff] (!%p4384_p4), %v5675_v0 }
  0x16   : > { %s5785_s30 = scalar_lea.vmem %s7311_s0, %s4379_s27  ;;  %589 = vst [vmem:[#allocation2 + $0x20] sm:$0xff] (!%p4384_p4), %v5675_v0  ;;  %590 = vst [vmem:[#allocation2 + $0x28] sm:$0xff] (!%p4384_p4), %v5675_v0 }
  0x17   : > { %s5790_s20 = scalar_lea.vmem %s7312_s1, %s4379_s27  ;;  %591 = vst [vmem:[#allocation2 + $0x30] sm:$0xff] (!%p4384_p4), %v5675_v0  ;;  %592 = vst [vmem:[#allocation2 + $0x38] sm:$0xff] (!%p4384_p4), %v5675_v0 }
  0x1b PF: > { %v597_v1 = vld [vmem:[%s5785_s30 + $0x10] sm:$0xff]  ;;  %v595_v2 = vld [vmem:[%s5785_s30] sm:$0xff]  ;;  %v5676_v3 = vmov 0   ;;  %v598_v4 = vld [vmem:[%s5785_s30 + $0x18] sm:$0xff]  ;;  %v593_v52 = vlaneseq  ;;  %vm827_vm0 = vcmask 523264   ;;  %v5677_v56 = vmov 0.0  }
  0x1c   : > { %5538 = vset.pattern.permute.xlu1 %v5676_v3  ;;  %5537 = vset.pattern.permute.xlu0 %v5676_v3  ;;  %v596_v5 = vld [vmem:[%s5785_s30 + $0x8] sm:$0xff]  ;;  %v599_v7 = vld [vmem:[%s5785_s30 + $0x20] sm:$0xff]  ;;  %v602_v8 = vld [vmem:[%s5785_s30 + $0x38] sm:$0xff]  ;;  %s5678_s29 = smov [#allocation2]   ;;  %p5521_p5 = scmp.eq.s32.totalorder %s5777_s25, 2 }
  0x1d   : > { %618 = vperm.xlu1 %5538, %v597_v1   ;;  %612 = vperm.xlu0 %5537, %v595_v2   ;;  %v600_v6 = vld [vmem:[%s5785_s30 + $0x28] sm:$0xff]  ;;  %v601_v9 = vld [vmem:[%s5785_s30 + $0x30] sm:$0xff]  ;;  %v819_v10 = vld [vmem:[%s7278_s3] sm:$0xff]  ;;  %v5873_v53 = vand.u32 127, %v593_v52  ;;  %s4308_s0 = sshll.u32 %s5678_s29, 4  ;;  %s4309_s0 = int_to_ptr.vmem [resolvable:$true] %s4308_s0 }
  0x1e   : > { %v820_v11 = vld [vmem:[%s7278_s3 + $0x8] sm:$0xff]  ;;  %v821_v12 = vld [vmem:[%s7278_s3 + $0x10] sm:$0xff]  ;;  %v822_v13 = vld [vmem:[%s7278_s3 + $0x18] sm:$0xff]  ;;  %p5644_p9 = scmp.lt.s32.totalorder %s4309_s0, %s4309_s0 }
  0x1f   : > { %v5353_v14 = vpack.c.bf16 %v820_v11, %v819_v10  ;;  %v5357_v15 = vpack.c.bf16 %v822_v13, %v821_v12  ;;  %v823_v16 = vld [vmem:[%s7278_s3 + $0x20] sm:$0xff]  ;;  %v824_v17 = vld [vmem:[%s7278_s3 + $0x28] sm:$0xff]  ;;  %v825_v21 = vld [vmem:[%s7278_s3 + $0x30] sm:$0xff] }
  0x20   : > { %v604_v18 = vld [vmem:[%s5785_s30 + $0x48] sm:$0xff]  ;;  %v603_v19 = vld [vmem:[%s5785_s30 + $0x40] sm:$0xff]  ;;  %v5361_v20 = vpack.c.bf16 %v824_v17, %v823_v16  ;;  %v826_v22 = vld [vmem:[%s7278_s3 + $0x38] sm:$0xff] }
  0x21   : > { %621 = vperm.xlu1 %5538, %v598_v4   ;;  %615 = vperm.xlu0 %5537, %v596_v5   ;;  %v606_v23 = vld [vmem:[%s5785_s30 + $0x58] sm:$0xff]  ;;  %v605_v24 = vld [vmem:[%s5785_s30 + $0x50] sm:$0xff]  ;;  %v5365_v25 = vpack.c.bf16 %v826_v22, %v825_v21  ;;  %v1230_v26 = vld [vmem:[%s7279_s4] sm:$0xff] }
  0x22   : > { %5354 = vmatprep.subr.bf16.mxu0 %v5353_v14  ;;  %5370 = vmatprep.subr.bf16.mxu1 %v5353_v14  ;;  %v1231_v27 = vld [vmem:[%s7279_s4 + $0x8] sm:$0xff]  ;;  %v607_v29 = vld [vmem:[%s5785_s30 + $0x60] sm:$0xff]  ;;  %v610_v31 = vld [vmem:[%s5785_s30 + $0x78] sm:$0xff] }
  0x23   : > { %5356 = vmatpush3.bf16.msra.mxu0 %v5353_v14  ;;  %5372 = vmatpush3.bf16.msra.mxu1 %v5353_v14  ;;  %v608_v28 = vld [vmem:[%s5785_s30 + $0x68] sm:$0xff]  ;;  %v5842_v30 = vpack.c.bf16 %v1231_v27, %v1230_v26  ;;  %v609_v32 = vld [vmem:[%s5785_s30 + $0x70] sm:$0xff]  ;;  %v707_v34 = vld [vmem:[%s5790_s20] sm:$0xff] }
  0x24   : > { %5358 = vmatprep.subr.bf16.mxu0 %v5357_v15  ;;  %5374 = vmatprep.subr.bf16.mxu1 %v5357_v15  ;;  %v708_v33 = vld [vmem:[%s5790_s20 + $0x8] sm:$0xff]  ;;  %v710_v35 = vld [vmem:[%s5790_s20 + $0x18] sm:$0xff]  ;;  %v709_v36 = vld [vmem:[%s5790_s20 + $0x10] sm:$0xff] }
  0x25   : > { %627 = vperm.xlu1 %5538, %v600_v6   ;;  %624 = vperm.xlu0 %5537, %v599_v7   ;;  %v712_v37 = vld [vmem:[%s5790_s20 + $0x28] sm:$0xff]  ;;  %v711_v38 = vld [vmem:[%s5790_s20 + $0x20] sm:$0xff]  ;;  %v714_v39 = vld [vmem:[%s5790_s20 + $0x38] sm:$0xff] }
  0x26   : > { %v713_v40 = vld [vmem:[%s5790_s20 + $0x30] sm:$0xff]  ;;  %v716_v41 = vld [vmem:[%s5790_s20 + $0x48] sm:$0xff]  ;;  %v715_v42 = vld [vmem:[%s5790_s20 + $0x40] sm:$0xff] }
  0x27   : > { %5360 = vmatpush3.bf16.msra.mxu0 %v5357_v15  ;;  %5376 = vmatpush3.bf16.msra.mxu1 %v5357_v15  ;;  %v1431_v43 = vld [vmem:[%s7280_s5] sm:$0xff]  ;;  %v1432_v44 = vld [vmem:[%s7280_s5 + $0x8] sm:$0xff]  ;;  %v718_v45 = vld [vmem:[%s5790_s20 + $0x58] sm:$0xff] }
  0x28   : > { %5362 = vmatprep.subr.bf16.mxu0 %v5361_v20  ;;  %5378 = vmatprep.subr.bf16.mxu1 %v5361_v20  ;;  %v717_v46 = vld [vmem:[%s5790_s20 + $0x50] sm:$0xff]  ;;  %v5865_v47 = vpack.c.bf16 %v1432_v44, %v1431_v43  ;;  %v720_v48 = vld [vmem:[%s5790_s20 + $0x68] sm:$0xff]  ;;  %v719_v49 = vld [vmem:[%s5790_s20 + $0x60] sm:$0xff] }
  0x29   : > { %633 = vperm.xlu1 %5538, %v602_v8   ;;  %630 = vperm.xlu0 %5537, %v601_v9   ;;  %v722_v50 = vld [vmem:[%s5790_s20 + $0x78] sm:$0xff]  ;;  %v721_v51 = vld [vmem:[%s5790_s20 + $0x70] sm:$0xff]  ;;  %v1234_v1 = vld [vmem:[%s7279_s4 + $0x20] sm:$0xff]  ;;  %s5637_s20 = scalar_lea.vmem %s4309_s0, 1024 }
  0x2a   : > { %v1232_v58 = vld [vmem:[%s7279_s4 + $0x10] sm:$0xff]  ;;  %v1233_v59 = vld [vmem:[%s7279_s4 + $0x18] sm:$0xff]  ;;  %v1235_v2 = vld [vmem:[%s7279_s4 + $0x28] sm:$0xff]  ;;  %p5638_p6 = scmp.ne.s32.totalorder %s4309_s0, %s5637_s20  ;;  %p5645_p10 = scmp.lt.s32.totalorder %s5637_s20, %s5637_s20 }
  0x2b   : > { %5364 = vmatpush3.bf16.msra.mxu0 %v5361_v20  ;;  %5380 = vmatpush3.bf16.msra.mxu1 %v5361_v20  ;;  %v5389_v63 = vpack.c.bf16 %v1233_v59, %v1232_v58  ;;  %v5393_v5 = vpack.c.bf16 %v1235_v2, %v1234_v1  ;;  %v1236_v8 = vld [vmem:[%s7279_s4 + $0x30] sm:$0xff]  ;;  %v1237_v9 = vld [vmem:[%s7279_s4 + $0x38] sm:$0xff]  ;;  %v1584_v15 = vld [vmem:[%s7281_s6] sm:$0xff] }
  0x2c   : > { %5366 = vmatprep.subr.bf16.mxu0 %v5365_v25  ;;  %5382 = vmatprep.subr.bf16.mxu1 %v5365_v25  ;;  %v5397_v12 = vpack.c.bf16 %v1237_v9, %v1236_v8  ;;  %v1585_v16 = vld [vmem:[%s7281_s6 + $0x8] sm:$0xff]  ;;  %p5639_p7 = pnand %p5638_p6, %p5521_p5  ;;  %p5646_p11 = por %p5645_p10, %p5644_p9 }
  0x2d   : > { %639 = vperm.xlu1 %5538, %v604_v18   ;;  %636 = vperm.xlu0 %5537, %v603_v19   ;;  %v5944_v19 = vpack.c.bf16 %v1585_v16, %v1584_v15  ;;  %v1436_v44 = vld [vmem:[%s7280_s5 + $0x28] sm:$0xff] }
  0x2e   : > { %p5640_p8 = pneg %p5639_p7 }
  0x2f   : > { %5368 = vmatpush3.bf16.msra.mxu0 %v5365_v25  ;;  %5384 = vmatpush3.bf16.msra.mxu1 %v5365_v25 }
  0x30   : > { %5386 = vmatprep.subr.bf16.mxu0 %v5842_v30  ;;  %5402 = vmatprep.subr.bf16.mxu1 %v5865_v47  ;;  %p5647_p12 = pnand %p5646_p11, %p5640_p8 }
  0x31   : > { %645 = vperm.xlu1 %5538, %v606_v23   ;;  %642 = vperm.xlu0 %5537, %v605_v24  }
  0x35   : > { %651 = vperm.xlu1 %5538, %v608_v28   ;;  %648 = vperm.xlu0 %5537, %v607_v29  }
  0x39   : > { %657 = vperm.xlu1 %5538, %v610_v31   ;;  %654 = vperm.xlu0 %5537, %v609_v32  }
  0x3d   : > { %727 = vperm.xlu1 %5538, %v708_v33   ;;  %724 = vperm.xlu0 %5537, %v707_v34   ;;  %v1433_v34 = vld [vmem:[%s7280_s5 + $0x10] sm:$0xff] }
  0x41   : > { %733 = vperm.xlu1 %5538, %v710_v35   ;;  %730 = vperm.xlu0 %5537, %v709_v36   ;;  %v1434_v35 = vld [vmem:[%s7280_s5 + $0x18] sm:$0xff] }
  0x45   : > { %739 = vperm.xlu1 %5538, %v712_v37   ;;  %736 = vperm.xlu0 %5537, %v711_v38  }
  0x49   : > { %745 = vperm.xlu1 %5538, %v714_v39   ;;  %742 = vperm.xlu0 %5537, %v713_v40  }
  0x4d   : > { %751 = vperm.xlu1 %5538, %v716_v41   ;;  %748 = vperm.xlu0 %5537, %v715_v42   ;;  %v5405_v41 = vpack.c.bf16 %v1434_v35, %v1433_v34  ;;  %v1435_v42 = vld [vmem:[%s7280_s5 + $0x20] sm:$0xff] }
  0x51   : > { %757 = vperm.xlu1 %5538, %v718_v45   ;;  %754 = vperm.xlu0 %5537, %v717_v46   ;;  %v1586_v45 = vld [vmem:[%s7281_s6 + $0x10] sm:$0xff]  ;;  %v1587_v46 = vld [vmem:[%s7281_s6 + $0x18] sm:$0xff] }
  0x52   : > { %v6031_v58 = vpack.c.bf16 %v1587_v46, %v1586_v45 }
  0x55   : > { %763 = vperm.xlu1 %5538, %v720_v48   ;;  %760 = vperm.xlu0 %5537, %v719_v49  }
  0x59   : > { %769 = vperm.xlu1 %5538, %v722_v50   ;;  %766 = vperm.xlu0 %5537, %v721_v51  }
  0x9c   : > { %v619_v54 = vpop.permute.xlu1 %618  ;;  %v613_v55 = vpop.permute.xlu0 %612 }
  0x9d   : > { %vm659_vm1 = vcmp.eq.s32.totalorder %v613_v55, %v5873_v53  ;;  %vm661_vm2 = vcmp.eq.s32.totalorder %v619_v54, %v5873_v53  ;;  %v5409_v55 = vpack.c.bf16 %v1436_v44, %v1435_v42 }
  0x9e   : > { %v5878_v57 = vsel %vm659_vm1, 1.0, %v5677_v56  ;;  %v5889_v62 = vsel %vm661_vm2, 1.0, %v5677_v56 }
  0x9f   : > { %7313 = vst [vmem:[#allocation5_spill] sm:$0xff] %v5878_v57  ;;  %4909 = vmatprep.mubr.msk.f32.mxu0 %vm827_vm0, %v5878_v57  ;;  %7314 = vst [vmem:[#allocation6_spill] sm:$0xff] %v5889_v62 }
  0xa0   : > { %v622_v60 = vpop.permute.xlu1 %621  ;;  %v616_v61 = vpop.permute.xlu0 %615 }
  0xa1   : > { %vm660_vm3 = vcmp.eq.s32.totalorder %v616_v61, %v5873_v53  ;;  %vm662_vm4 = vcmp.eq.s32.totalorder %v622_v60, %v5873_v53  ;;  %v1437_v60 = vld [vmem:[%s7280_s5 + $0x30] sm:$0xff] }
  0xa2   : > { %v5893_v0 = vsel %vm660_vm3, 1.0, %v5677_v56  ;;  %v5909_v6 = vsel %vm662_vm4, 1.0, %v5677_v56 }
  0xa3   : > { %7315 = vst [vmem:[#allocation7_spill] sm:$0xff] %v5893_v0  ;;  %4910 = vmatmul.mubr.msk.f32.vlgmr.msra.gmra.mrb[0].mxu0 %vm827_vm0, %v5893_v0  ;;  %7316 = vst [vmem:[#allocation8_spill] sm:$0xff] %v5909_v6 }
  0xa4   : > { %v628_v3 = vpop.permute.xlu1 %627  ;;  %v625_v4 = vpop.permute.xlu0 %624  ;;  %4912 = vmatprep.mubr.msk.f32.mxu0 %vm827_vm0, %v5889_v62  ;;  %5388 = vmatpush3.bf16.msra.mxu0 %v5842_v30 }
  0xa5   : > { %vm663_vm5 = vcmp.eq.s32.totalorder %v625_v4, %v5873_v53  ;;  %5390 = vmatprep.subr.bf16.mxu0 %v5389_v63  ;;  %vm664_vm6 = vcmp.eq.s32.totalorder %v628_v3, %v5873_v53 }
  0xa6   : > { %v5912_v7 = vsel %vm663_vm5, 1.0, %v5677_v56  ;;  %v5927_v13 = vsel %vm664_vm6, 1.0, %v5677_v56 }
  0xa7   : > { %7317 = vst [vmem:[#allocation9_spill] sm:$0xff] %v5912_v7  ;;  %4913 = vmatmul.mubr.msk.f32.gmra.mrb[2].mxu0 %vm827_vm0, %v5909_v6  ;;  %7318 = vst [vmem:[#allocation10_spill] sm:$0xff] %v5927_v13 }
  0xa8   : > { %v634_v10 = vpop.permute.xlu1 %633  ;;  %v631_v11 = vpop.permute.xlu0 %630  ;;  %4915 = vmatprep.mubr.msk.f32.mxu0 %vm827_vm0, %v5912_v7  ;;  %5392 = vmatpush3.bf16.msra.mxu0 %v5389_v63 }
  0xa9   : > { %vm665_vm7 = vcmp.eq.s32.totalorder %v631_v11, %v5873_v53  ;;  %5394 = vmatprep.subr.bf16.mxu0 %v5393_v5  ;;  %vm666_vm8 = vcmp.eq.s32.totalorder %v634_v10, %v5873_v53 }
  0xaa   : > { %v5930_v14 = vsel %vm665_vm7, 1.0, %v5677_v56  ;;  %v5947_v20 = vsel %vm666_vm8, 1.0, %v5677_v56 }
  0xab   : > { %7319 = vst [vmem:[#allocation11_spill] sm:$0xff] %v5930_v14  ;;  %4916 = vmatmul.mubr.msk.f32.gmra.mrb[4].mxu0 %vm827_vm0, %v5927_v13  ;;  %7320 = vst [vmem:[#allocation12_spill] sm:$0xff] %v5947_v20 }
  0xac   : > { %v640_v17 = vpop.permute.xlu1 %639  ;;  %v637_v18 = vpop.permute.xlu0 %636  ;;  %4918 = vmatprep.mubr.msk.f32.mxu0 %vm827_vm0, %v5930_v14  ;;  %5396 = vmatpush3.bf16.msra.mxu0 %v5393_v5 }
  0xad   : > { %vm667_vm9 = vcmp.eq.s32.totalorder %v637_v18, %v5873_v53  ;;  %5398 = vmatprep.subr.bf16.mxu0 %v5397_v12  ;;  %vm668_vm10 = vcmp.eq.s32.totalorder %v640_v17, %v5873_v53 }
  0xae   : > { %v5950_v21 = vsel %vm667_vm9, 1.0, %v5677_v56  ;;  %v5960_v24 = vsel %vm668_vm10, 1.0, %v5677_v56 }
  0xaf   : > { %7321 = vst [vmem:[#allocation13_spill] sm:$0xff] %v5950_v21  ;;  %4919 = vmatmul.mubr.msk.f32.gmra.mrb[6].mxu0 %vm827_vm0, %v5947_v20  ;;  %7322 = vst [vmem:[#allocation14_spill] sm:$0xff] %v5960_v24 }
  0xb0   : > { %v646_v22 = vpop.permute.xlu1 %645  ;;  %v643_v23 = vpop.permute.xlu0 %642  ;;  %4921 = vmatprep.mubr.msk.f32.mxu0 %vm827_vm0, %v5950_v21  ;;  %5400 = vmatpush3.bf16.msra.mxu0 %v5397_v12 }
  0xb1   : > { %vm669_vm11 = vcmp.eq.s32.totalorder %v643_v23, %v5873_v53  ;;  %5418 = vmatprep.subr.bf16.mxu0 %v5944_v19  ;;  %vm670_vm12 = vcmp.eq.s32.totalorder %v646_v22, %v5873_v53 }
  0xb2   : > { %v5963_v25 = vsel %vm669_vm11, 1.0, %v5677_v56  ;;  %v5972_v28 = vsel %vm670_vm12, 1.0, %v5677_v56 }
  0xb3   : > { %7323 = vst [vmem:[#allocation15_spill] sm:$0xff] %v5963_v25  ;;  %4922 = vmatmul.mubr.msk.f32.gmra.mrb[8].mxu0 %vm827_vm0, %v5960_v24  ;;  %7324 = vst [vmem:[#allocation16_spill] sm:$0xff] %v5972_v28 }
  0xb4   : > { %v652_v26 = vpop.permute.xlu1 %651  ;;  %v649_v27 = vpop.permute.xlu0 %648  ;;  %4924 = vmatprep.mubr.msk.f32.mxu0 %vm827_vm0, %v5963_v25 }
  0xb5   : > { %vm671_vm13 = vcmp.eq.s32.totalorder %v649_v27, %v5873_v53  ;;  %vm672_vm14 = vcmp.eq.s32.totalorder %v652_v26, %v5873_v53 }
  0xb6   : > { %v5975_v29 = vsel %vm671_vm13, 1.0, %v5677_v56  ;;  %v5984_v32 = vsel %vm672_vm14, 1.0, %v5677_v56 }
  0xb7   : > { %7325 = vst [vmem:[#allocation17_spill] sm:$0xff] %v5975_v29  ;;  %4925 = vmatmul.mubr.msk.f32.gmra.mrb[10].mxu0 %vm827_vm0, %v5972_v28  ;;  %7326 = vst [vmem:[#allocation18_spill] sm:$0xff] %v5984_v32 }
  0xb8   : > { %v658_v30 = vpop.permute.xlu1 %657  ;;  %v655_v31 = vpop.permute.xlu0 %654  ;;  %4927 = vmatprep.mubr.msk.f32.mxu0 %vm827_vm0, %v5975_v29 }
  0xb9   : > { %vm673_vm15 = vcmp.eq.s32.totalorder %v655_v31, %v5873_v53  ;;  %vm674_vm1 = vcmp.eq.s32.totalorder %v658_v30, %v5873_v53 }
  0xba   : > { %v5987_v33 = vsel %vm673_vm15, 1.0, %v5677_v56  ;;  %v6003_v38 = vsel %vm674_vm1, 1.0, %v5677_v56 }
  0xbb   : > { %7327 = vst [vmem:[#allocation19_spill] sm:$0xff] %v5987_v33  ;;  %4928 = vmatmul.mubr.msk.f32.gmra.mrb[12].mxu0 %vm827_vm0, %v5984_v32  ;;  %7328 = vst [vmem:[#allocation20_spill] sm:$0xff] %v6003_v38 }
  0xbc   : > { %v728_v36 = vpop.permute.xlu1 %727  ;;  %v725_v37 = vpop.permute.xlu0 %724  ;;  %4930 = vmatprep.mubr.msk.f32.mxu0 %vm827_vm0, %v5987_v33 }
  0xbd   : > { %vm772_vm2 = vcmp.eq.s32.totalorder %v728_v36, %v5873_v53  ;;  %vm771_vm3 = vcmp.eq.s32.totalorder %v725_v37, %v5873_v53 }
  0xbe   : > { %v4402_v39 = vsel %vm772_vm2, 1.0, %v5677_v56  ;;  %v4401_v40 = vsel %vm771_vm3, 1.0, %v5677_v56  ;;  %vm1597_vm3 = vcmask 261120  }
  0xbf   : > { %4931 = vmatmul.mubr.msk.f32.gmra.mrb[14].mxu0 %vm827_vm0, %v6003_v38  ;;  %4949 = vmatprep.mubr.msk.f32.mxu1 %vm827_vm0, %v4401_v40  ;;  %v1214_v43 = vsub.f32 %v5878_v57, %v4401_v40  ;;  %v1215_v50 = vsub.f32 %v5893_v0, %v4402_v39 }
  0xc0   : > { %v734_v48 = vpop.permute.xlu1 %733  ;;  %v731_v49 = vpop.permute.xlu0 %730  ;;  %4950 = vmatmul.mubr.msk.f32.vlgmr.msra.gmra.mrb[0].mxu1 %vm827_vm0, %v4402_v39 }
  0xc1   : > { %vm774_vm4 = vcmp.eq.s32.totalorder %v734_v48, %v5873_v53  ;;  %vm773_vm5 = vcmp.eq.s32.totalorder %v731_v49, %v5873_v53  ;;  %4989 = vmatprep.mubr.msk.f32.mxu0 %vm827_vm0, %v1214_v43  ;;  %5404 = vmatpush3.bf16.msra.mxu1 %v5865_v47  ;;  %v1438_v47 = vld [vmem:[%s7280_s5 + $0x38] sm:$0xff] }
  0xc2   : > { %v4404_v51 = vsel %vm774_vm4, 1.0, %v5677_v56  ;;  %v4403_v54 = vsel %vm773_vm5, 1.0, %v5677_v56  ;;  %5406 = vmatprep.subr.bf16.mxu1 %v5405_v41  ;;  %v5413_v4 = vpack.c.bf16 %v1438_v47, %v1437_v60 }
  0xc3   : > { %v1216_v59 = vsub.f32 %v5889_v62, %v4403_v54  ;;  %4952 = vmatprep.mubr.msk.f32.mxu1 %vm827_vm0, %v4403_v54  ;;  %4990 = vmatmul.mubr.msk.f32.vlgmr.msra.gmra.mrb[16].mxu0 %vm827_vm0, %v1215_v50  ;;  %v1217_v1 = vsub.f32 %v5909_v6, %v4404_v51  ;;  %v2255_v54 = vld [vmem:[%s7284_s9 + $0x10] sm:$0xff] }
  0xc4   : > { %v740_v61 = vpop.permute.xlu1 %739  ;;  %v737_v63 = vpop.permute.xlu0 %736  ;;  %4953 = vmatmul.mubr.msk.f32.gmra.mrb[2].mxu1 %vm827_vm0, %v4404_v51  ;;  %5420 = vmatpush3.bf16.msra.mxu0 %v5944_v19 }
  0xc5   : > { %vm776_vm6 = vcmp.eq.s32.totalorder %v740_v61, %v5873_v53  ;;  %vm775_vm7 = vcmp.eq.s32.totalorder %v737_v63, %v5873_v53  ;;  %4992 = vmatprep.mubr.msk.f32.mxu0 %vm827_vm0, %v1216_v59  ;;  %5408 = vmatpush3.bf16.msra.mxu1 %v5405_v41 }
  0xc6   : > { %v4406_v2 = vsel %vm776_vm6, 1.0, %v5677_v56  ;;  %v4405_v3 = vsel %vm775_vm7, 1.0, %v5677_v56  ;;  %5410 = vmatprep.subr.bf16.mxu1 %v5409_v55  ;;  %5422 = vmatprep.subr.bf16.mxu0 %v6031_v58 }
  0xc7   : > { %v1218_v5 = vsub.f32 %v5912_v7, %v4405_v3  ;;  %4955 = vmatprep.mubr.msk.f32.mxu1 %vm827_vm0, %v4405_v3  ;;  %4993 = vmatmul.mubr.msk.f32.gmra.mrb[18].mxu0 %vm827_vm0, %v1217_v1  ;;  %v1219_v10 = vsub.f32 %v5927_v13, %v4406_v2 }
  0xc8   : > { %v746_v8 = vpop.permute.xlu1 %745  ;;  %v743_v9 = vpop.permute.xlu0 %742  ;;  %4956 = vmatmul.mubr.msk.f32.gmra.mrb[4].mxu1 %vm827_vm0, %v4406_v2  ;;  %5424 = vmatpush3.bf16.msra.mxu0 %v6031_v58 }
  0xc9   : > { %vm778_vm8 = vcmp.eq.s32.totalorder %v746_v8, %v5873_v53  ;;  %vm777_vm9 = vcmp.eq.s32.totalorder %v743_v9, %v5873_v53  ;;  %4995 = vmatprep.mubr.msk.f32.mxu0 %vm827_vm0, %v1218_v5  ;;  %5412 = vmatpush3.bf16.msra.mxu1 %v5409_v55  ;;  %v2256_v55 = vld [vmem:[%s7284_s9 + $0x18] sm:$0xff] }
  0xca   : > { %v4408_v11 = vsel %vm778_vm8, 1.0, %v5677_v56  ;;  %v4407_v12 = vsel %vm777_vm9, 1.0, %v5677_v56  ;;  %5414 = vmatprep.subr.bf16.mxu1 %v5413_v4  ;;  %v5437_v60 = vpack.c.bf16 %v2256_v55, %v2255_v54 }
  0xcb   : > { %v1220_v15 = vsub.f32 %v5930_v14, %v4407_v12  ;;  %4958 = vmatprep.mubr.msk.f32.mxu1 %vm827_vm0, %v4407_v12  ;;  %4996 = vmatmul.mubr.msk.f32.gmra.mrb[20].mxu0 %vm827_vm0, %v1219_v10  ;;  %v1221_v18 = vsub.f32 %v5947_v20, %v4408_v11 }
  0xcc   : > { %v752_v16 = vpop.permute.xlu1 %751  ;;  %v749_v17 = vpop.permute.xlu0 %748  ;;  %4959 = vmatmul.mubr.msk.f32.gmra.mrb[6].mxu1 %vm827_vm0, %v4408_v11 }
  0xcd   : > { %vm780_vm10 = vcmp.eq.s32.totalorder %v752_v16, %v5873_v53  ;;  %vm779_vm11 = vcmp.eq.s32.totalorder %v749_v17, %v5873_v53  ;;  %4998 = vmatprep.mubr.msk.f32.mxu0 %vm827_vm0, %v1220_v15  ;;  %5416 = vmatpush3.bf16.msra.mxu1 %v5413_v4 }
  0xce   : > { %v4410_v22 = vsel %vm780_vm10, 1.0, %v5677_v56  ;;  %v4409_v23 = vsel %vm779_vm11, 1.0, %v5677_v56  ;;  %5513 = vmatprep.subr.bf16.mxu1 %v5944_v19 }
  0xcf   : > { %v1222_v26 = vsub.f32 %v5950_v21, %v4409_v23  ;;  %4961 = vmatprep.mubr.msk.f32.mxu1 %vm827_vm0, %v4409_v23  ;;  %4999 = vmatmul.mubr.msk.f32.gmra.mrb[22].mxu0 %vm827_vm0, %v1221_v18  ;;  %v1223_v31 = vsub.f32 %v5960_v24, %v4410_v22 }
  0xd0   : > { %v758_v27 = vpop.permute.xlu1 %757  ;;  %v755_v30 = vpop.permute.xlu0 %754  ;;  %4962 = vmatmul.mubr.msk.f32.gmra.mrb[8].mxu1 %vm827_vm0, %v4410_v22 }
  0xd1   : > { %vm782_vm12 = vcmp.eq.s32.totalorder %v758_v27, %v5873_v53  ;;  %vm781_vm13 = vcmp.eq.s32.totalorder %v755_v30, %v5873_v53  ;;  %5001 = vmatprep.mubr.msk.f32.mxu0 %vm827_vm0, %v1222_v26 }
  0xd2   : > { %v4412_v34 = vsel %vm782_vm12, 1.0, %v5677_v56  ;;  %v4411_v35 = vsel %vm781_vm13, 1.0, %v5677_v56 }
  0xd3   : > { %v1224_v36 = vsub.f32 %v5963_v25, %v4411_v35  ;;  %4964 = vmatprep.mubr.msk.f32.mxu1 %vm827_vm0, %v4411_v35  ;;  %5002 = vmatmul.mubr.msk.f32.gmra.mrb[24].mxu0 %vm827_vm0, %v1223_v31  ;;  %v1225_v40 = vsub.f32 %v5972_v28, %v4412_v34 }
  0xd4   : > { %v764_v37 = vpop.permute.xlu1 %763  ;;  %v761_v39 = vpop.permute.xlu0 %760  ;;  %4965 = vmatmul.mubr.msk.f32.gmra.mrb[10].mxu1 %vm827_vm0, %v4412_v34 }
  0xd5   : > { %vm784_vm14 = vcmp.eq.s32.totalorder %v764_v37, %v5873_v53  ;;  %vm783_vm15 = vcmp.eq.s32.totalorder %v761_v39, %v5873_v53  ;;  %5004 = vmatprep.mubr.msk.f32.mxu0 %vm827_vm0, %v1224_v36 }
  0xd6   : > { %v4414_v41 = vsel %vm784_vm14, 1.0, %v5677_v56  ;;  %v4413_v42 = vsel %vm783_vm15, 1.0, %v5677_v56 }
  0xd7   : > { %v1226_v43 = vsub.f32 %v5975_v29, %v4413_v42  ;;  %4967 = vmatprep.mubr.msk.f32.mxu1 %vm827_vm0, %v4413_v42  ;;  %5005 = vmatmul.mubr.msk.f32.gmra.mrb[26].mxu0 %vm827_vm0, %v1225_v40  ;;  %v1227_v46 = vsub.f32 %v5984_v32, %v4414_v41 }
  0xd8   : > { %v770_v44 = vpop.permute.xlu1 %769  ;;  %v767_v45 = vpop.permute.xlu0 %766  ;;  %4968 = vmatmul.mubr.msk.f32.gmra.mrb[12].mxu1 %vm827_vm0, %v4414_v41 }
  0xd9   : > { %vm786_vm1 = vcmp.eq.s32.totalorder %v770_v44, %v5873_v53  ;;  %vm785_vm2 = vcmp.eq.s32.totalorder %v767_v45, %v5873_v53  ;;  %5007 = vmatprep.mubr.msk.f32.mxu0 %vm827_vm0, %v1226_v43  ;;  %v2253_v53 = vld [vmem:[%s7284_s9] sm:$0xff] }
  0xda   : > { %v4416_v48 = vsel %vm786_vm1, 1.0, %v5677_v56  ;;  %v4415_v49 = vsel %vm785_vm2, 1.0, %v5677_v56  ;;  %v2254_v56 = vld [vmem:[%s7284_s9 + $0x8] sm:$0xff] }
  0xdb   : > { %v1228_v50 = vsub.f32 %v5987_v33, %v4415_v49  ;;  %4970 = vmatprep.mubr.msk.f32.mxu1 %vm827_vm0, %v4415_v49  ;;  %5008 = vmatmul.mubr.msk.f32.gmra.mrb[28].mxu0 %vm827_vm0, %v1227_v46  ;;  %v1229_v51 = vsub.f32 %v6003_v38, %v4416_v48 }
  0xdc   : > { %4971 = vmatmul.mubr.msk.f32.gmra.mrb[14].mxu1 %vm827_vm0, %v4416_v48 }
  0xdd   : > { %5010 = vmatprep.mubr.msk.f32.mxu0 %vm827_vm0, %v1228_v50  ;;  %5029 = vmatprep.mubr.msk.f32.mxu1 %vm827_vm0, %v5878_v57 }
  0xdf   : > { %5011 = vmatmul.mubr.msk.f32.gmra.mrb[30].mxu0 %vm827_vm0, %v1229_v51 }
  0xe0   : > { %5030 = vmatmul.mubr.msk.f32.vlgmr.msra.gmra.mrb[16].mxu1 %vm827_vm0, %v5893_v0 }
  0xe1   : > { %5032 = vmatprep.mubr.msk.f32.mxu1 %vm827_vm0, %v5889_v62  ;;  %5515 = vmatpush3.bf16.msra.mxu1 %v5944_v19  ;;  %v5433_v19 = vpack.c.bf16 %v2254_v56, %v2253_v53 }
  0xe2   : > { %5514 = vmatprep.subr.bf16.mxu1 %v6031_v58 }
  0xe3   : > { %5434 = vmatprep.subr.bf16.mxu0 %v5433_v19 }
  0xe4   : > { %5033 = vmatmul.mubr.msk.f32.gmra.mrb[18].mxu1 %vm827_vm0, %v5909_v6 }
  0xe5   : > { %5035 = vmatprep.mubr.msk.f32.mxu1 %vm827_vm0, %v5912_v7  ;;  %5516 = vmatpush3.bf16.msra.mxu1 %v6031_v58 }
  0xe8   : > { %5036 = vmatmul.mubr.msk.f32.gmra.mrb[20].mxu1 %vm827_vm0, %v5927_v13 }
  0xe9   : > { %5038 = vmatprep.mubr.msk.f32.mxu1 %vm827_vm0, %v5930_v14 }
  0xec   : > { %5039 = vmatmul.mubr.msk.f32.gmra.mrb[22].mxu1 %vm827_vm0, %v5947_v20 }
  0xed   : > { %5041 = vmatprep.mubr.msk.f32.mxu1 %vm827_vm0, %v5950_v21 }
  0xf0   : > { %5042 = vmatmul.mubr.msk.f32.gmra.mrb[24].mxu1 %vm827_vm0, %v5960_v24 }
  0xf1   : > { %5044 = vmatprep.mubr.msk.f32.mxu1 %vm827_vm0, %v5963_v25 }
  0xf4   : > { %5045 = vmatmul.mubr.msk.f32.gmra.mrb[26].mxu1 %vm827_vm0, %v5972_v28 }
  0xf5   : > { %5047 = vmatprep.mubr.msk.f32.mxu1 %vm827_vm0, %v5975_v29 }
  0xf8   : > { %5048 = vmatmul.mubr.msk.f32.gmra.mrb[28].mxu1 %vm827_vm0, %v5984_v32 }
  0xf9   : > { %5050 = vmatprep.mubr.msk.f32.mxu1 %vm827_vm0, %v5987_v33 }
  0xfc   : > { %5051 = vmatmul.mubr.msk.f32.gmra.mrb[30].mxu1 %vm827_vm0, %v6003_v38 }
 0x176   : > { %v4911_v58 = vpop.f32.mrb[0].mxu0 }
 0x177   : > { %v942_v59 = vpop.f32.mrb[1].mxu0 }
 0x178   : > { %5061 = vmatprep.mubr.msk.f32.mxu0 %vm1597_vm3, %v942_v59 }
 0x179   : > { %5062 = vmatmul.mubr.msk.f32.vlgmr.msra.gmra.mrb[32].mxu0 %vm1597_vm3, %v4911_v58 }
 0x17a   : > { %v4914_v47 = vpop.f32.mrb[2].mxu0  ;;  %5436 = vmatpush3.bf16.msra.mxu0 %v5433_v19 }
 0x17b   : > { %v952_v61 = vpop.f32.mrb[3].mxu0  ;;  %5438 = vmatprep.subr.bf16.mxu0 %v5437_v60 }
 0x17c   : > { %5064 = vmatprep.mubr.msk.f32.mxu0 %vm1597_vm3, %v952_v61 }
 0x17d   : > { %5065 = vmatmul.mubr.msk.f32.gmra.mrb[34].mxu0 %vm1597_vm3, %v4914_v47 }
 0x17e   : > { %v4917_v63 = vpop.f32.mrb[4].mxu0  ;;  %5440 = vmatpush3.bf16.msra.mxu0 %v5437_v60 }
 0x17f   : > { %v962_v1 = vpop.f32.mrb[5].mxu0 }
 0x180   : > { %5067 = vmatprep.mubr.msk.f32.mxu0 %vm1597_vm3, %v962_v1 }
 0x181   : > { %5068 = vmatmul.mubr.msk.f32.gmra.mrb[36].mxu0 %vm1597_vm3, %v4917_v63 }
 0x182   : > { %v4920_v2 = vpop.f32.mrb[6].mxu0 }
 0x183   : > { %v972_v3 = vpop.f32.mrb[7].mxu0 }
 0x184   : > { %5070 = vmatprep.mubr.msk.f32.mxu0 %vm1597_vm3, %v972_v3 }
 0x185   : > { %5071 = vmatmul.mubr.msk.f32.gmra.mrb[38].mxu0 %vm1597_vm3, %v4920_v2 }
 0x186   : > { %v4923_v4 = vpop.f32.mrb[8].mxu0 }
 0x187   : > { %v982_v5 = vpop.f32.mrb[9].mxu0 }
 0x188   : > { %5073 = vmatprep.mubr.msk.f32.mxu0 %vm1597_vm3, %v982_v5 }
 0x189   : > { %5074 = vmatmul.mubr.msk.f32.gmra.mrb[40].mxu0 %vm1597_vm3, %v4923_v4 }
 0x18a   : > { %v4926_v8 = vpop.f32.mrb[10].mxu0 }
 0x18b   : > { %v992_v9 = vpop.f32.mrb[11].mxu0 }
 0x18c   : > { %5076 = vmatprep.mubr.msk.f32.mxu0 %vm1597_vm3, %v992_v9 }
 0x18d   : > { %5077 = vmatmul.mubr.msk.f32.gmra.mrb[42].mxu0 %vm1597_vm3, %v4926_v8 }
 0x18e   : > { %v4929_v10 = vpop.f32.mrb[12].mxu0 }
 0x18f   : > { %v1002_v11 = vpop.f32.mrb[13].mxu0 }
 0x190   : > { %5079 = vmatprep.mubr.msk.f32.mxu1 %vm1597_vm3, %v1002_v11 }
 0x191   : > { %5080 = vmatmul.mubr.msk.f32.vlgmr.msra.gmra.mrb[32].mxu1 %vm1597_vm3, %v4929_v10 }
 0x192   : > { %v4932_v12 = vpop.f32.mrb[14].mxu0 }
 0x193   : > { %v1012_v15 = vpop.f32.mrb[15].mxu0  ;;  %v4951_v16 = vpop.f32.mrb[0].mxu1 }
 0x194   : > { %v1135_v17 = vpop.f32.mrb[1].mxu1  ;;  %5082 = vmatprep.mubr.msk.f32.mxu1 %vm1597_vm3, %v1012_v15 }
 0x195   : > { %5083 = vmatmul.mubr.msk.f32.gmra.mrb[34].mxu1 %vm1597_vm3, %v4932_v12  ;;  %5125 = vmatprep.mubr.msk.f32.mxu0 %vm1597_vm3, %v1135_v17  ;;  %v6254_v17 = vshrl.u32 %v593_v52, 7 }
 0x196   : > { %v6174_v18 = vpop.f32.mrb[16].mxu0  ;;  %5126 = vmatmul.mubr.msk.f32.vlgmr.msra.gmra.mrb[44].mxu0 %vm1597_vm3, %v4951_v16 }
 0x197   : > { %7329 = vst [vmem:[#allocation21_spill] sm:$0xff] %v6174_v18  ;;  %v4954_v22 = vpop.f32.mrb[2].mxu1  ;;  %v6177_v23 = vpop.f32.mrb[17].mxu0 }
 0x198   : > { %7330 = vst [vmem:[#allocation22_spill] sm:$0xff] %v6177_v23  ;;  %v1145_v26 = vpop.f32.mrb[3].mxu1 }
 0x199   : > { %5128 = vmatprep.mubr.msk.f32.mxu0 %vm1597_vm3, %v1145_v26  ;;  %v6262_v26 = vld [vmem:[%s7282_s7] sm:$0xf] }
 0x19a   : > { %v6180_v27 = vpop.f32.mrb[18].mxu0  ;;  %5129 = vmatmul.mubr.msk.f32.gmra.mrb[46].mxu0 %vm1597_vm3, %v4954_v22  ;;  %v6257_v22 = vsub.s32 0, %v6254_v17 }
 0x19b   : > { %7331 = vst [vmem:[#allocation23_spill] sm:$0xff] %v6180_v27  ;;  %v4957_v30 = vpop.f32.mrb[4].mxu1  ;;  %v6183_v31 = vpop.f32.mrb[19].mxu0 }
 0x19c   : > { %7332 = vst [vmem:[#allocation24_spill] sm:$0xff] %v6183_v31  ;;  %v1155_v34 = vpop.f32.mrb[5].mxu1 }
 0x19d   : > { %5131 = vmatprep.mubr.msk.f32.mxu0 %vm1597_vm3, %v1155_v34 }
 0x19e   : > { %v6186_v35 = vpop.f32.mrb[20].mxu0  ;;  %5132 = vmatmul.mubr.msk.f32.gmra.mrb[48].mxu0 %vm1597_vm3, %v4957_v30  ;;  %v1596_v30 = vrot.slane %v6262_v26, %v6257_v22 }
 0x19f   : > { %7333 = vst [vmem:[#allocation25_spill] sm:$0xff] %v6186_v35  ;;  %v4960_v36 = vpop.f32.mrb[6].mxu1  ;;  %v6189_v37 = vpop.f32.mrb[21].mxu0 }
 0x1a0   : > { %7334 = vst [vmem:[#allocation26_spill] sm:$0xff] %v6189_v37  ;;  %v1165_v39 = vpop.f32.mrb[7].mxu1 }
 0x1a1   : > { %5134 = vmatprep.mubr.msk.f32.mxu0 %vm1597_vm3, %v1165_v39 }
 0x1a2   : > { %v6192_v40 = vpop.f32.mrb[22].mxu0  ;;  %5135 = vmatmul.mubr.msk.f32.gmra.mrb[50].mxu0 %vm1597_vm3, %v4960_v36 }
 0x1a3   : > { %7335 = vst [vmem:[#allocation27_spill] sm:$0xff] %v6192_v40  ;;  %v4963_v41 = vpop.f32.mrb[8].mxu1  ;;  %v6195_v42 = vpop.f32.mrb[23].mxu0  ;;  %v6315_v40 = vld [vmem:[%s7285_s10] sm:$0xf] }
 0x1a4   : > { %7336 = vst [vmem:[#allocation28_spill] sm:$0xff] %v6195_v42  ;;  %v1175_v43 = vpop.f32.mrb[9].mxu1 }
 0x1a5   : > { %5137 = vmatprep.mubr.msk.f32.mxu0 %vm1597_vm3, %v1175_v43 }
 0x1a6   : > { %v6198_v44 = vpop.f32.mrb[24].mxu0  ;;  %5138 = vmatmul.mubr.msk.f32.gmra.mrb[52].mxu0 %vm1597_vm3, %v4963_v41 }
 0x1a7   : > { %7337 = vst [vmem:[#allocation29_spill] sm:$0xff] %v6198_v44  ;;  %v4966_v45 = vpop.f32.mrb[10].mxu1  ;;  %v6201_v46 = vpop.f32.mrb[25].mxu0 }
 0x1a8   : > { %7338 = vst [vmem:[#allocation30_spill] sm:$0xff] %v6201_v46  ;;  %v1185_v48 = vpop.f32.mrb[11].mxu1 }
 0x1a9   : > { %5140 = vmatprep.mubr.msk.f32.mxu0 %vm1597_vm3, %v1185_v48 }
 0x1aa   : > { %v6204_v49 = vpop.f32.mrb[26].mxu0  ;;  %5141 = vmatmul.mubr.msk.f32.gmra.mrb[54].mxu0 %vm1597_vm3, %v4966_v45 }
 0x1ab   : > { %7339 = vst [vmem:[#allocation31_spill] sm:$0xff] %v6204_v49  ;;  %v4969_v50 = vpop.f32.mrb[12].mxu1  ;;  %v6207_v51 = vpop.f32.mrb[27].mxu0 }
 0x1ac   : > { %7340 = vst [vmem:[#allocation32_spill] sm:$0xff] %v6207_v51  ;;  %v1195_v53 = vpop.f32.mrb[13].mxu1 }
 0x1ad   : > { %5143 = vmatprep.mubr.msk.f32.mxu0 %vm1597_vm3, %v1195_v53 }
 0x1ae   : > { %v6210_v56 = vpop.f32.mrb[28].mxu0  ;;  %5144 = vmatmul.mubr.msk.f32.gmra.mrb[56].mxu0 %vm1597_vm3, %v4969_v50 }
 0x1af   : > { %7341 = vst [vmem:[#allocation33_spill] sm:$0xff] %v6210_v56  ;;  %v4972_v19 = vpop.f32.mrb[14].mxu1  ;;  %v6213_v54 = vpop.f32.mrb[29].mxu0 }
 0x1b0   : > { %7342 = vst [vmem:[#allocation34_spill] sm:$0xff] %v6213_v54  ;;  %v1205_v55 = vpop.f32.mrb[15].mxu1 }
 0x1b1   : > { %5146 = vmatprep.mubr.msk.f32.mxu0 %vm1597_vm3, %v1205_v55 }
 0x1b2   : > { %v6216_v58 = vpop.f32.mrb[30].mxu0  ;;  %5147 = vmatmul.mubr.msk.f32.gmra.mrb[58].mxu0 %vm1597_vm3, %v4972_v19 }
 0x1b3   : > { %7343 = vst [vmem:[#allocation35_spill] sm:$0xff] %v6216_v58  ;;  %v6219_v59 = vpop.f32.mrb[31].mxu0  ;;  %v6221_v60 = vpop.f32.mrb[16].mxu1 }
 0x1b4   : > { %7344 = vst [vmem:[#allocation36_spill] sm:$0xff] %v6219_v59  ;;  %v6223_v47 = vpop.f32.mrb[17].mxu1 }
 0x1b7   : > { %v6225_v61 = vpop.f32.mrb[18].mxu1 }
 0x1b8   : > { %v6227_v63 = vpop.f32.mrb[19].mxu1 }
 0x1bb   : > { %v6229_v1 = vpop.f32.mrb[20].mxu1 }
 0x1bc   : > { %v6231_v2 = vpop.f32.mrb[21].mxu1 }
 0x1bd   : > { %7345 = vst [vmem:[#allocation37_spill] sm:$0xff] %v6231_v2 }
 0x1bf   : > { %v6233_v3 = vpop.f32.mrb[22].mxu1 }
 0x1c0   : > { %7346 = vst [vmem:[#allocation38_spill] sm:$0xff] %v6233_v3  ;;  %v6235_v4 = vpop.f32.mrb[23].mxu1 }
 0x1c1   : > { %7347 = vst [vmem:[#allocation39_spill] sm:$0xff] %v6235_v4 }
 0x1c3   : > { %v6237_v5 = vpop.f32.mrb[24].mxu1 }
 0x1c4   : > { %7348 = vst [vmem:[#allocation40_spill] sm:$0xff] %v6237_v5  ;;  %v6239_v8 = vpop.f32.mrb[25].mxu1 }
 0x1c5   : > { %7349 = vst [vmem:[#allocation41_spill] sm:$0xff] %v6239_v8 }
 0x1c7   : > { %v6241_v9 = vpop.f32.mrb[26].mxu1 }
 0x1c8   : > { %7350 = vst [vmem:[#allocation42_spill] sm:$0xff] %v6241_v9  ;;  %v6243_v10 = vpop.f32.mrb[27].mxu1 }
 0x1c9   : > { %7351 = vst [vmem:[#allocation43_spill] sm:$0xff] %v6243_v10 }
 0x1cb   : > { %v6245_v11 = vpop.f32.mrb[28].mxu1 }
 0x1cc   : > { %7352 = vst [vmem:[#allocation44_spill] sm:$0xff] %v6245_v11  ;;  %v6247_v12 = vpop.f32.mrb[29].mxu1 }
 0x1cd   : > { %7353 = vst [vmem:[#allocation45_spill] sm:$0xff] %v6247_v12 }
 0x1cf   : > { %v6249_v15 = vpop.f32.mrb[30].mxu1 }
 0x1d0   : > { %7354 = vst [vmem:[#allocation46_spill] sm:$0xff] %v6249_v15  ;;  %v6251_v16 = vpop.f32.mrb[31].mxu1 }
 0x1d1   : > { %7355 = vst [vmem:[#allocation47_spill] sm:$0xff] %v6251_v16 }
 0x24c   : > { %v5063_v34 = vpop.f32.mrb[32].mxu0 }
 0x24d   : > { %v6266_v36 = vadd.f32 %v5063_v34, %v1596_v30  ;;  %v1712_v39 = vpop.f32.mrb[33].mxu0 }
 0x24e   : > { %v6268_v41 = vadd.f32 %v1712_v39, %v1596_v30 }
 0x24f   : > { %v1794_v52 = vsel %vm1597_vm3, %v6266_v36, 0.0 }
 0x250   : > { %1795 = vadd.xlane.f32.xlu1 %v1794_v52  ;;  %v5066_v43 = vpop.f32.mrb[34].mxu0  ;;  %v1791_v45 = vsel %vm1597_vm3, %v6268_v41, 0.0 }
 0x251   : > { %v1722_v48 = vpop.f32.mrb[35].mxu0  ;;  %1792 = vadd.xlane.f32.xlu0 %v1791_v45  ;;  %v6276_v53 = vadd.f32 %v5066_v43, %v1596_v30 }
 0x252   : > { %v6274_v50 = vadd.f32 %v1722_v48, %v1596_v30 }
 0x253   : > { %v1800_v45 = vsel %vm1597_vm3, %v6276_v53, 0.0 }
 0x254   : > { %v5069_v19 = vpop.f32.mrb[36].mxu0  ;;  %v1797_v55 = vsel %vm1597_vm3, %v6274_v50, 0.0 }
 0x255   : > { %v1732_v34 = vpop.f32.mrb[37].mxu0  ;;  %1798 = vadd.xlane.f32.xlu0 %v1797_v55  ;;  %v6282_v58 = vadd.f32 %v5069_v19, %v1596_v30 }
 0x256   : > { %v6280_v39 = vadd.f32 %v1732_v34, %v1596_v30 }
 0x257   : > { %v1806_v19 = vsel %vm1597_vm3, %v6282_v58, 0.0 }
 0x258   : > { %v5072_v52 = vpop.f32.mrb[38].mxu0  ;;  %v1803_v59 = vsel %vm1597_vm3, %v6280_v39, 0.0 }
 0x259   : > { %v1742_v48 = vpop.f32.mrb[39].mxu0  ;;  %1804 = vadd.xlane.f32.xlu1 %v1803_v59  ;;  %1801 = vadd.xlane.f32.xlu0 %v1800_v45  ;;  %v6290_v56 = vadd.f32 %v5072_v52, %v1596_v30 }
 0x25a   : > { %v6288_v43 = vadd.f32 %v1742_v48, %v1596_v30 }
 0x25b   : > { %v1812_v52 = vsel %vm1597_vm3, %v6290_v56, 0.0 }
 0x25c   : > { %v5075_v54 = vpop.f32.mrb[40].mxu0  ;;  %v1809_v55 = vsel %vm1597_vm3, %v6288_v43, 0.0 }
 0x25d   : > { %v1752_v34 = vpop.f32.mrb[41].mxu0  ;;  %1810 = vadd.xlane.f32.xlu1 %v1809_v55  ;;  %1807 = vadd.xlane.f32.xlu0 %v1806_v19  ;;  %v6298_v51 = vadd.f32 %v5075_v54, %v1596_v30 }
 0x25e   : > { %v6296_v49 = vadd.f32 %v1752_v34, %v1596_v30 }
 0x25f   : > { %v1818_v54 = vsel %vm1597_vm3, %v6298_v51, 0.0 }
 0x260   : > { %v5078_v59 = vpop.f32.mrb[42].mxu0  ;;  %v1815_v45 = vsel %vm1597_vm3, %v6296_v49, 0.0 }
 0x261   : > { %v1762_v48 = vpop.f32.mrb[43].mxu0  ;;  %1816 = vadd.xlane.f32.xlu1 %v1815_v45  ;;  %1813 = vadd.xlane.f32.xlu0 %v1812_v52  ;;  %v6306_v46 = vadd.f32 %v5078_v59, %v1596_v30 }
 0x262   : > { %v6304_v44 = vadd.f32 %v1762_v48, %v1596_v30  ;;  %v6323_v48 = vrot.slane %v6315_v40, %v6257_v22 }
 0x264   : > { %v5081_v55 = vpop.f32.mrb[32].mxu1  ;;  %v1821_v19 = vsel %vm1597_vm3, %v6304_v44, 0.0 }
 0x265   : > { %v1772_v34 = vpop.f32.mrb[33].mxu1  ;;  %1822 = vadd.xlane.f32.xlu1 %v1821_v19  ;;  %1819 = vadd.xlane.f32.xlu0 %v1818_v54  ;;  %v6319_v52 = vadd.f32 %v5081_v55, %v1596_v30  ;;  %v1824_v19 = vsel %vm1597_vm3, %v6306_v46, 0.0 }
 0x266   : > { %v6317_v45 = vadd.f32 %v1772_v34, %v1596_v30 }
 0x267   : > { %v1830_v23 = vsel %vm1597_vm3, %v6319_v52, 0.0 }
 0x268   : > { %v5084_v59 = vpop.f32.mrb[34].mxu1  ;;  %v1827_v42 = vsel %vm1597_vm3, %v6317_v45, 0.0 }
 0x269   : > { %v1782_v54 = vpop.f32.mrb[35].mxu1  ;;  %v5127_v35 = vpop.f32.mrb[44].mxu0  ;;  %1828 = vadd.xlane.f32.xlu1 %v1827_v42  ;;  %1825 = vadd.xlane.f32.xlu0 %v1824_v19  ;;  %v6331_v55 = vadd.f32 %v5084_v59, %v1596_v30 }
 0x26a   : > { %v6329_v37 = vadd.f32 %v1782_v54, %v1596_v30  ;;  %v2380_v34 = vpop.f32.mrb[45].mxu0  ;;  %v6341_v42 = vadd.f32 %v5127_v35, %v6323_v48 }
 0x26b   : > { %v6334_v31 = vadd.f32 %v2380_v34, %v6323_v48  ;;  %v1836_v59 = vsel %vm1597_vm3, %v6331_v55, 0.0 }
 0x26c   : > { %v1833_v27 = vsel %vm1597_vm3, %v6329_v37, 0.0  ;;  %v2462_v35 = vsel %vm1597_vm3, %v6341_v42, 0.0 }
 0x26d   : > { %v5130_v18 = vpop.f32.mrb[46].mxu0  ;;  %1834 = vadd.xlane.f32.xlu1 %v1833_v27  ;;  %1831 = vadd.xlane.f32.xlu0 %v1830_v23  ;;  %v2459_v30 = vsel %vm1597_vm3, %v6334_v31, 0.0 }
 0x26e   : > { %v2390_v38 = vpop.f32.mrb[47].mxu0  ;;  %v6351_v27 = vadd.f32 %v5130_v18, %v6323_v48 }
 0x26f   : > { %v6344_v19 = vadd.f32 %v2390_v38, %v6323_v48 }
 0x271   : > { %v5133_v54 = vpop.f32.mrb[48].mxu0  ;;  %2460 = vadd.xlane.f32.xlu1 %v2459_v30  ;;  %1837 = vadd.xlane.f32.xlu0 %v1836_v59  ;;  %v2465_v38 = vsel %vm1597_vm3, %v6344_v19, 0.0 }
 0x272   : > { %v2400_v34 = vpop.f32.mrb[49].mxu0  ;;  %v6361_v30 = vadd.f32 %v5133_v54, %v6323_v48 }
 0x273   : > { %v6354_v23 = vadd.f32 %v2400_v34, %v6323_v48  ;;  %v2468_v34 = vsel %vm1597_vm3, %v6351_v27, 0.0 }
 0x274   : > { %v2474_v54 = vsel %vm1597_vm3, %v6361_v30, 0.0 }
 0x275   : > { %v5136_v33 = vpop.f32.mrb[50].mxu0  ;;  %2466 = vadd.xlane.f32.xlu1 %v2465_v38  ;;  %2463 = vadd.xlane.f32.xlu0 %v2462_v35  ;;  %v2471_v18 = vsel %vm1597_vm3, %v6354_v23, 0.0 }
 0x276   : > { %v2410_v32 = vpop.f32.mrb[51].mxu0  ;;  %v6371_v38 = vadd.f32 %v5136_v33, %v6323_v48 }
 0x277   : > { %v6364_v59 = vadd.f32 %v2410_v32, %v6323_v48 }
 0x278   : > { %v2480_v33 = vsel %vm1597_vm3, %v6371_v38, 0.0 }
 0x279   : > { %v5139_v29 = vpop.f32.mrb[52].mxu0  ;;  %2472 = vadd.xlane.f32.xlu1 %v2471_v18  ;;  %2469 = vadd.xlane.f32.xlu0 %v2468_v34  ;;  %v2477_v32 = vsel %vm1597_vm3, %v6364_v59, 0.0 }
 0x27a   : > { %v2420_v28 = vpop.f32.mrb[53].mxu0  ;;  %v6381_v18 = vadd.f32 %v5139_v29, %v6323_v48 }
 0x27b   : > { %v6374_v35 = vadd.f32 %v2420_v28, %v6323_v48 }
 0x27c   : > { %v2486_v29 = vsel %vm1597_vm3, %v6381_v18, 0.0 }
 0x27d   : > { %v5142_v25 = vpop.f32.mrb[54].mxu0  ;;  %2478 = vadd.xlane.f32.xlu1 %v2477_v32  ;;  %2475 = vadd.xlane.f32.xlu0 %v2474_v54  ;;  %v2483_v28 = vsel %vm1597_vm3, %v6374_v35, 0.0 }
 0x27e   : > { %v2430_v24 = vpop.f32.mrb[55].mxu0  ;;  %v6391_v32 = vadd.f32 %v5142_v25, %v6323_v48 }
 0x27f   : > { %v6384_v34 = vadd.f32 %v2430_v24, %v6323_v48 }
 0x280   : > { %v2492_v25 = vsel %vm1597_vm3, %v6391_v32, 0.0 }
 0x281   : > { %v5145_v21 = vpop.f32.mrb[56].mxu0  ;;  %2484 = vadd.xlane.f32.xlu1 %v2483_v28  ;;  %2481 = vadd.xlane.f32.xlu0 %v2480_v33  ;;  %v2489_v24 = vsel %vm1597_vm3, %v6384_v34, 0.0 }
 0x282   : > { %v2440_v20 = vpop.f32.mrb[57].mxu0  ;;  %v6401_v28 = vadd.f32 %v5145_v21, %v6323_v48 }
 0x283   : > { %v6394_v54 = vadd.f32 %v2440_v20, %v6323_v48 }
 0x284   : > { %v2498_v21 = vsel %vm1597_vm3, %v6401_v28, 0.0 }
 0x285   : > { %v5148_v14 = vpop.f32.mrb[58].mxu0  ;;  %2490 = vadd.xlane.f32.xlu1 %v2489_v24  ;;  %2487 = vadd.xlane.f32.xlu0 %v2486_v29  ;;  %v2495_v20 = vsel %vm1597_vm3, %v6394_v54, 0.0 }
 0x286   : > { %v2450_v13 = vpop.f32.mrb[59].mxu0  ;;  %v6411_v7 = vadd.f32 %v5148_v14, %v6323_v48 }
 0x287   : > { %v6404_v33 = vadd.f32 %v2450_v13, %v6323_v48 }
 0x288   : > { %v2504_v13 = vsel %vm1597_vm3, %v6411_v7, 0.0 }
 0x289   : > { %2496 = vadd.xlane.f32.xlu1 %v2495_v20  ;;  %2493 = vadd.xlane.f32.xlu0 %v2492_v25  ;;  %v2501_v24 = vsel %vm1597_vm3, %v6404_v33, 0.0 }
 0x28d   : > { %2502 = vadd.xlane.f32.xlu1 %v2501_v24  ;;  %2499 = vadd.xlane.f32.xlu0 %v2498_v21 }
 0x291   : > { %2505 = vadd.xlane.f32.xlu0 %v2504_v13 }
 0x2dd   : > { %v1796_v29 = vpop.xlane.xlu1 %1795 }
 0x2de   : > { %v1841_v6 = vmul.f32 0.03125, %v1796_v29  ;;  %v1793_v62 = vpop.xlane.xlu0 %1792 }
 0x2df   : > { %v1840_v20 = vmul.f32 0.03125, %v1793_v62 }
 0x2e0   : > { %v6420_v25 = vsub.f32 %v6266_v36, %v1841_v6 }
 0x2e1   : > { %v6423_v14 = vsub.f32 %v6268_v41, %v1840_v20 }
 0x2e2   : > { %v1799_v48 = vpop.xlane.xlu0 %1798  ;;  %v1873_v0 = vmul.f32 %v6420_v25, %v6420_v25 }
 0x2e3   : > { %v1842_v24 = vmul.f32 0.03125, %v1799_v48  ;;  %v1872_v21 = vmul.f32 %v6423_v14, %v6423_v14 }
 0x2e4   : > { %v1891_v13 = vsel %vm1597_vm3, %v1873_v0, 0.0 }
 0x2e5   : > { %v6431_v29 = vsub.f32 %v6274_v50, %v1842_v24  ;;  %1892 = vadd.xlane.f32.xlu0 %v1891_v13  ;;  %v1888_v62 = vsel %vm1597_vm3, %v1872_v21, 0.0 }
 0x2e6   : > { %v1805_v6 = vpop.xlane.xlu1 %1804  ;;  %1889 = vadd.xlane.f32.xlu1 %v1888_v62  ;;  %v1802_v36 = vpop.xlane.xlu0 %1801 }
 0x2e7   : > { %v1844_v41 = vmul.f32 0.03125, %v1805_v6  ;;  %v1843_v20 = vmul.f32 0.03125, %v1802_v36  ;;  %v1874_v57 = vmul.f32 %v6431_v29, %v6431_v29 }
 0x2e9   : > { %v6437_v48 = vsub.f32 %v6280_v39, %v1844_v41  ;;  %v6440_v16 = vsub.f32 %v6276_v53, %v1843_v20  ;;  %v1894_v0 = vsel %vm1597_vm3, %v1874_v57, 0.0 }
 0x2ea   : > { %v1811_v50 = vpop.xlane.xlu1 %1810  ;;  %1895 = vadd.xlane.f32.xlu1 %v1894_v0  ;;  %v1808_v24 = vpop.xlane.xlu0 %1807 }
 0x2eb   : > { %v1846_v21 = vmul.f32 0.03125, %v1811_v50  ;;  %v1845_v13 = vmul.f32 0.03125, %v1808_v24  ;;  %v1876_v62 = vmul.f32 %v6437_v48, %v6437_v48  ;;  %v1875_v6 = vmul.f32 %v6440_v16, %v6440_v16 }
 0x2ed   : > { %v6448_v36 = vsub.f32 %v6288_v43, %v1846_v21  ;;  %v6451_v39 = vsub.f32 %v6282_v58, %v1845_v13  ;;  %v1900_v53 = vsel %vm1597_vm3, %v1876_v62, 0.0  ;;  %v1897_v57 = vsel %vm1597_vm3, %v1875_v6, 0.0 }
 0x2ee   : > { %v1817_v41 = vpop.xlane.xlu1 %1816  ;;  %1901 = vadd.xlane.f32.xlu1 %v1900_v53  ;;  %1898 = vadd.xlane.f32.xlu0 %v1897_v57  ;;  %v1814_v20 = vpop.xlane.xlu0 %1813 }
 0x2ef   : > { %v1848_v0 = vmul.f32 0.03125, %v1817_v41  ;;  %v1847_v50 = vmul.f32 0.03125, %v1814_v20  ;;  %v1878_v24 = vmul.f32 %v6448_v36, %v6448_v36  ;;  %v1877_v43 = vmul.f32 %v6451_v39, %v6451_v39 }
 0x2f1   : > { %v6460_v21 = vsub.f32 %v6296_v49, %v1848_v0  ;;  %v6463_v58 = vsub.f32 %v6290_v56, %v1847_v50  ;;  %v1906_v13 = vsel %vm1597_vm3, %v1878_v24, 0.0  ;;  %v1903_v62 = vsel %vm1597_vm3, %v1877_v43, 0.0 }
 0x2f2   : > { %v1823_v6 = vpop.xlane.xlu1 %1822  ;;  %1907 = vadd.xlane.f32.xlu1 %v1906_v13  ;;  %1904 = vadd.xlane.f32.xlu0 %v1903_v62  ;;  %v1820_v53 = vpop.xlane.xlu0 %1819 }
 0x2f3   : > { %v1850_v57 = vmul.f32 0.03125, %v1823_v6  ;;  %v1849_v41 = vmul.f32 0.03125, %v1820_v53  ;;  %v1880_v20 = vmul.f32 %v6460_v21, %v6460_v21  ;;  %v1879_v49 = vmul.f32 %v6463_v58, %v6463_v58 }
 0x2f5   : > { %v6472_v0 = vsub.f32 %v6304_v44, %v1850_v57  ;;  %v6475_v56 = vsub.f32 %v6298_v51, %v1849_v41  ;;  %v1912_v50 = vsel %vm1597_vm3, %v1880_v20, 0.0  ;;  %v1909_v24 = vsel %vm1597_vm3, %v1879_v49, 0.0 }
 0x2f6   : > { %v1829_v43 = vpop.xlane.xlu1 %1828  ;;  %1913 = vadd.xlane.f32.xlu1 %v1912_v50  ;;  %1910 = vadd.xlane.f32.xlu0 %v1909_v24  ;;  %v1826_v13 = vpop.xlane.xlu0 %1825 }
 0x2f7   : > { %v1852_v62 = vmul.f32 0.03125, %v1829_v43  ;;  %v1851_v6 = vmul.f32 0.03125, %v1826_v13  ;;  %v1882_v53 = vmul.f32 %v6472_v0, %v6472_v0  ;;  %v1881_v44 = vmul.f32 %v6475_v56, %v6475_v56 }
 0x2f9   : > { %v6484_v57 = vsub.f32 %v6317_v45, %v1852_v62  ;;  %v6487_v51 = vsub.f32 %v6306_v46, %v1851_v6  ;;  %v1918_v41 = vsel %vm1597_vm3, %v1882_v53, 0.0  ;;  %v1915_v20 = vsel %vm1597_vm3, %v1881_v44, 0.0 }
 0x2fa   : > { %v1835_v49 = vpop.xlane.xlu1 %1834  ;;  %1919 = vadd.xlane.f32.xlu1 %v1918_v41  ;;  %1916 = vadd.xlane.f32.xlu0 %v1915_v20  ;;  %v1832_v50 = vpop.xlane.xlu0 %1831 }
 0x2fb   : > { %v1854_v24 = vmul.f32 0.03125, %v1835_v49  ;;  %v1853_v43 = vmul.f32 0.03125, %v1832_v50  ;;  %v1884_v13 = vmul.f32 %v6484_v57, %v6484_v57  ;;  %v1883_v45 = vmul.f32 %v6487_v51, %v6487_v51 }
 0x2fd   : > { %v6496_v62 = vsub.f32 %v6329_v37, %v1854_v24  ;;  %v6499_v46 = vsub.f32 %v6319_v52, %v1853_v43  ;;  %v1924_v6 = vsel %vm1597_vm3, %v1884_v13, 0.0  ;;  %v1921_v53 = vsel %vm1597_vm3, %v1883_v45, 0.0 }
 0x2fe   : > { %v2461_v44 = vpop.xlane.xlu1 %2460  ;;  %1925 = vadd.xlane.f32.xlu1 %v1924_v6  ;;  %1922 = vadd.xlane.f32.xlu0 %v1921_v53  ;;  %v1838_v41 = vpop.xlane.xlu0 %1837  ;;  %v1589_v53 = vld [vmem:[%s7283_s8] sm:$0xff] }
 0x2ff   : > { %v2507_v20 = vmul.f32 0.03125, %v2461_v44  ;;  %v1855_v49 = vmul.f32 0.03125, %v1838_v41  ;;  %v1886_v50 = vmul.f32 %v6496_v62, %v6496_v62  ;;  %v1885_v37 = vmul.f32 %v6499_v46, %v6499_v46 }
 0x301   : > { %v6508_v24 = vsub.f32 %v6334_v31, %v2507_v20  ;;  %v6511_v52 = vsub.f32 %v6331_v55, %v1855_v49  ;;  %v1930_v43 = vsel %vm1597_vm3, %v1886_v50, 0.0  ;;  %v1927_v13 = vsel %vm1597_vm3, %v1885_v37, 0.0  ;;  %v1590_v31 = vld [vmem:[%s7283_s8 + $0x8] sm:$0xff] }
 0x302   : > { %v2467_v45 = vpop.xlane.xlu1 %2466  ;;  %1931 = vadd.xlane.f32.xlu1 %v1930_v43  ;;  %1928 = vadd.xlane.f32.xlu0 %v1927_v13  ;;  %v2464_v6 = vpop.xlane.xlu0 %2463  ;;  %v5425_v49 = vpack.c.bf16 %v1590_v31, %v1589_v53 }
 0x303   : > { %v2509_v44 = vmul.f32 0.03125, %v2467_v45  ;;  %v2508_v41 = vmul.f32 0.03125, %v2464_v6  ;;  %v2539_v55 = vmul.f32 %v6508_v24, %v6508_v24  ;;  %v1887_v20 = vmul.f32 %v6511_v52, %v6511_v52  ;;  %v1591_v6 = vld [vmem:[%s7283_s8 + $0x10] sm:$0xff] }
 0x304   : > { %5426 = vmatprep.subr.bf16.mxu1 %v5425_v49 }
 0x305   : > { %v6526_v50 = vsub.f32 %v6344_v19, %v2509_v44  ;;  %v6529_v37 = vsub.f32 %v6341_v42, %v2508_v41  ;;  %v2555_v43 = vsel %vm1597_vm3, %v2539_v55, 0.0  ;;  %v1933_v13 = vsel %vm1597_vm3, %v1887_v20, 0.0  ;;  %v1592_v19 = vld [vmem:[%s7283_s8 + $0x18] sm:$0xff]  ;;  %5428 = vmatpush3.bf16.msra.mxu1 %v5425_v49 }
 0x306   : > { %v2473_v15 = vpop.xlane.xlu1 %2472  ;;  %2556 = vadd.xlane.f32.xlu1 %v2555_v43  ;;  %1934 = vadd.xlane.f32.xlu0 %v1933_v13  ;;  %v2470_v45 = vpop.xlane.xlu0 %2469  ;;  %v5429_v41 = vpack.c.bf16 %v1592_v19, %v1591_v6 }
 0x307   : > { %v2511_v53 = vmul.f32 0.03125, %v2473_v15  ;;  %v2510_v31 = vmul.f32 0.03125, %v2470_v45  ;;  %v2541_v42 = vmul.f32 %v6526_v50, %v6526_v50  ;;  %v2540_v44 = vmul.f32 %v6529_v37, %v6529_v37 }
 0x308   : > { %5430 = vmatprep.subr.bf16.mxu1 %v5429_v41 }
 0x309   : > { %v6544_v55 = vsub.f32 %v6354_v23, %v2511_v53  ;;  %v6547_v20 = vsub.f32 %v6351_v27, %v2510_v31  ;;  %v2561_v43 = vsel %vm1597_vm3, %v2541_v42, 0.0  ;;  %v2558_v15 = vsel %vm1597_vm3, %v2540_v44, 0.0  ;;  %5432 = vmatpush3.bf16.msra.mxu1 %v5429_v41 }
 0x30a   : > { %v2479_v13 = vpop.xlane.xlu1 %2478  ;;  %2562 = vadd.xlane.f32.xlu1 %v2561_v43  ;;  %2559 = vadd.xlane.f32.xlu0 %v2558_v15  ;;  %v2476_v45 = vpop.xlane.xlu0 %2475 }
 0x30b   : > { %v2513_v12 = vmul.f32 0.03125, %v2479_v13  ;;  %v2512_v11 = vmul.f32 0.03125, %v2476_v45  ;;  %v2543_v49 = vmul.f32 %v6544_v55, %v6544_v55  ;;  %v2542_v23 = vmul.f32 %v6547_v20, %v6547_v20  ;;  %v2258_v13 = vld [vmem:[%s7286_s11] sm:$0xff]  ;;  %v2259_v45 = vld [vmem:[%s7286_s11 + $0x8] sm:$0xff] }
 0x30d   : > { %v6556_v27 = vsub.f32 %v6364_v59, %v2513_v12  ;;  %v6559_v6 = vsub.f32 %v6361_v30, %v2512_v11  ;;  %v2567_v19 = vsel %vm1597_vm3, %v2543_v49, 0.0  ;;  %v2564_v53 = vsel %vm1597_vm3, %v2542_v23, 0.0 }
 0x30e   : > { %v2485_v31 = vpop.xlane.xlu1 %2484  ;;  %2568 = vadd.xlane.f32.xlu1 %v2567_v19  ;;  %2565 = vadd.xlane.f32.xlu0 %v2564_v53  ;;  %v2482_v42 = vpop.xlane.xlu0 %2481  ;;  %v6581_v23 = vpack.c.bf16 %v2259_v45, %v2258_v13 }
 0x30f   : > { %v2515_v44 = vmul.f32 0.03125, %v2485_v31  ;;  %v2514_v43 = vmul.f32 0.03125, %v2482_v42  ;;  %v2545_v15 = vmul.f32 %v6556_v27, %v6556_v27  ;;  %v2544_v12 = vmul.f32 %v6559_v6, %v6559_v6 }
 0x310   : > { %5442 = vmatprep.subr.bf16.mxu1 %v6581_v23 }
 0x311   : > { %v6568_v59 = vsub.f32 %v6374_v35, %v2515_v44  ;;  %v6571_v11 = vsub.f32 %v6371_v38, %v2514_v43  ;;  %v2573_v30 = vsel %vm1597_vm3, %v2545_v15, 0.0  ;;  %v2570_v41 = vsel %vm1597_vm3, %v2544_v12, 0.0 }
 0x312   : > { %v2491_v49 = vpop.xlane.xlu1 %2490  ;;  %2574 = vadd.xlane.f32.xlu1 %v2573_v30  ;;  %2571 = vadd.xlane.f32.xlu0 %v2570_v41  ;;  %v2488_v35 = vpop.xlane.xlu0 %2487 }
 0x313   : > { %v2517_v38 = vmul.f32 0.03125, %v2491_v49  ;;  %v2516_v19 = vmul.f32 0.03125, %v2488_v35  ;;  %v2547_v53 = vmul.f32 %v6568_v59, %v6568_v59  ;;  %v2546_v31 = vmul.f32 %v6571_v11, %v6571_v11 }
 0x315   : > { %v6589_v42 = vsub.f32 %v6384_v34, %v2517_v38  ;;  %v6592_v44 = vsub.f32 %v6381_v18, %v2516_v19  ;;  %v2579_v43 = vsel %vm1597_vm3, %v2547_v53, 0.0  ;;  %v2576_v15 = vsel %vm1597_vm3, %v2546_v31, 0.0 }
 0x316   : > { %v2497_v12 = vpop.xlane.xlu1 %2496  ;;  %2580 = vadd.xlane.f32.xlu1 %v2579_v43  ;;  %2577 = vadd.xlane.f32.xlu0 %v2576_v15  ;;  %v2494_v30 = vpop.xlane.xlu0 %2493 }
 0x317   : > { %v2519_v41 = vmul.f32 0.03125, %v2497_v12  ;;  %v2518_v13 = vmul.f32 0.03125, %v2494_v30  ;;  %v2549_v45 = vmul.f32 %v6589_v42, %v6589_v42  ;;  %v2548_v34 = vmul.f32 %v6592_v44, %v6592_v44 }
 0x319   : > { %v6601_v49 = vsub.f32 %v6394_v54, %v2519_v41  ;;  %v6604_v18 = vsub.f32 %v6391_v32, %v2518_v13  ;;  %v2585_v35 = vsel %vm1597_vm3, %v2549_v45, 0.0  ;;  %v2582_v38 = vsel %vm1597_vm3, %v2548_v34, 0.0 }
 0x31a   : > { %v2503_v19 = vpop.xlane.xlu1 %2502  ;;  %2586 = vadd.xlane.f32.xlu1 %v2585_v35  ;;  %2583 = vadd.xlane.f32.xlu0 %v2582_v38  ;;  %v2500_v53 = vpop.xlane.xlu0 %2499 }
 0x31b   : > { %v2521_v31 = vmul.f32 0.03125, %v2503_v19  ;;  %v2520_v43 = vmul.f32 0.03125, %v2500_v53  ;;  %v2551_v15 = vmul.f32 %v6601_v49, %v6601_v49  ;;  %v2550_v54 = vmul.f32 %v6604_v18, %v6604_v18 }
 0x31d   : > { %v6613_v12 = vsub.f32 %v6404_v33, %v2521_v31  ;;  %v6616_v32 = vsub.f32 %v6401_v28, %v2520_v43  ;;  %v2591_v30 = vsel %vm1597_vm3, %v2551_v15, 0.0  ;;  %v2588_v41 = vsel %vm1597_vm3, %v2550_v54, 0.0 }
 0x31e   : > { %2592 = vadd.xlane.f32.xlu1 %v2591_v30  ;;  %2589 = vadd.xlane.f32.xlu0 %v2588_v41  ;;  %v2506_v13 = vpop.xlane.xlu0 %2505 }
 0x31f   : > { %v2522_v45 = vmul.f32 0.03125, %v2506_v13  ;;  %v2553_v34 = vmul.f32 %v6613_v12, %v6613_v12  ;;  %v2552_v35 = vmul.f32 %v6616_v32, %v6616_v32 }
 0x321   : > { %v6625_v33 = vsub.f32 %v6411_v7, %v2522_v45  ;;  %v2597_v28 = vsel %vm1597_vm3, %v2553_v34, 0.0  ;;  %v2594_v38 = vsel %vm1597_vm3, %v2552_v35, 0.0 }
 0x322   : > { %2598 = vadd.xlane.f32.xlu1 %v2597_v28  ;;  %2595 = vadd.xlane.f32.xlu0 %v2594_v38  ;;  %v6633_v28 = vsub.s32 1, %v6254_v17 }
 0x323   : > { %v2554_v19 = vmul.f32 %v6625_v33, %v6625_v33 }
 0x325   : > { %v2600_v53 = vsel %vm1597_vm3, %v2554_v19, 0.0 }
 0x326   : > { %2601 = vadd.xlane.f32.xlu0 %v2600_v53  ;;  %v6636_v53 = vsub.s32 2, %v6254_v17 }
 0x372   : > { %v1893_v31 = vpop.xlane.xlu0 %1892 }
 0x373   : > { %v1937_v43 = vmul.f32 0.03125, %v1893_v31  ;;  %v1890_v15 = vpop.xlane.xlu1 %1889 }
 0x374   : > { %v1936_v54 = vmul.f32 0.03125, %v1890_v15 }
 0x375   : > { %v1953_v30 = vadd.f32 1e-05, %v1937_v43 }
 0x376   : > { %v1952_v41 = vadd.f32 1e-05, %v1936_v54 }
 0x377   : > { %5539 = vrsqrt.f32 %v1953_v30  ;;  %v1896_v7 = vpop.xlane.xlu1 %1895  ;;  %v6640_v30 = vrot.slane %v6262_v26, %v6633_v28 }
 0x378   : > { %5541 = vrsqrt.f32 %v1952_v41  ;;  %v1938_v13 = vmul.f32 0.03125, %v1896_v7 }
 0x37a   : > { %v1954_v45 = vadd.f32 1e-05, %v1938_v13 }
 0x37b   : > { %v1902_v34 = vpop.xlane.xlu1 %1901  ;;  %v1899_v35 = vpop.xlane.xlu0 %1898 }
 0x37c   : > { %5543 = vrsqrt.f32 %v1954_v45  ;;  %v1940_v38 = vmul.f32 0.03125, %v1902_v34  ;;  %v1939_v19 = vmul.f32 0.03125, %v1899_v35  ;;  %v6644_v45 = vrot.slane %v6262_v26, %v6636_v53 }
 0x37e   : > { %v1956_v31 = vadd.f32 1e-05, %v1940_v38  ;;  %v1955_v15 = vadd.f32 1e-05, %v1939_v19 }
 0x37f   : > { %v1908_v43 = vpop.xlane.xlu1 %1907  ;;  %v1905_v54 = vpop.xlane.xlu0 %1904 }
 0x380   : > { %5545 = vrsqrt.f32 %v1956_v31  ;;  %v1942_v41 = vmul.f32 0.03125, %v1908_v43  ;;  %v1941_v7 = vmul.f32 0.03125, %v1905_v54 }
 0x381   : > { %v5540_v13 = vpop.eup %5539  ;;  %5547 = vrsqrt.f32 %v1955_v15 }
 0x382   : > { %v5542_v10 = vpop.eup %5541  ;;  %v1985_v34 = vmul.f32 %v5540_v13, %v6420_v25  ;;  %v1958_v35 = vadd.f32 1e-05, %v1942_v41  ;;  %v1957_v38 = vadd.f32 1e-05, %v1941_v7 }
 0x383   : > { %v1914_v19 = vpop.xlane.xlu1 %1913  ;;  %v1911_v9 = vpop.xlane.xlu0 %1910  ;;  %v1984_v8 = vmul.f32 %v5542_v10, %v6423_v14  ;;  %v2260_v10 = vld [vmem:[%s7286_s11 + $0x10] sm:$0xff] }
 0x384   : > { %v2005_v5 = vmul.f32 %v6640_v30, %v1985_v34  ;;  %5549 = vrsqrt.f32 %v1958_v35  ;;  %v1944_v31 = vmul.f32 0.03125, %v1914_v19  ;;  %v1943_v43 = vmul.f32 0.03125, %v1911_v9  ;;  %v2261_v9 = vld [vmem:[%s7286_s11 + $0x18] sm:$0xff] }
 0x385   : > { %5551 = vrsqrt.f32 %v1957_v38  ;;  %v2004_v15 = vmul.f32 %v6640_v30, %v1984_v8 }
 0x386   : > { %v5544_v54 = vpop.eup %5543  ;;  %v2025_v26 = vadd.f32 %v6644_v45, %v2005_v5  ;;  %v1960_v4 = vadd.f32 1e-05, %v1944_v31  ;;  %v1959_v3 = vadd.f32 1e-05, %v1943_v43 }
 0x387   : > { %v1920_v25 = vpop.xlane.xlu1 %1919  ;;  %v1917_v41 = vpop.xlane.xlu0 %1916  ;;  %v2024_v7 = vadd.f32 %v6644_v45, %v2004_v15  ;;  %v1986_v13 = vmul.f32 %v5544_v54, %v6431_v29  ;;  %v5445_v29 = vpack.c.bf16 %v2261_v9, %v2260_v10 }
 0x388   : > { %5553 = vrsqrt.f32 %v1960_v4  ;;  %v1946_v8 = vmul.f32 0.03125, %v1920_v25  ;;  %v1945_v14 = vmul.f32 0.03125, %v1917_v41  ;;  %v2041_v38 = vmax.f32 %v2025_v26, 0.0 }
 0x389   : > { %5555 = vrsqrt.f32 %v1959_v3  ;;  %v2040_v5 = vmax.f32 %v2024_v7, 0.0  ;;  %v2006_v34 = vmul.f32 %v6640_v30, %v1986_v13 }
 0x38a   : > { %v5546_v35 = vpop.eup %5545  ;;  %v1962_v19 = vadd.f32 1e-05, %v1946_v8  ;;  %v1961_v31 = vadd.f32 1e-05, %v1945_v14 }
 0x38b   : > { %v5548_v43 = vpop.eup %5547  ;;  %5093 = vmatprep.mubr.msk.f32.mxu1 %vm1597_vm3, %v2040_v5  ;;  %v1926_v15 = vpop.xlane.xlu1 %1925  ;;  %v2026_v2 = vadd.f32 %v6644_v45, %v2006_v34  ;;  %v1988_v4 = vmul.f32 %v5546_v35, %v6437_v48 }
 0x38c   : > { %v1923_v54 = vpop.xlane.xlu0 %1922  ;;  %5557 = vrsqrt.f32 %v1962_v19  ;;  %v1948_v25 = vmul.f32 0.03125, %v1926_v15  ;;  %5094 = vmatmul.mubr.msk.f32.vlgmr.msra.gmra.mrb[36].mxu1 %vm1597_vm3, %v2041_v38  ;;  %v1987_v41 = vmul.f32 %v5548_v43, %v6440_v16 }
 0x38d   : > { %v1947_v3 = vmul.f32 0.03125, %v1923_v54  ;;  %5559 = vrsqrt.f32 %v1961_v31  ;;  %v2042_v26 = vmax.f32 %v2026_v2, 0.0  ;;  %5444 = vmatpush3.bf16.msra.mxu1 %v6581_v23  ;;  %v2008_v7 = vmul.f32 %v6640_v30, %v1988_v4 }
 0x38e   : > { %v5550_v13 = vpop.eup %5549  ;;  %v1964_v10 = vadd.f32 1e-05, %v1948_v25  ;;  %v2007_v8 = vmul.f32 %v6640_v30, %v1987_v41  ;;  %5446 = vmatprep.subr.bf16.mxu1 %v5445_v29 }
 0x38f   : > { %v1963_v9 = vadd.f32 1e-05, %v1947_v3  ;;  %v5552_v48 = vpop.eup %5551  ;;  %v1932_v14 = vpop.xlane.xlu1 %1931  ;;  %5096 = vmatprep.mubr.msk.f32.mxu1 %vm1597_vm3, %v2042_v26  ;;  %v2028_v34 = vadd.f32 %v6644_v45, %v2008_v7  ;;  %v1990_v16 = vmul.f32 %v5550_v13, %v6448_v36 }
 0x390   : > { %v1929_v5 = vpop.xlane.xlu0 %1928  ;;  %5561 = vrsqrt.f32 %v1964_v10  ;;  %v1950_v2 = vmul.f32 0.03125, %v1932_v14  ;;  %v2027_v35 = vadd.f32 %v6644_v45, %v2007_v8  ;;  %v1989_v19 = vmul.f32 %v5552_v48, %v6451_v39 }
 0x391   : > { %v1949_v23 = vmul.f32 0.03125, %v1929_v5  ;;  %5563 = vrsqrt.f32 %v1963_v9  ;;  %v2044_v38 = vmax.f32 %v2028_v34, 0.0  ;;  %v2010_v31 = vmul.f32 %v6640_v30, %v1990_v16  ;;  %5448 = vmatpush3.bf16.msra.mxu1 %v5445_v29 }
 0x392   : > { %v5554_v43 = vpop.eup %5553  ;;  %v1966_v15 = vadd.f32 1e-05, %v1950_v2  ;;  %v2043_v4 = vmax.f32 %v2027_v35, 0.0  ;;  %v2009_v36 = vmul.f32 %v6640_v30, %v1989_v19 }
 0x393   : > { %v1965_v54 = vadd.f32 1e-05, %v1949_v23  ;;  %v5556_v25 = vpop.eup %5555  ;;  %v2557_v3 = vpop.xlane.xlu1 %2556  ;;  %v2030_v26 = vadd.f32 %v6644_v45, %v2010_v31  ;;  %v1992_v7 = vmul.f32 %v5554_v43, %v6460_v21 }
 0x394   : > { %v1935_v41 = vpop.xlane.xlu0 %1934  ;;  %5565 = vrsqrt.f32 %v1966_v15  ;;  %v2603_v13 = vmul.f32 0.03125, %v2557_v3  ;;  %5097 = vmatmul.mubr.msk.f32.gmra.mrb[38].mxu1 %vm1597_vm3, %v2043_v4  ;;  %v1991_v29 = vmul.f32 %v5556_v25, %v6463_v58  ;;  %v2029_v10 = vadd.f32 %v6644_v45, %v2009_v36 }
 0x395   : > { %v1951_v39 = vmul.f32 0.03125, %v1935_v41  ;;  %5567 = vrsqrt.f32 %v1965_v54  ;;  %5099 = vmatprep.mubr.msk.f32.mxu1 %vm1597_vm3, %v2044_v38  ;;  %v2012_v9 = vmul.f32 %v6640_v30, %v1992_v7  ;;  %v2046_v5 = vmax.f32 %v2030_v26, 0.0 }
 0x396   : > { %v5558_v8 = vpop.eup %5557  ;;  %v2619_v48 = vadd.f32 1e-05, %v2603_v13  ;;  %v2011_v21 = vmul.f32 %v6640_v30, %v1991_v29  ;;  %v2045_v2 = vmax.f32 %v2029_v10, 0.0 }
 0x397   : > { %v1967_v14 = vadd.f32 1e-05, %v1951_v39  ;;  %v5560_v34 = vpop.eup %5559  ;;  %v2563_v16 = vpop.xlane.xlu1 %2562  ;;  %v2032_v35 = vadd.f32 %v6644_v45, %v2012_v9  ;;  %v1994_v58 = vmul.f32 %v5558_v8, %v6472_v0 }
 0x398   : > { %v2560_v23 = vpop.xlane.xlu0 %2559  ;;  %5569 = vrsqrt.f32 %v2619_v48  ;;  %v2605_v38 = vmul.f32 0.03125, %v2563_v16  ;;  %v2031_v31 = vadd.f32 %v6644_v45, %v2011_v21  ;;  %5100 = vmatmul.mubr.msk.f32.gmra.mrb[40].mxu1 %vm1597_vm3, %v2045_v2  ;;  %v1993_v43 = vmul.f32 %v5560_v34, %v6475_v56 }
 0x399   : > { %v2604_v19 = vmul.f32 0.03125, %v2560_v23  ;;  %5571 = vrsqrt.f32 %v1967_v14  ;;  %v2014_v15 = vmul.f32 %v6640_v30, %v1994_v58  ;;  %5102 = vmatprep.mubr.msk.f32.mxu1 %vm1597_vm3, %v2046_v5  ;;  %v2048_v41 = vmax.f32 %v2032_v35, 0.0 }
 0x39a   : > { %v5562_v54 = vpop.eup %5561  ;;  %v2621_v4 = vadd.f32 1e-05, %v2605_v38  ;;  %v2047_v3 = vmax.f32 %v2031_v31, 0.0  ;;  %v2013_v7 = vmul.f32 %v6640_v30, %v1993_v43  ;;  %v6704_v31 = vrot.slane %v6315_v40, %v6633_v28 }
 0x39b   : > { %v2620_v25 = vadd.f32 1e-05, %v2604_v19  ;;  %v5564_v0 = vpop.eup %5563  ;;  %v2569_v36 = vpop.xlane.xlu1 %2568  ;;  %v2034_v13 = vadd.f32 %v6644_v45, %v2014_v15  ;;  %v1996_v39 = vmul.f32 %v5562_v54, %v6484_v57 }
 0x39c   : > { %v2566_v26 = vpop.xlane.xlu0 %2565  ;;  %5573 = vrsqrt.f32 %v2621_v4  ;;  %v2607_v56 = vmul.f32 0.03125, %v2569_v36  ;;  %v1995_v10 = vmul.f32 %v5564_v0, %v6487_v51  ;;  %5103 = vmatmul.mubr.msk.f32.gmra.mrb[42].mxu1 %vm1597_vm3, %v2047_v3  ;;  %v2033_v9 = vadd.f32 %v6644_v45, %v2013_v7 }
 0x39d   : > { %v2606_v29 = vmul.f32 0.03125, %v2566_v26  ;;  %5575 = vrsqrt.f32 %v2620_v25  ;;  %v2016_v8 = vmul.f32 %v6640_v30, %v1996_v39  ;;  %5105 = vmatprep.mubr.msk.f32.mxu1 %vm1597_vm3, %v2048_v41  ;;  %v2050_v21 = vmax.f32 %v2034_v13, 0.0 }
 0x39e   : > { %v5566_v48 = vpop.eup %5565  ;;  %v2623_v14 = vadd.f32 1e-05, %v2607_v56  ;;  %v2015_v57 = vmul.f32 %v6640_v30, %v1995_v10  ;;  %v2049_v2 = vmax.f32 %v2033_v9, 0.0  ;;  %v6712_v0 = vrot.slane %v6315_v40, %v6636_v53 }
 0x39f   : > { %v2622_v5 = vadd.f32 1e-05, %v2606_v29  ;;  %v5568_v34 = vpop.eup %5567  ;;  %v2575_v16 = vpop.xlane.xlu1 %2574  ;;  %v2036_v51 = vadd.f32 %v6644_v45, %v2016_v8  ;;  %v1998_v35 = vmul.f32 %v5566_v48, %v6496_v62 }
 0x3a0   : > { %v2572_v23 = vpop.xlane.xlu0 %2571  ;;  %5577 = vrsqrt.f32 %v2623_v14  ;;  %v2609_v58 = vmul.f32 0.03125, %v2575_v16  ;;  %v2035_v19 = vadd.f32 %v6644_v45, %v2015_v57  ;;  %5106 = vmatmul.mubr.msk.f32.gmra.mrb[44].mxu1 %vm1597_vm3, %v2049_v2  ;;  %v1997_v43 = vmul.f32 %v5568_v34, %v6499_v46 }
 0x3a1   : > { %v2608_v38 = vmul.f32 0.03125, %v2572_v23  ;;  %5579 = vrsqrt.f32 %v2622_v5  ;;  %v2018_v15 = vmul.f32 %v6640_v30, %v1998_v35  ;;  %5108 = vmatprep.mubr.msk.f32.mxu1 %vm1597_vm3, %v2050_v21  ;;  %v2052_v3 = vmax.f32 %v2036_v51, 0.0 }
 0x3a2   : > { %v5570_v54 = vpop.eup %5569  ;;  %v2625_v4 = vadd.f32 1e-05, %v2609_v58  ;;  %v2051_v62 = vmax.f32 %v2035_v19, 0.0  ;;  %v2017_v7 = vmul.f32 %v6640_v30, %v1997_v43 }
 0x3a3   : > { %v2624_v25 = vadd.f32 1e-05, %v2608_v38  ;;  %v5572_v41 = vpop.eup %5571  ;;  %v2581_v36 = vpop.xlane.xlu1 %2580  ;;  %v2038_v46 = vadd.f32 %v6644_v45, %v2018_v15  ;;  %v2651_v13 = vmul.f32 %v5570_v54, %v6508_v24 }
 0x3a4   : > { %v2578_v26 = vpop.xlane.xlu0 %2577  ;;  %5581 = vrsqrt.f32 %v2625_v4  ;;  %v2611_v39 = vmul.f32 0.03125, %v2581_v36  ;;  %v1999_v29 = vmul.f32 %v5572_v41, %v6511_v52  ;;  %5109 = vmatmul.mubr.msk.f32.gmra.mrb[46].mxu1 %vm1597_vm3, %v2051_v62  ;;  %v2037_v10 = vadd.f32 %v6644_v45, %v2017_v7 }
 0x3a5   : > { %v2610_v56 = vmul.f32 0.03125, %v2578_v26  ;;  %5583 = vrsqrt.f32 %v2624_v25  ;;  %v2671_v40 = vmul.f32 %v6704_v31, %v2651_v13  ;;  %5111 = vmatprep.mubr.msk.f32.mxu1 %vm1597_vm3, %v2052_v3  ;;  %v2054_v14 = vmax.f32 %v2038_v46, 0.0 }
 0x3a6   : > { %v5574_v9 = vpop.eup %5573  ;;  %v2627_v8 = vadd.f32 1e-05, %v2611_v39  ;;  %v2019_v24 = vmul.f32 %v6640_v30, %v1999_v29  ;;  %v2053_v57 = vmax.f32 %v2037_v10, 0.0 }
 0x3a7   : > { %v2626_v48 = vadd.f32 1e-05, %v2610_v56  ;;  %v5576_v5 = vpop.eup %5575  ;;  %v2587_v21 = vpop.xlane.xlu1 %2586  ;;  %v2691_v52 = vadd.f32 %v6712_v0, %v2671_v40  ;;  %v2653_v16 = vmul.f32 %v5574_v9, %v6526_v50 }
 0x3a8   : > { %v2584_v34 = vpop.xlane.xlu0 %2583  ;;  %v2652_v2 = vmul.f32 %v5576_v5, %v6529_v37  ;;  %5585 = vrsqrt.f32 %v2627_v8  ;;  %v2613_v23 = vmul.f32 0.03125, %v2587_v21  ;;  %5112 = vmatmul.mubr.msk.f32.gmra.mrb[48].mxu1 %vm1597_vm3, %v2053_v57  ;;  %v2039_v35 = vadd.f32 %v6644_v45, %v2019_v24 }
 0x3a9   : > { %v2612_v51 = vmul.f32 0.03125, %v2584_v34  ;;  %5587 = vrsqrt.f32 %v2626_v48  ;;  %v2673_v30 = vmul.f32 %v6704_v31, %v2653_v16  ;;  %5114 = vmatprep.mubr.msk.f32.mxu1 %vm1597_vm3, %v2054_v14  ;;  %v2707_v50 = vmax.f32 %v2691_v52, 0.0 }
 0x3aa   : > { %v5578_v58 = vpop.eup %5577  ;;  %v2672_v38 = vmul.f32 %v6704_v31, %v2652_v2  ;;  %v2629_v19 = vadd.f32 1e-05, %v2613_v23  ;;  %v2055_v54 = vmax.f32 %v2039_v35, 0.0 }
 0x3ab   : > { %v2628_v43 = vadd.f32 1e-05, %v2612_v51  ;;  %v5580_v15 = vpop.eup %5579  ;;  %v2593_v37 = vpop.xlane.xlu1 %2592  ;;  %v2693_v25 = vadd.f32 %v6712_v0, %v2673_v30  ;;  %v2655_v62 = vmul.f32 %v5578_v58, %v6544_v55 }
 0x3ac   : > { %v2590_v4 = vpop.xlane.xlu0 %2589  ;;  %v2692_v45 = vadd.f32 %v6712_v0, %v2672_v38  ;;  %5589 = vrsqrt.f32 %v2629_v19  ;;  %v2615_v3 = vmul.f32 0.03125, %v2593_v37  ;;  %5115 = vmatmul.mubr.msk.f32.gmra.mrb[50].mxu1 %vm1597_vm3, %v2055_v54  ;;  %v2654_v36 = vmul.f32 %v5580_v15, %v6547_v20 }
 0x3ad   : > { %v2614_v41 = vmul.f32 0.03125, %v2590_v4  ;;  %5591 = vrsqrt.f32 %v2628_v43  ;;  %v2675_v26 = vmul.f32 %v6704_v31, %v2655_v62  ;;  %5157 = vmatprep.mubr.msk.f32.mxu1 %vm1597_vm3, %v2707_v50  ;;  %v2709_v56 = vmax.f32 %v2693_v25, 0.0 }
 0x3ae   : > { %v5582_v7 = vpop.eup %5581  ;;  %v2708_v46 = vmax.f32 %v2692_v45, 0.0  ;;  %v2631_v13 = vadd.f32 1e-05, %v2615_v3  ;;  %v2674_v40 = vmul.f32 %v6704_v31, %v2654_v36 }
 0x3af   : > { %v2630_v39 = vadd.f32 1e-05, %v2614_v41  ;;  %v5584_v55 = vpop.eup %5583  ;;  %v2599_v29 = vpop.xlane.xlu1 %2598  ;;  %v2695_v9 = vadd.f32 %v6712_v0, %v2675_v26  ;;  %v2657_v8 = vmul.f32 %v5582_v7, %v6556_v27 }
 0x3b0   : > { %v2596_v10 = vpop.xlane.xlu0 %2595  ;;  %5593 = vrsqrt.f32 %v2631_v13  ;;  %v2617_v20 = vmul.f32 0.03125, %v2599_v29  ;;  %v2656_v14 = vmul.f32 %v5584_v55, %v6559_v6  ;;  %5158 = vmatmul.mubr.msk.f32.vlgmr.msra.gmra.mrb[52].mxu1 %vm1597_vm3, %v2708_v46  ;;  %v2694_v24 = vadd.f32 %v6712_v0, %v2674_v40 }
 0x3b1   : > { %v2616_v48 = vmul.f32 0.03125, %v2596_v10  ;;  %5595 = vrsqrt.f32 %v2630_v39  ;;  %v2677_v5 = vmul.f32 %v6704_v31, %v2657_v8  ;;  %5160 = vmatprep.mubr.msk.f32.mxu1 %vm1597_vm3, %v2709_v56  ;;  %v2711_v52 = vmax.f32 %v2695_v9, 0.0 }
 0x3b2   : > { %v5586_v21 = vpop.eup %5585  ;;  %v2633_v57 = vadd.f32 1e-05, %v2617_v20  ;;  %v2676_v27 = vmul.f32 %v6704_v31, %v2656_v14  ;;  %v2710_v2 = vmax.f32 %v2694_v24, 0.0 }
 0x3b3   : > { %v2632_v34 = vadd.f32 1e-05, %v2616_v48  ;;  %v5588_v16 = vpop.eup %5587  ;;  %v2697_v6 = vadd.f32 %v6712_v0, %v2677_v5  ;;  %v2659_v51 = vmul.f32 %v5586_v21, %v6568_v59 }
 0x3b4   : > { %v2602_v23 = vpop.xlane.xlu0 %2601  ;;  %5597 = vrsqrt.f32 %v2633_v57  ;;  %v2696_v30 = vadd.f32 %v6712_v0, %v2676_v27  ;;  %v2658_v58 = vmul.f32 %v5588_v16, %v6571_v11  ;;  %5161 = vmatmul.mubr.msk.f32.gmra.mrb[54].mxu1 %vm1597_vm3, %v2710_v2  ;;  %v3149_v16 = vld [vmem:[%s7288_s13] sm:$0xff]  ;;  %v3150_v2 = vld [vmem:[%s7288_s13 + $0x8] sm:$0xff] }
 0x3b5   : > { %v2618_v35 = vmul.f32 0.03125, %v2602_v23  ;;  %5599 = vrsqrt.f32 %v2632_v34  ;;  %v2679_v38 = vmul.f32 %v6704_v31, %v2659_v51  ;;  %5163 = vmatprep.mubr.msk.f32.mxu1 %vm1597_vm3, %v2711_v52  ;;  %v2713_v15 = vmax.f32 %v2697_v6, 0.0  ;;  %v2954_v6 = vld [vmem:[%s7287_s12 + $0x10] sm:$0xff]  ;;  %v2955_v51 = vld [vmem:[%s7287_s12 + $0x18] sm:$0xff] }
 0x3b6   : > { %v5590_v19 = vpop.eup %5589  ;;  %v2712_v50 = vmax.f32 %v2696_v30, 0.0  ;;  %v2678_v37 = vmul.f32 %v6704_v31, %v2658_v58  ;;  %v5457_v23 = vpack.c.bf16 %v3150_v2, %v3149_v16  ;;  %v5453_v30 = vpack.c.bf16 %v2955_v51, %v2954_v6  ;;  %v3152_v58 = vld [vmem:[%s7288_s13 + $0x18] sm:$0xff] }
 0x3b7   : > { %v2634_v43 = vadd.f32 1e-05, %v2618_v35  ;;  %v5592_v59 = vpop.eup %5591  ;;  %v2699_v54 = vadd.f32 %v6712_v0, %v2679_v38  ;;  %v2661_v4 = vmul.f32 %v5590_v19, %v6589_v42  ;;  %v3151_v35 = vld [vmem:[%s7288_s13 + $0x10] sm:$0xff]  ;;  %v2936_v19 = vld [vmem:[%s5795_s23] sm:$0xff] }
 0x3b8   : > { %v2698_v11 = vadd.f32 %v6712_v0, %v2678_v37  ;;  %v2660_v25 = vmul.f32 %v5592_v59, %v6592_v44  ;;  %5164 = vmatmul.mubr.msk.f32.gmra.mrb[56].mxu1 %vm1597_vm3, %v2712_v50  ;;  %5458 = vmatprep.subr.bf16.mxu1 %v5457_v23  ;;  %v5461_v38 = vpack.c.bf16 %v3152_v58, %v3151_v35  ;;  %v2938_v50 = vld [vmem:[%s5795_s23 + $0x10] sm:$0xff]  ;;  %v2940_v37 = vld [vmem:[%s5795_s23 + $0x20] sm:$0xff]  ;;  %v2941_v59 = vld [vmem:[%s5795_s23 + $0x28] sm:$0xff] }
 0x3b9   : > { %5601 = vrsqrt.f32 %v2634_v43  ;;  %v2681_v62 = vmul.f32 %v6704_v31, %v2661_v4  ;;  %5166 = vmatprep.mubr.msk.f32.mxu1 %vm1597_vm3, %v2713_v15  ;;  %v2715_v41 = vmax.f32 %v2699_v54, 0.0  ;;  %5460 = vmatpush3.bf16.msra.mxu1 %v5457_v23  ;;  %v2937_v43 = vld [vmem:[%s5795_s23 + $0x8] sm:$0xff]  ;;  %v2939_v15 = vld [vmem:[%s5795_s23 + $0x18] sm:$0xff]  ;;  %v2942_v54 = vld [vmem:[%s5795_s23 + $0x30] sm:$0xff] }
 0x3ba   : > { %v5594_v45 = vpop.eup %5593  ;;  %v2714_v3 = vmax.f32 %v2698_v11, 0.0  ;;  %v2680_v36 = vmul.f32 %v6704_v31, %v2660_v25  ;;  %5462 = vmatprep.subr.bf16.mxu1 %v5461_v38  ;;  %5189 = vmatprep.mubr.msk.f32.mxu0 %vm1597_vm3, %v2936_v19  ;;  %v2943_v4 = vld [vmem:[%s5795_s23 + $0x38] sm:$0xff]  ;;  %v2944_v11 = vld [vmem:[%s5795_s23 + $0x40] sm:$0xff]  ;;  %v2945_v25 = vld [vmem:[%s5795_s23 + $0x48] sm:$0xff] }
 0x3bb   : > { %v5596_v26 = vpop.eup %5595  ;;  %v2701_v7 = vadd.f32 %v6712_v0, %v2681_v62  ;;  %v2663_v42 = vmul.f32 %v5594_v45, %v6601_v49  ;;  %v2946_v62 = vld [vmem:[%s5795_s23 + $0x50] sm:$0xff]  ;;  %v2947_v45 = vld [vmem:[%s5795_s23 + $0x58] sm:$0xff] }
 0x3bc   : > { %v2700_v46 = vadd.f32 %v6712_v0, %v2680_v36  ;;  %v2662_v44 = vmul.f32 %v5596_v26, %v6604_v18  ;;  %5167 = vmatmul.mubr.msk.f32.gmra.mrb[58].mxu1 %vm1597_vm3, %v2714_v3  ;;  %v2948_v3 = vld [vmem:[%s5795_s23 + $0x60] sm:$0xff]  ;;  %v2950_v36 = vld [vmem:[%s5795_s23 + $0x70] sm:$0xff]  ;;  %v2951_v26 = vld [vmem:[%s5795_s23 + $0x78] sm:$0xff] }
 0x3bd   : > { %v2683_v13 = vmul.f32 %v6704_v31, %v2663_v42  ;;  %5169 = vmatprep.mubr.msk.f32.mxu1 %vm1597_vm3, %v2715_v41  ;;  %v2717_v55 = vmax.f32 %v2701_v7, 0.0  ;;  %5464 = vmatpush3.bf16.msra.mxu1 %v5461_v38  ;;  %v2949_v41 = vld [vmem:[%s5795_s23 + $0x68] sm:$0xff]  ;;  %v3362_v7 = vld [vmem:[%s7289_s14] sm:$0xff] }
 0x3be   : > { %v5598_v39 = vpop.eup %5597  ;;  %v2716_v56 = vmax.f32 %v2700_v46, 0.0  ;;  %v2682_v29 = vmul.f32 %v6704_v31, %v2662_v44  ;;  %v3363_v42 = vld [vmem:[%s7289_s14 + $0x8] sm:$0xff]  ;;  %v3364_v46 = vld [vmem:[%s7289_s14 + $0x10] sm:$0xff] }
 0x3bf   : > { %v5600_v10 = vpop.eup %5599  ;;  %v2703_v40 = vadd.f32 %v6712_v0, %v2683_v13  ;;  %v2665_v49 = vmul.f32 %v5598_v39, %v6613_v12  ;;  %v5465_v44 = vpack.c.bf16 %v3363_v42, %v3362_v7  ;;  %v3365_v13 = vld [vmem:[%s7289_s14 + $0x18] sm:$0xff] }
 0x3c0   : > { %v2702_v9 = vadd.f32 %v6712_v0, %v2682_v29  ;;  %v2664_v18 = vmul.f32 %v5600_v10, %v6616_v32  ;;  %5170 = vmatmul.mubr.msk.f32.gmra.mrb[60].mxu1 %vm1597_vm3, %v2716_v56  ;;  %v5469_v39 = vpack.c.bf16 %v3365_v13, %v3364_v46 }
 0x3c1   : > { %v2685_v8 = vmul.f32 %v6704_v31, %v2665_v49  ;;  %5172 = vmatprep.mubr.msk.f32.mxu1 %vm1597_vm3, %v2717_v55  ;;  %v2719_v14 = vmax.f32 %v2703_v40, 0.0 }
 0x3c2   : > { %v2718_v48 = vmax.f32 %v2702_v9, 0.0  ;;  %v2684_v24 = vmul.f32 %v6704_v31, %v2664_v18 }
 0x3c3   : > { %v5602_v20 = vpop.eup %5601  ;;  %v2705_v5 = vadd.f32 %v6712_v0, %v2685_v8 }
 0x3c4   : > { %v2666_v21 = vmul.f32 %v5602_v20, %v6625_v33  ;;  %v2704_v12 = vadd.f32 %v6712_v0, %v2684_v24  ;;  %5173 = vmatmul.mubr.msk.f32.gmra.mrb[62].mxu1 %vm1597_vm3, %v2718_v48  ;;  %v2952_v33 = vld [vmem:[%s7287_s12] sm:$0xff] }
 0x3c5   : > { %5175 = vmatprep.mubr.msk.f32.mxu1 %vm1597_vm3, %v2719_v14  ;;  %v2721_v34 = vmax.f32 %v2705_v5, 0.0  ;;  %v6860_v5 = vsub.s32 3, %v6254_v17 }
 0x3c6   : > { %v2686_v32 = vmul.f32 %v6704_v31, %v2666_v21  ;;  %v2720_v57 = vmax.f32 %v2704_v12, 0.0  ;;  %v2953_v31 = vld [vmem:[%s7287_s12 + $0x8] sm:$0xff] }
 0x3c8   : > { %v2706_v52 = vadd.f32 %v6712_v0, %v2686_v32  ;;  %5176 = vmatmul.mubr.msk.f32.gmra.mrb[64].mxu1 %vm1597_vm3, %v2720_v57  ;;  %v5449_v0 = vpack.c.bf16 %v2953_v31, %v2952_v33  ;;  %v5635_v32 = vld [vmem:[%s7282_s7] sm:$0xf] }
 0x3c9   : > { %5178 = vmatprep.mubr.msk.f32.mxu1 %vm1597_vm3, %v2721_v34  ;;  %v6870_v57 = vrot.slane %v5635_v32, %v6860_v5 }
 0x3ca   : > { %v2722_v27 = vmax.f32 %v2706_v52, 0.0  ;;  %5450 = vmatprep.subr.bf16.mxu0 %v5449_v0  ;;  %v5636_v52 = vld [vmem:[%s7285_s10] sm:$0xf] }
 0x3cb   : > { %5452 = vmatpush3.bf16.msra.mxu0 %v5449_v0  ;;  %v6878_v17 = vrot.slane %v5636_v52, %v6860_v5 }
 0x3cc   : > { %5179 = vmatmul.mubr.msk.f32.gmra.mrb[66].mxu1 %vm1597_vm3, %v2722_v27  ;;  %5454 = vmatprep.subr.bf16.mxu0 %v5453_v30 }
 0x3cf   : > { %5456 = vmatpush3.bf16.msra.mxu0 %v5453_v30 }
 0x3d0   : > { %5466 = vmatprep.subr.bf16.mxu0 %v5465_v44 }
 0x3d2   : > { %5190 = vmatmul.mubr.msk.f32.vlgmr.msra.gmra.mrb[60].mxu0 %vm1597_vm3, %v2937_v43 }
 0x3d3   : > { %5192 = vmatprep.mubr.msk.f32.mxu0 %vm1597_vm3, %v2938_v50  ;;  %5468 = vmatpush3.bf16.msra.mxu0 %v5465_v44 }
 0x3d4   : > { %5470 = vmatprep.subr.bf16.mxu0 %v5469_v39 }
 0x3d6   : > { %5193 = vmatmul.mubr.msk.f32.gmra.mrb[62].mxu0 %vm1597_vm3, %v2939_v15 }
 0x3d7   : > { %5195 = vmatprep.mubr.msk.f32.mxu0 %vm1597_vm3, %v2940_v37  ;;  %5472 = vmatpush3.bf16.msra.mxu0 %v5469_v39 }
 0x3da   : > { %5196 = vmatmul.mubr.msk.f32.gmra.mrb[64].mxu0 %vm1597_vm3, %v2941_v59 }
 0x3db   : > { %5198 = vmatprep.mubr.msk.f32.mxu0 %vm1597_vm3, %v2942_v54 }
 0x3de   : > { %5199 = vmatmul.mubr.msk.f32.gmra.mrb[66].mxu0 %vm1597_vm3, %v2943_v4 }
 0x3df   : > { %5201 = vmatprep.mubr.msk.f32.mxu0 %vm1597_vm3, %v2944_v11 }
 0x3e2   : > { %5202 = vmatmul.mubr.msk.f32.gmra.mrb[68].mxu0 %vm1597_vm3, %v2945_v25 }
 0x3e3   : > { %5204 = vmatprep.mubr.msk.f32.mxu0 %vm1597_vm3, %v2946_v62 }
 0x3e6   : > { %5205 = vmatmul.mubr.msk.f32.gmra.mrb[70].mxu0 %vm1597_vm3, %v2947_v45 }
 0x3e7   : > { %5207 = vmatprep.mubr.msk.f32.mxu0 %vm1597_vm3, %v2948_v3 }
 0x3ea   : > { %5208 = vmatmul.mubr.msk.f32.gmra.mrb[72].mxu0 %vm1597_vm3, %v2949_v41 }
 0x3eb   : > { %5210 = vmatprep.mubr.msk.f32.mxu0 %vm1597_vm3, %v2950_v36 }
 0x3ee   : > { %5211 = vmatmul.mubr.msk.f32.gmra.mrb[74].mxu0 %vm1597_vm3, %v2951_v26 }
 0x45f   : > { %v5095_v56 = vpop.f32.mrb[36].mxu1 }
 0x460   : > { %v2174_v55 = vpop.f32.mrb[37].mxu1  ;;  %v2180_v33 = vadd.f32 %v5095_v56, %v6870_v57 }
 0x461   : > { %v2175_v0 = vadd.f32 %v2174_v55, %v6870_v57 }
 0x467   : > { %v5098_v29 = vpop.f32.mrb[38].mxu1 }
 0x468   : > { %v2184_v10 = vpop.f32.mrb[39].mxu1  ;;  %v2190_v35 = vadd.f32 %v5098_v29, %v6870_v57 }
 0x469   : > { %v2185_v38 = vadd.f32 %v2184_v10, %v6870_v57 }
 0x46b   : > { %v5101_v40 = vpop.f32.mrb[40].mxu1 }
 0x46c   : > { %v2194_v49 = vpop.f32.mrb[41].mxu1  ;;  %v2200_v37 = vadd.f32 %v5101_v40, %v6870_v57 }
 0x46d   : > { %v2195_v4 = vadd.f32 %v2194_v49, %v6870_v57 }
 0x46f   : > { %v5104_v9 = vpop.f32.mrb[42].mxu1 }
 0x470   : > { %v2204_v18 = vpop.f32.mrb[43].mxu1  ;;  %v2210_v3 = vadd.f32 %v5104_v9, %v6870_v57 }
 0x471   : > { %v2205_v26 = vadd.f32 %v2204_v18, %v6870_v57 }
 0x473   : > { %v5107_v8 = vpop.f32.mrb[44].mxu1 }
 0x474   : > { %v2214_v20 = vpop.f32.mrb[45].mxu1  ;;  %v2220_v13 = vadd.f32 %v5107_v8, %v6870_v57 }
 0x475   : > { %v2215_v55 = vadd.f32 %v2214_v20, %v6870_v57 }
 0x477   : > { %v5110_v48 = vpop.f32.mrb[46].mxu1 }
 0x478   : > { %v2224_v14 = vpop.f32.mrb[47].mxu1  ;;  %v2230_v9 = vadd.f32 %v5110_v48, %v6870_v57 }
 0x479   : > { %v2225_v8 = vadd.f32 %v2224_v14, %v6870_v57 }
 0x47b   : > { %v6857_v24 = vpop.f32.mrb[48].mxu1 }
 0x47c   : > { %v6862_v21 = vpop.f32.mrb[49].mxu1 }
 0x47f   : > { %v6864_v12 = vpop.f32.mrb[50].mxu1 }
 0x480   : > { %v6872_v34 = vpop.f32.mrb[51].mxu1 }
 0x483   : > { %v5159_v27 = vpop.f32.mrb[52].mxu1 }
 0x484   : > { %v2847_v31 = vadd.f32 %v5159_v27, %v6878_v17  ;;  %v2841_v16 = vpop.f32.mrb[53].mxu1 }
 0x485   : > { %v2842_v2 = vadd.f32 %v2841_v16, %v6878_v17 }
 0x486   : > { %v2921_v23 = vmul.f32 %v2847_v31, %v2180_v33  ;;  %v2240_v31 = vadd.f32 %v6857_v24, %v6870_v57 }
 0x487   : > { %v2920_v6 = vmul.f32 %v2842_v2, %v2175_v0  ;;  %v5162_v51 = vpop.f32.mrb[54].mxu1  ;;  %v2235_v0 = vadd.f32 %v6862_v21, %v6870_v57 }
 0x488   : > { %v2857_v30 = vadd.f32 %v5162_v51, %v6878_v17  ;;  %v2851_v58 = vpop.f32.mrb[55].mxu1  ;;  %v2250_v51 = vadd.f32 %v6864_v12, %v6870_v57 }
 0x489   : > { %v2852_v19 = vadd.f32 %v2851_v58, %v6878_v17  ;;  %5221 = vmatprep.mubr.msk.f32.mxu1 %vm1597_vm3, %v2920_v6 }
 0x48a   : > { %v2923_v43 = vmul.f32 %v2857_v30, %v2190_v35  ;;  %5222 = vmatmul.mubr.msk.f32.vlgmr.msra.gmra.mrb[68].mxu1 %vm1597_vm3, %v2921_v23  ;;  %v2245_v30 = vadd.f32 %v6872_v34, %v6870_v57 }
 0x48b   : > { %v2922_v50 = vmul.f32 %v2852_v19, %v2185_v38  ;;  %v5165_v15 = vpop.f32.mrb[56].mxu1 }
 0x48c   : > { %v2867_v59 = vadd.f32 %v5165_v15, %v6878_v17  ;;  %v2861_v54 = vpop.f32.mrb[57].mxu1 }
 0x48d   : > { %v2862_v11 = vadd.f32 %v2861_v54, %v6878_v17  ;;  %5224 = vmatprep.mubr.msk.f32.mxu1 %vm1597_vm3, %v2922_v50 }
 0x48e   : > { %v2925_v25 = vmul.f32 %v2867_v59, %v2200_v37  ;;  %5225 = vmatmul.mubr.msk.f32.gmra.mrb[70].mxu1 %vm1597_vm3, %v2923_v43 }
 0x48f   : > { %v2924_v62 = vmul.f32 %v2862_v11, %v2195_v4  ;;  %v5168_v45 = vpop.f32.mrb[58].mxu1 }
 0x490   : > { %v2877_v41 = vadd.f32 %v5168_v45, %v6878_v17  ;;  %v2871_v36 = vpop.f32.mrb[59].mxu1 }
 0x491   : > { %v2872_v7 = vadd.f32 %v2871_v36, %v6878_v17  ;;  %5227 = vmatprep.mubr.msk.f32.mxu1 %vm1597_vm3, %v2924_v62 }
 0x492   : > { %v2927_v42 = vmul.f32 %v2877_v41, %v2210_v3  ;;  %5228 = vmatmul.mubr.msk.f32.gmra.mrb[72].mxu1 %vm1597_vm3, %v2925_v25 }
 0x493   : > { %v2926_v46 = vmul.f32 %v2872_v7, %v2205_v26  ;;  %v5171_v44 = vpop.f32.mrb[60].mxu1 }
 0x494   : > { %v2887_v39 = vadd.f32 %v5171_v44, %v6878_v17  ;;  %v2881_v56 = vpop.f32.mrb[61].mxu1 }
 0x495   : > { %v2882_v29 = vadd.f32 %v2881_v56, %v6878_v17  ;;  %5230 = vmatprep.mubr.msk.f32.mxu1 %vm1597_vm3, %v2926_v46 }
 0x496   : > { %v2929_v10 = vmul.f32 %v2887_v39, %v2220_v13  ;;  %5231 = vmatmul.mubr.msk.f32.gmra.mrb[74].mxu1 %vm1597_vm3, %v2927_v42 }
 0x497   : > { %v2928_v40 = vmul.f32 %v2882_v29, %v2215_v55  ;;  %v5174_v49 = vpop.f32.mrb[62].mxu1 }
 0x498   : > { %v2897_v18 = vadd.f32 %v5174_v49, %v6878_v17  ;;  %v2891_v32 = vpop.f32.mrb[63].mxu1 }
 0x499   : > { %v2892_v52 = vadd.f32 %v2891_v32, %v6878_v17  ;;  %5233 = vmatprep.mubr.msk.f32.mxu1 %vm1597_vm3, %v2928_v40 }
 0x49a   : > { %v2931_v20 = vmul.f32 %v2897_v18, %v2230_v9  ;;  %5234 = vmatmul.mubr.msk.f32.gmra.mrb[76].mxu1 %vm1597_vm3, %v2929_v10 }
 0x49b   : > { %v2930_v27 = vmul.f32 %v2892_v52, %v2225_v8  ;;  %v5177_v33 = vpop.f32.mrb[64].mxu1 }
 0x49c   : > { %v2907_v16 = vadd.f32 %v5177_v33, %v6878_v17  ;;  %v2901_v48 = vpop.f32.mrb[65].mxu1 }
 0x49d   : > { %v2902_v14 = vadd.f32 %v2901_v48, %v6878_v17  ;;  %5236 = vmatprep.mubr.msk.f32.mxu1 %vm1597_vm3, %v2930_v27 }
 0x49e   : > { %v2933_v2 = vmul.f32 %v2907_v16, %v2240_v31  ;;  %5237 = vmatmul.mubr.msk.f32.gmra.mrb[78].mxu1 %vm1597_vm3, %v2931_v20 }
 0x49f   : > { %v2932_v23 = vmul.f32 %v2902_v14, %v2235_v0  ;;  %v5180_v6 = vpop.f32.mrb[66].mxu1 }
 0x4a0   : > { %v2917_v24 = vadd.f32 %v5180_v6, %v6878_v17  ;;  %v2911_v35 = vpop.f32.mrb[67].mxu1 }
 0x4a1   : > { %v2912_v21 = vadd.f32 %v2911_v35, %v6878_v17  ;;  %5239 = vmatprep.mubr.msk.f32.mxu1 %vm1597_vm3, %v2932_v23 }
 0x4a2   : > { %v2935_v58 = vmul.f32 %v2917_v24, %v2250_v51  ;;  %5240 = vmatmul.mubr.msk.f32.gmra.mrb[80].mxu1 %vm1597_vm3, %v2933_v2  ;;  %v6951_v51 = vld [vmem:[%s7290_s15] sm:$0xf] }
 0x4a3   : > { %v2934_v38 = vmul.f32 %v2912_v21, %v2245_v30  ;;  %v3374_v24 = vrot.slane %v6951_v51, %v6257_v22 }
 0x4a5   : > { %5242 = vmatprep.mubr.msk.f32.mxu1 %vm1597_vm3, %v2934_v38  ;;  %v5191_v19 = vpop.f32.mrb[60].mxu0 }
 0x4a6   : > { %5243 = vmatmul.mubr.msk.f32.gmra.mrb[82].mxu1 %vm1597_vm3, %v2935_v58  ;;  %v3070_v12 = vpop.f32.mrb[61].mxu0 }
 0x4a9   : > { %v5194_v43 = vpop.f32.mrb[62].mxu0 }
 0x4aa   : > { %v3080_v50 = vpop.f32.mrb[63].mxu0 }
 0x4ad   : > { %v5197_v15 = vpop.f32.mrb[64].mxu0 }
 0x4ae   : > { %v3090_v37 = vpop.f32.mrb[65].mxu0 }
 0x4b1   : > { %v5200_v59 = vpop.f32.mrb[66].mxu0 }
 0x4b2   : > { %v3100_v57 = vpop.f32.mrb[67].mxu0 }
 0x4b5   : > { %v5203_v34 = vpop.f32.mrb[68].mxu0 }
 0x4b6   : > { %v3110_v17 = vpop.f32.mrb[69].mxu0 }
 0x4b9   : > { %v5206_v54 = vpop.f32.mrb[70].mxu0 }
 0x4ba   : > { %v3120_v4 = vpop.f32.mrb[71].mxu0 }
 0x4bd   : > { %v5209_v11 = vpop.f32.mrb[72].mxu0 }
 0x4be   : > { %v3130_v25 = vpop.f32.mrb[73].mxu0 }
 0x4c1   : > { %v5212_v62 = vpop.f32.mrb[74].mxu0 }
 0x4c2   : > { %v3140_v45 = vpop.f32.mrb[75].mxu0 }
 0x55d   : > { %v5223_v3 = vpop.f32.mrb[68].mxu1 }
 0x55e   : > { %v3347_v41 = vmul.f32 %v5223_v3, %v5191_v19  ;;  %v3267_v36 = vpop.f32.mrb[69].mxu1 }
 0x55f   : > { %v3346_v26 = vmul.f32 %v3267_v36, %v3070_v12 }
 0x561   : > { %v5226_v7 = vpop.f32.mrb[70].mxu1  ;;  %5253 = vmatprep.mubr.msk.f32.mxu0 %vm1597_vm3, %v3346_v26 }
 0x562   : > { %v3349_v42 = vmul.f32 %v5226_v7, %v5194_v43  ;;  %v3277_v46 = vpop.f32.mrb[71].mxu1  ;;  %5254 = vmatmul.mubr.msk.f32.vlgmr.msra.gmra.mrb[76].mxu0 %vm1597_vm3, %v3347_v41 }
 0x563   : > { %v3348_v44 = vmul.f32 %v3277_v46, %v3080_v50 }
 0x565   : > { %v5229_v13 = vpop.f32.mrb[72].mxu1  ;;  %5256 = vmatprep.mubr.msk.f32.mxu0 %vm1597_vm3, %v3348_v44 }
 0x566   : > { %v3351_v39 = vmul.f32 %v5229_v13, %v5197_v15  ;;  %v3287_v56 = vpop.f32.mrb[73].mxu1  ;;  %5257 = vmatmul.mubr.msk.f32.gmra.mrb[78].mxu0 %vm1597_vm3, %v3349_v42 }
 0x567   : > { %v3350_v55 = vmul.f32 %v3287_v56, %v3090_v37 }
 0x569   : > { %v5232_v29 = vpop.f32.mrb[74].mxu1  ;;  %5259 = vmatprep.mubr.msk.f32.mxu0 %vm1597_vm3, %v3350_v55 }
 0x56a   : > { %v3353_v10 = vmul.f32 %v5232_v29, %v5200_v59  ;;  %v3297_v40 = vpop.f32.mrb[75].mxu1  ;;  %5260 = vmatmul.mubr.msk.f32.gmra.mrb[80].mxu0 %vm1597_vm3, %v3351_v39 }
 0x56b   : > { %v3352_v49 = vmul.f32 %v3297_v40, %v3100_v57 }
 0x56d   : > { %v5235_v9 = vpop.f32.mrb[76].mxu1  ;;  %5262 = vmatprep.mubr.msk.f32.mxu0 %vm1597_vm3, %v3352_v49 }
 0x56e   : > { %v3355_v18 = vmul.f32 %v5235_v9, %v5203_v34  ;;  %v3307_v32 = vpop.f32.mrb[77].mxu1  ;;  %5263 = vmatmul.mubr.msk.f32.gmra.mrb[82].mxu0 %vm1597_vm3, %v3353_v10 }
 0x56f   : > { %v3354_v8 = vmul.f32 %v3307_v32, %v3110_v17 }
 0x571   : > { %v5238_v52 = vpop.f32.mrb[78].mxu1  ;;  %5265 = vmatprep.mubr.msk.f32.mxu0 %vm1597_vm3, %v3354_v8 }
 0x572   : > { %v3357_v20 = vmul.f32 %v5238_v52, %v5206_v54  ;;  %v3317_v27 = vpop.f32.mrb[79].mxu1  ;;  %5266 = vmatmul.mubr.msk.f32.gmra.mrb[84].mxu0 %vm1597_vm3, %v3355_v18 }
 0x573   : > { %v3356_v33 = vmul.f32 %v3317_v27, %v3120_v4 }
 0x575   : > { %v5241_v31 = vpop.f32.mrb[80].mxu1  ;;  %5268 = vmatprep.mubr.msk.f32.mxu0 %vm1597_vm3, %v3356_v33 }
 0x576   : > { %v3359_v16 = vmul.f32 %v5241_v31, %v5209_v11  ;;  %v3327_v48 = vpop.f32.mrb[81].mxu1  ;;  %5269 = vmatmul.mubr.msk.f32.gmra.mrb[86].mxu0 %vm1597_vm3, %v3357_v20 }
 0x577   : > { %v3358_v0 = vmul.f32 %v3327_v48, %v3130_v25  ;;  %v3367_v48 = vld [vmem:[%s7291_s16] sm:$0xff] }
 0x579   : > { %v5244_v14 = vpop.f32.mrb[82].mxu1  ;;  %5271 = vmatprep.mubr.msk.f32.mxu0 %vm1597_vm3, %v3358_v0  ;;  %v3368_v0 = vld [vmem:[%s7291_s16 + $0x8] sm:$0xff] }
 0x57a   : > { %v3361_v2 = vmul.f32 %v5244_v14, %v5212_v62  ;;  %v3337_v23 = vpop.f32.mrb[83].mxu1  ;;  %5272 = vmatmul.mubr.msk.f32.gmra.mrb[88].mxu0 %vm1597_vm3, %v3359_v16  ;;  %v5473_v14 = vpack.c.bf16 %v3368_v0, %v3367_v48 }
 0x57b   : > { %v3360_v6 = vmul.f32 %v3337_v23, %v3140_v45 }
 0x57c   : > { %5474 = vmatprep.subr.bf16.mxu1 %v5473_v14 }
 0x57d   : > { %5274 = vmatprep.mubr.msk.f32.mxu0 %vm1597_vm3, %v3360_v6  ;;  %5476 = vmatpush3.bf16.msra.mxu1 %v5473_v14 }
 0x57e   : > { %5275 = vmatmul.mubr.msk.f32.gmra.mrb[90].mxu0 %vm1597_vm3, %v3361_v2 }
 0x635   : > { %v5255_v35 = vpop.f32.mrb[76].mxu0 }
 0x636   : > { %v6955_v30 = vadd.f32 %v5255_v35, %v3374_v24  ;;  %v3489_v21 = vpop.f32.mrb[77].mxu0 }
 0x637   : > { %v6957_v58 = vadd.f32 %v3489_v21, %v3374_v24 }
 0x638   : > { %v3571_v38 = vsel %vm1597_vm3, %v6955_v30, 0.0 }
 0x639   : > { %3572 = vadd.xlane.f32.xlu0 %v3571_v38  ;;  %v5258_v19 = vpop.f32.mrb[78].mxu0  ;;  %v3568_v12 = vsel %vm1597_vm3, %v6957_v58, 0.0 }
 0x63a   : > { %v6963_v43 = vadd.f32 %v5258_v19, %v3374_v24  ;;  %3569 = vadd.xlane.f32.xlu1 %v3568_v12  ;;  %v3499_v50 = vpop.f32.mrb[79].mxu0 }
 0x63b   : > { %v6965_v15 = vadd.f32 %v3499_v50, %v3374_v24 }
 0x63c   : > { %v3577_v22 = vsel %vm1597_vm3, %v6963_v43, 0.0 }
 0x63d   : > { %3578 = vadd.xlane.f32.xlu0 %v3577_v22  ;;  %v5261_v37 = vpop.f32.mrb[80].mxu0  ;;  %v3574_v59 = vsel %vm1597_vm3, %v6965_v15, 0.0 }
 0x63e   : > { %v6971_v57 = vadd.f32 %v5261_v37, %v3374_v24  ;;  %3575 = vadd.xlane.f32.xlu1 %v3574_v59  ;;  %v3509_v34 = vpop.f32.mrb[81].mxu0 }
 0x63f   : > { %v6973_v17 = vadd.f32 %v3509_v34, %v3374_v24 }
 0x640   : > { %v3583_v54 = vsel %vm1597_vm3, %v6971_v57, 0.0 }
 0x641   : > { %3584 = vadd.xlane.f32.xlu0 %v3583_v54  ;;  %v5264_v4 = vpop.f32.mrb[82].mxu0  ;;  %v3580_v11 = vsel %vm1597_vm3, %v6973_v17, 0.0 }
 0x642   : > { %v6979_v25 = vadd.f32 %v5264_v4, %v3374_v24  ;;  %3581 = vadd.xlane.f32.xlu1 %v3580_v11  ;;  %v3519_v62 = vpop.f32.mrb[83].mxu0 }
 0x643   : > { %v6981_v45 = vadd.f32 %v3519_v62, %v3374_v24 }
 0x644   : > { %v3589_v3 = vsel %vm1597_vm3, %v6979_v25, 0.0 }
 0x645   : > { %3590 = vadd.xlane.f32.xlu0 %v3589_v3  ;;  %v5267_v41 = vpop.f32.mrb[84].mxu0  ;;  %v3586_v36 = vsel %vm1597_vm3, %v6981_v45, 0.0 }
 0x646   : > { %v6987_v26 = vadd.f32 %v5267_v41, %v3374_v24  ;;  %3587 = vadd.xlane.f32.xlu1 %v3586_v36  ;;  %v3529_v7 = vpop.f32.mrb[85].mxu0 }
 0x647   : > { %v6989_v42 = vadd.f32 %v3529_v7, %v3374_v24 }
 0x648   : > { %v3595_v46 = vsel %vm1597_vm3, %v6987_v26, 0.0 }
 0x649   : > { %3596 = vadd.xlane.f32.xlu0 %v3595_v46  ;;  %v5270_v44 = vpop.f32.mrb[86].mxu0  ;;  %v3592_v13 = vsel %vm1597_vm3, %v6989_v42, 0.0 }
 0x64a   : > { %v6995_v39 = vadd.f32 %v5270_v44, %v3374_v24  ;;  %3593 = vadd.xlane.f32.xlu1 %v3592_v13  ;;  %v3539_v56 = vpop.f32.mrb[87].mxu0 }
 0x64b   : > { %v6997_v55 = vadd.f32 %v3539_v56, %v3374_v24 }
 0x64c   : > { %v3601_v29 = vsel %vm1597_vm3, %v6995_v39, 0.0 }
 0x64d   : > { %3602 = vadd.xlane.f32.xlu0 %v3601_v29  ;;  %v5273_v10 = vpop.f32.mrb[88].mxu0  ;;  %v3598_v40 = vsel %vm1597_vm3, %v6997_v55, 0.0 }
 0x64e   : > { %v7003_v49 = vadd.f32 %v5273_v10, %v3374_v24  ;;  %3599 = vadd.xlane.f32.xlu1 %v3598_v40  ;;  %v3549_v9 = vpop.f32.mrb[89].mxu0 }
 0x64f   : > { %v7005_v18 = vadd.f32 %v3549_v9, %v3374_v24 }
 0x650   : > { %v3607_v32 = vsel %vm1597_vm3, %v7003_v49, 0.0 }
 0x651   : > { %3608 = vadd.xlane.f32.xlu0 %v3607_v32  ;;  %v5276_v8 = vpop.f32.mrb[90].mxu0  ;;  %v3604_v52 = vsel %vm1597_vm3, %v7005_v18, 0.0 }
 0x652   : > { %v7011_v20 = vadd.f32 %v5276_v8, %v3374_v24  ;;  %3605 = vadd.xlane.f32.xlu1 %v3604_v52  ;;  %v3559_v27 = vpop.f32.mrb[91].mxu0 }
 0x653   : > { %v7013_v33 = vadd.f32 %v3559_v27, %v3374_v24 }
 0x654   : > { %v3613_v31 = vsel %vm1597_vm3, %v7011_v20, 0.0 }
 0x655   : > { %3614 = vadd.xlane.f32.xlu0 %v3613_v31  ;;  %v3610_v16 = vsel %vm1597_vm3, %v7013_v33, 0.0 }
 0x656   : > { %3611 = vadd.xlane.f32.xlu1 %v3610_v16 }
 0x6c6   : > { %v3573_v2 = vpop.xlane.xlu0 %3572 }
 0x6c7   : > { %v3617_v23 = vmul.f32 0.03125, %v3573_v2  ;;  %v3570_v6 = vpop.xlane.xlu1 %3569 }
 0x6c8   : > { %v3616_v24 = vmul.f32 0.03125, %v3570_v6 }
 0x6c9   : > { %v7026_v35 = vsub.f32 %v6955_v30, %v3617_v23 }
 0x6ca   : > { %v7029_v21 = vsub.f32 %v6957_v58, %v3616_v24  ;;  %v3579_v38 = vpop.xlane.xlu0 %3578 }
 0x6cb   : > { %v3619_v19 = vmul.f32 0.03125, %v3579_v38  ;;  %v3576_v12 = vpop.xlane.xlu1 %3575  ;;  %v3649_v50 = vmul.f32 %v7026_v35, %v7026_v35 }
 0x6cc   : > { %v3618_v22 = vmul.f32 0.03125, %v3576_v12  ;;  %v3648_v37 = vmul.f32 %v7029_v21, %v7029_v21 }
 0x6cd   : > { %v7036_v59 = vsub.f32 %v6963_v43, %v3619_v19  ;;  %v3667_v34 = vsel %vm1597_vm3, %v3649_v50, 0.0 }
 0x6ce   : > { %v7040_v30 = vsub.f32 %v6965_v15, %v3618_v22  ;;  %v3585_v58 = vpop.xlane.xlu0 %3584  ;;  %3668 = vadd.xlane.f32.xlu0 %v3667_v34  ;;  %v3664_v54 = vsel %vm1597_vm3, %v3648_v37, 0.0 }
 0x6cf   : > { %v3621_v4 = vmul.f32 0.03125, %v3585_v58  ;;  %v3582_v11 = vpop.xlane.xlu1 %3581  ;;  %3665 = vadd.xlane.f32.xlu1 %v3664_v54  ;;  %v3651_v62 = vmul.f32 %v7036_v59, %v7036_v59 }
 0x6d0   : > { %v3620_v3 = vmul.f32 0.03125, %v3582_v11  ;;  %v3650_v43 = vmul.f32 %v7040_v30, %v7040_v30 }
 0x6d1   : > { %v7048_v41 = vsub.f32 %v6971_v57, %v3621_v4  ;;  %v3673_v15 = vsel %vm1597_vm3, %v3651_v62, 0.0 }
 0x6d2   : > { %v7052_v36 = vsub.f32 %v6973_v17, %v3620_v3  ;;  %v3591_v7 = vpop.xlane.xlu0 %3590  ;;  %3674 = vadd.xlane.f32.xlu0 %v3673_v15  ;;  %v3670_v46 = vsel %vm1597_vm3, %v3650_v43, 0.0 }
 0x6d3   : > { %v3623_v44 = vmul.f32 0.03125, %v3591_v7  ;;  %v3588_v13 = vpop.xlane.xlu1 %3587  ;;  %3671 = vadd.xlane.f32.xlu1 %v3670_v46  ;;  %v3653_v56 = vmul.f32 %v7048_v41, %v7048_v41 }
 0x6d4   : > { %v3622_v29 = vmul.f32 0.03125, %v3588_v13  ;;  %v3652_v57 = vmul.f32 %v7052_v36, %v7052_v36 }
 0x6d5   : > { %v7060_v10 = vsub.f32 %v6979_v25, %v3623_v44  ;;  %v3679_v17 = vsel %vm1597_vm3, %v3653_v56, 0.0 }
 0x6d6   : > { %v7064_v40 = vsub.f32 %v6981_v45, %v3622_v29  ;;  %v3597_v9 = vpop.xlane.xlu0 %3596  ;;  %3680 = vadd.xlane.f32.xlu0 %v3679_v17  ;;  %v3676_v32 = vsel %vm1597_vm3, %v3652_v57, 0.0  ;;  %v3370_v17 = vld [vmem:[%s7291_s16 + $0x18] sm:$0xff] }
 0x6d7   : > { %v3625_v8 = vmul.f32 0.03125, %v3597_v9  ;;  %v3594_v52 = vpop.xlane.xlu1 %3593  ;;  %3677 = vadd.xlane.f32.xlu1 %v3676_v32  ;;  %v3655_v27 = vmul.f32 %v7060_v10, %v7060_v10 }
 0x6d8   : > { %v3624_v31 = vmul.f32 0.03125, %v3594_v52  ;;  %v3654_v25 = vmul.f32 %v7064_v40, %v7064_v40 }
 0x6d9   : > { %v7072_v16 = vsub.f32 %v6987_v26, %v3625_v8  ;;  %v3685_v45 = vsel %vm1597_vm3, %v3655_v27, 0.0 }
 0x6da   : > { %v7076_v48 = vsub.f32 %v6989_v42, %v3624_v31  ;;  %v3603_v0 = vpop.xlane.xlu0 %3602  ;;  %3686 = vadd.xlane.f32.xlu0 %v3685_v45  ;;  %v3682_v14 = vsel %vm1597_vm3, %v3654_v25, 0.0 }
 0x6db   : > { %v3627_v2 = vmul.f32 0.03125, %v3603_v0  ;;  %v3600_v23 = vpop.xlane.xlu1 %3599  ;;  %3683 = vadd.xlane.f32.xlu1 %v3682_v14  ;;  %v3657_v6 = vmul.f32 %v7072_v16, %v7072_v16 }
 0x6dc   : > { %v3626_v24 = vmul.f32 0.03125, %v3600_v23  ;;  %v3656_v26 = vmul.f32 %v7076_v48, %v7076_v48 }
 0x6dd   : > { %v7084_v38 = vsub.f32 %v6995_v39, %v3627_v2  ;;  %v3691_v42 = vsel %vm1597_vm3, %v3657_v6, 0.0 }
 0x6de   : > { %v7088_v19 = vsub.f32 %v6997_v55, %v3626_v24  ;;  %v3609_v12 = vpop.xlane.xlu0 %3608  ;;  %3692 = vadd.xlane.f32.xlu0 %v3691_v42  ;;  %v3688_v50 = vsel %vm1597_vm3, %v3656_v26, 0.0 }
 0x6df   : > { %v3629_v22 = vmul.f32 0.03125, %v3609_v12  ;;  %v3606_v37 = vpop.xlane.xlu1 %3605  ;;  %3689 = vadd.xlane.f32.xlu1 %v3688_v50  ;;  %v3659_v34 = vmul.f32 %v7084_v38, %v7084_v38 }
 0x6e0   : > { %v3628_v58 = vmul.f32 0.03125, %v3606_v37  ;;  %v3658_v39 = vmul.f32 %v7088_v19, %v7088_v19 }
 0x6e1   : > { %v7096_v54 = vsub.f32 %v7003_v49, %v3629_v22  ;;  %v3697_v55 = vsel %vm1597_vm3, %v3659_v34, 0.0 }
 0x6e2   : > { %v7100_v4 = vsub.f32 %v7005_v18, %v3628_v58  ;;  %3698 = vadd.xlane.f32.xlu0 %v3697_v55  ;;  %v3615_v11 = vpop.xlane.xlu0 %3614  ;;  %v3694_v62 = vsel %vm1597_vm3, %v3658_v39, 0.0  ;;  %v7129_v39 = vrot.slane %v6951_v51, %v6633_v28 }
 0x6e3   : > { %v3631_v3 = vmul.f32 0.03125, %v3615_v11  ;;  %3695 = vadd.xlane.f32.xlu1 %v3694_v62  ;;  %v3612_v43 = vpop.xlane.xlu1 %3611  ;;  %v3661_v15 = vmul.f32 %v7096_v54, %v7096_v54 }
 0x6e4   : > { %v3630_v7 = vmul.f32 0.03125, %v3612_v43  ;;  %v3660_v49 = vmul.f32 %v7100_v4, %v7100_v4  ;;  %v7133_v43 = vrot.slane %v6951_v51, %v6636_v53 }
 0x6e5   : > { %v7108_v46 = vsub.f32 %v7011_v20, %v3631_v3  ;;  %v3703_v18 = vsel %vm1597_vm3, %v3661_v15, 0.0 }
 0x6e6   : > { %v7112_v44 = vsub.f32 %v7013_v33, %v3630_v7  ;;  %3704 = vadd.xlane.f32.xlu0 %v3703_v18  ;;  %v3700_v13 = vsel %vm1597_vm3, %v3660_v49, 0.0  ;;  %v3369_v33 = vld [vmem:[%s7291_s16 + $0x10] sm:$0xff] }
 0x6e7   : > { %3701 = vadd.xlane.f32.xlu1 %v3700_v13  ;;  %v3663_v56 = vmul.f32 %v7108_v46, %v7108_v46  ;;  %v5477_v9 = vpack.c.bf16 %v3370_v17, %v3369_v33 }
 0x6e8   : > { %v3662_v29 = vmul.f32 %v7112_v44, %v7112_v44 }
 0x6e9   : > { %v3709_v57 = vsel %vm1597_vm3, %v3663_v56, 0.0  ;;  %5478 = vmatprep.subr.bf16.mxu1 %v5477_v9 }
 0x6ea   : > { %3710 = vadd.xlane.f32.xlu0 %v3709_v57  ;;  %v3706_v20 = vsel %vm1597_vm3, %v3662_v29, 0.0  ;;  %5480 = vmatpush3.bf16.msra.mxu1 %v5477_v9 }
 0x6eb   : > { %3707 = vadd.xlane.f32.xlu1 %v3706_v20 }
 0x75b   : > { %v3669_v32 = vpop.xlane.xlu0 %3668 }
 0x75c   : > { %v3713_v8 = vmul.f32 0.03125, %v3669_v32  ;;  %v3666_v52 = vpop.xlane.xlu1 %3665 }
 0x75d   : > { %v3712_v27 = vmul.f32 0.03125, %v3666_v52 }
 0x75e   : > { %v3729_v31 = vadd.f32 1e-05, %v3713_v8 }
 0x75f   : > { %v3728_v25 = vadd.f32 1e-05, %v3712_v27  ;;  %v3675_v45 = vpop.xlane.xlu0 %3674 }
 0x760   : > { %5603 = vrsqrt.f32 %v3729_v31  ;;  %v3715_v0 = vmul.f32 0.03125, %v3675_v45  ;;  %v3672_v14 = vpop.xlane.xlu1 %3671 }
 0x761   : > { %5605 = vrsqrt.f32 %v3728_v25  ;;  %v3714_v2 = vmul.f32 0.03125, %v3672_v14 }
 0x762   : > { %v3731_v23 = vadd.f32 1e-05, %v3715_v0 }
 0x763   : > { %v3730_v6 = vadd.f32 1e-05, %v3714_v2  ;;  %v3681_v24 = vpop.xlane.xlu0 %3680 }
 0x764   : > { %5607 = vrsqrt.f32 %v3731_v23  ;;  %v3717_v26 = vmul.f32 0.03125, %v3681_v24  ;;  %v3678_v42 = vpop.xlane.xlu1 %3677 }
 0x765   : > { %5609 = vrsqrt.f32 %v3730_v6  ;;  %v3716_v12 = vmul.f32 0.03125, %v3678_v42 }
 0x766   : > { %v3733_v50 = vadd.f32 1e-05, %v3717_v26 }
 0x767   : > { %v3732_v22 = vadd.f32 1e-05, %v3716_v12  ;;  %v3687_v37 = vpop.xlane.xlu0 %3686 }
 0x768   : > { %5611 = vrsqrt.f32 %v3733_v50  ;;  %v3719_v34 = vmul.f32 0.03125, %v3687_v37  ;;  %v3684_v58 = vpop.xlane.xlu1 %3683 }
 0x769   : > { %5613 = vrsqrt.f32 %v3732_v22  ;;  %v3718_v55 = vmul.f32 0.03125, %v3684_v58 }
 0x76a   : > { %v5604_v11 = vpop.eup %5603  ;;  %v3735_v62 = vadd.f32 1e-05, %v3719_v34 }
 0x76b   : > { %v5606_v3 = vpop.eup %5605  ;;  %v3761_v15 = vmul.f32 %v5604_v11, %v7026_v35  ;;  %v3734_v7 = vadd.f32 1e-05, %v3718_v55  ;;  %v3693_v49 = vpop.xlane.xlu0 %3692 }
 0x76c   : > { %5615 = vrsqrt.f32 %v3735_v62  ;;  %v3721_v18 = vmul.f32 0.03125, %v3693_v49  ;;  %v3690_v13 = vpop.xlane.xlu1 %3689  ;;  %v3760_v56 = vmul.f32 %v5606_v3, %v7029_v21 }
 0x76d   : > { %v3781_v28 = vmul.f32 %v7129_v39, %v3761_v15  ;;  %5617 = vrsqrt.f32 %v3734_v7  ;;  %v3720_v29 = vmul.f32 0.03125, %v3690_v13 }
 0x76e   : > { %v5608_v57 = vpop.eup %5607  ;;  %v3737_v20 = vadd.f32 1e-05, %v3721_v18  ;;  %v3780_v33 = vmul.f32 %v7129_v39, %v3760_v56 }
 0x76f   : > { %v5610_v17 = vpop.eup %5609  ;;  %v3801_v53 = vadd.f32 %v7133_v43, %v3781_v28  ;;  %v3736_v9 = vadd.f32 1e-05, %v3720_v29  ;;  %v3699_v35 = vpop.xlane.xlu0 %3698  ;;  %v3763_v32 = vmul.f32 %v5608_v57, %v7036_v59 }
 0x770   : > { %5619 = vrsqrt.f32 %v3737_v20  ;;  %v3723_v8 = vmul.f32 0.03125, %v3699_v35  ;;  %v3696_v52 = vpop.xlane.xlu1 %3695  ;;  %v3800_v21 = vadd.f32 %v7133_v43, %v3780_v33  ;;  %v3762_v27 = vmul.f32 %v5610_v17, %v7040_v30 }
 0x771   : > { %5621 = vrsqrt.f32 %v3736_v9  ;;  %v3722_v31 = vmul.f32 0.03125, %v3696_v52  ;;  %v3783_v25 = vmul.f32 %v7129_v39, %v3763_v32  ;;  %v3817_v6 = vmax.f32 %v3801_v53, 0.0 }
 0x772   : > { %v5612_v45 = vpop.eup %5611  ;;  %v3739_v0 = vadd.f32 1e-05, %v3723_v8  ;;  %v3816_v14 = vmax.f32 %v3800_v21, 0.0  ;;  %v3782_v2 = vmul.f32 %v7129_v39, %v3762_v27 }
 0x773   : > { %v5614_v23 = vpop.eup %5613  ;;  %v3738_v24 = vadd.f32 1e-05, %v3722_v31  ;;  %v3705_v59 = vpop.xlane.xlu0 %3704  ;;  %v3803_v26 = vadd.f32 %v7133_v43, %v3783_v25  ;;  %v3765_v42 = vmul.f32 %v5612_v45, %v7048_v41 }
 0x774   : > { %5623 = vrsqrt.f32 %v3739_v0  ;;  %v3725_v12 = vmul.f32 0.03125, %v3705_v59  ;;  %5285 = vmatprep.mubr.msk.f32.mxu1 %vm1597_vm3, %v3816_v14  ;;  %v3702_v30 = vpop.xlane.xlu1 %3701  ;;  %v3802_v50 = vadd.f32 %v7133_v43, %v3782_v2  ;;  %v3764_v22 = vmul.f32 %v5614_v23, %v7052_v36 }
 0x775   : > { %5625 = vrsqrt.f32 %v3738_v24  ;;  %v3724_v37 = vmul.f32 0.03125, %v3702_v30  ;;  %5286 = vmatmul.mubr.msk.f32.vlgmr.msra.gmra.mrb[84].mxu1 %vm1597_vm3, %v3817_v6  ;;  %v3785_v34 = vmul.f32 %v7129_v39, %v3765_v42  ;;  %v3819_v7 = vmax.f32 %v3803_v26, 0.0 }
 0x776   : > { %v5616_v58 = vpop.eup %5615  ;;  %v3741_v55 = vadd.f32 1e-05, %v3725_v12  ;;  %v3818_v11 = vmax.f32 %v3802_v50, 0.0  ;;  %v3784_v41 = vmul.f32 %v7129_v39, %v3764_v22 }
 0x777   : > { %v5618_v62 = vpop.eup %5617  ;;  %v3740_v3 = vadd.f32 1e-05, %v3724_v37  ;;  %v3711_v15 = vpop.xlane.xlu0 %3710  ;;  %v3805_v49 = vadd.f32 %v7133_v43, %v3785_v34  ;;  %v3767_v18 = vmul.f32 %v5616_v58, %v7060_v10 }
 0x778   : > { %5627 = vrsqrt.f32 %v3741_v55  ;;  %v3727_v36 = vmul.f32 0.03125, %v3711_v15  ;;  %5288 = vmatprep.mubr.msk.f32.mxu1 %vm1597_vm3, %v3818_v11  ;;  %v3708_v13 = vpop.xlane.xlu1 %3707  ;;  %v3804_v56 = vadd.f32 %v7133_v43, %v3784_v41  ;;  %v3766_v28 = vmul.f32 %v5618_v62, %v7064_v40 }
 0x779   : > { %5629 = vrsqrt.f32 %v3740_v3  ;;  %v3726_v29 = vmul.f32 0.03125, %v3708_v13  ;;  %5289 = vmatmul.mubr.msk.f32.gmra.mrb[86].mxu1 %vm1597_vm3, %v3819_v7  ;;  %v3787_v57 = vmul.f32 %v7129_v39, %v3767_v18  ;;  %v3821_v35 = vmax.f32 %v3805_v49, 0.0 }
 0x77a   : > { %v5620_v20 = vpop.eup %5619  ;;  %v3743_v33 = vadd.f32 1e-05, %v3727_v36  ;;  %v3820_v17 = vmax.f32 %v3804_v56, 0.0  ;;  %v3786_v10 = vmul.f32 %v7129_v39, %v3766_v28 }
 0x77b   : > { %v5622_v53 = vpop.eup %5621  ;;  %v3742_v9 = vadd.f32 1e-05, %v3726_v29  ;;  %v3807_v32 = vadd.f32 %v7133_v43, %v3787_v57  ;;  %v3769_v8 = vmul.f32 %v5620_v20, %v7072_v16 }
 0x77c   : > { %5631 = vrsqrt.f32 %v3743_v33  ;;  %5291 = vmatprep.mubr.msk.f32.mxu1 %vm1597_vm3, %v3820_v17  ;;  %v3806_v40 = vadd.f32 %v7133_v43, %v3786_v10  ;;  %v3768_v52 = vmul.f32 %v5622_v53, %v7076_v48 }
 0x77d   : > { %5633 = vrsqrt.f32 %v3742_v9  ;;  %5292 = vmatmul.mubr.msk.f32.gmra.mrb[88].mxu1 %vm1597_vm3, %v3821_v35  ;;  %v3789_v21 = vmul.f32 %v7129_v39, %v3769_v8  ;;  %v3823_v0 = vmax.f32 %v3807_v32, 0.0 }
 0x77e   : > { %v5624_v27 = vpop.eup %5623  ;;  %v3822_v31 = vmax.f32 %v3806_v40, 0.0  ;;  %v3788_v25 = vmul.f32 %v7129_v39, %v3768_v52 }
 0x77f   : > { %v5626_v45 = vpop.eup %5625  ;;  %v3809_v16 = vadd.f32 %v7133_v43, %v3789_v21  ;;  %v3771_v14 = vmul.f32 %v5624_v27, %v7084_v38  ;;  %v7357_v27 = vld [vmem:[#allocation38_spill] sm:$0xff] }
 0x780   : > { %5294 = vmatprep.mubr.msk.f32.mxu1 %vm1597_vm3, %v3822_v31  ;;  %v3808_v2 = vadd.f32 %v7133_v43, %v3788_v25  ;;  %v3770_v48 = vmul.f32 %v5626_v45, %v7088_v19 }
 0x781   : > { %5295 = vmatmul.mubr.msk.f32.gmra.mrb[90].mxu1 %vm1597_vm3, %v3823_v0  ;;  %v3791_v23 = vmul.f32 %v7129_v39, %v3771_v14  ;;  %v3825_v42 = vmax.f32 %v3809_v16, 0.0  ;;  %v7359_v14 = vld [vmem:[#allocation40_spill] sm:$0xff] }
 0x782   : > { %v5628_v6 = vpop.eup %5627  ;;  %v3824_v24 = vmax.f32 %v3808_v2, 0.0  ;;  %v3790_v59 = vmul.f32 %v7129_v39, %v3770_v48  ;;  %v7360_v2 = vld [vmem:[#allocation41_spill] sm:$0xff] }
 0x783   : > { %v5630_v26 = vpop.eup %5629  ;;  %v3811_v12 = vadd.f32 %v7133_v43, %v3791_v23  ;;  %v3773_v38 = vmul.f32 %v5628_v6, %v7096_v54 }
 0x784   : > { %5297 = vmatprep.mubr.msk.f32.mxu1 %vm1597_vm3, %v3824_v24  ;;  %v3810_v30 = vadd.f32 %v7133_v43, %v3790_v59  ;;  %v3772_v19 = vmul.f32 %v5630_v26, %v7100_v4  ;;  %v7361_v26 = vld [vmem:[#allocation42_spill] sm:$0xff] }
 0x785   : > { %5298 = vmatmul.mubr.msk.f32.gmra.mrb[92].mxu1 %vm1597_vm3, %v3825_v42  ;;  %v3793_v50 = vmul.f32 %v7129_v39, %v3773_v38  ;;  %v3827_v55 = vmax.f32 %v3811_v12, 0.0  ;;  %v7362_v12 = vld [vmem:[#allocation43_spill] sm:$0xff] }
 0x786   : > { %v5632_v22 = vpop.eup %5631  ;;  %v3826_v37 = vmax.f32 %v3810_v30, 0.0  ;;  %v3792_v34 = vmul.f32 %v7129_v39, %v3772_v19 }
 0x787   : > { %v5634_v58 = vpop.eup %5633  ;;  %v3813_v11 = vadd.f32 %v7133_v43, %v3793_v50  ;;  %v3775_v54 = vmul.f32 %v5632_v22, %v7108_v46 }
 0x788   : > { %5300 = vmatprep.mubr.msk.f32.mxu1 %vm1597_vm3, %v3826_v37  ;;  %v3812_v41 = vadd.f32 %v7133_v43, %v3792_v34  ;;  %v3774_v4 = vmul.f32 %v5634_v58, %v7112_v44  ;;  %v3835_v44 = vrot.slane %v6951_v51, %v6860_v5  ;;  %v7363_v37 = vld [vmem:[#allocation44_spill] sm:$0xff]  ;;  %v7364_v58 = vld [vmem:[#allocation45_spill] sm:$0xff] }
 0x789   : > { %5301 = vmatmul.mubr.msk.f32.gmra.mrb[94].mxu1 %vm1597_vm3, %v3827_v55  ;;  %v3795_v62 = vmul.f32 %v7129_v39, %v3775_v54  ;;  %v3829_v7 = vmax.f32 %v3813_v11, 0.0 }
 0x78a   : > { %v3828_v3 = vmax.f32 %v3812_v41, 0.0  ;;  %v3794_v15 = vmul.f32 %v7129_v39, %v3774_v4 }
 0x78b   : > { %v3815_v49 = vadd.f32 %v7133_v43, %v3795_v62  ;;  %v7365_v62 = vld [vmem:[#allocation46_spill] sm:$0xff] }
 0x78c   : > { %5303 = vmatprep.mubr.msk.f32.mxu1 %vm1597_vm3, %v3828_v3  ;;  %v3814_v46 = vadd.f32 %v7133_v43, %v3794_v15  ;;  %v7366_v15 = vld [vmem:[#allocation47_spill] sm:$0xff] }
 0x78d   : > { %5304 = vmatmul.mubr.msk.f32.gmra.mrb[96].mxu1 %vm1597_vm3, %v3829_v7  ;;  %v3831_v36 = vmax.f32 %v3815_v49, 0.0  ;;  %v7367_v49 = vld [vmem:[#allocation5_spill] sm:$0xff] }
 0x78e   : > { %v3830_v18 = vmax.f32 %v3814_v46, 0.0  ;;  %v7368_v46 = vld [vmem:[#allocation7_spill] sm:$0xff] }
 0x790   : > { %5306 = vmatprep.mubr.msk.f32.mxu1 %vm1597_vm3, %v3830_v18  ;;  %v7369_v18 = vld [vmem:[#allocation6_spill] sm:$0xff] }
 0x791   : > { %5307 = vmatmul.mubr.msk.f32.gmra.mrb[98].mxu1 %vm1597_vm3, %v3831_v36  ;;  %v7370_v36 = vld [vmem:[#allocation8_spill] sm:$0xff] }
 0x848   : > { %v5287_v13 = vpop.f32.mrb[84].mxu1 }
 0x849   : > { %v3956_v39 = vadd.f32 %v5287_v13, %v3835_v44  ;;  %v3950_v56 = vpop.f32.mrb[85].mxu1  ;;  %v7371_v13 = vld [vmem:[#allocation9_spill] sm:$0xff] }
 0x84a   : > { %v3951_v28 = vadd.f32 %v3950_v56, %v3835_v44  ;;  %v7374_v56 = vld [vmem:[#allocation12_spill] sm:$0xff] }
 0x84b   : > { %v4030_v29 = vmul.f32 %v6221_v60, %v3956_v39  ;;  %v7356_v60 = vld [vmem:[#allocation37_spill] sm:$0xff]  ;;  %v7373_v39 = vld [vmem:[#allocation11_spill] sm:$0xff] }
 0x84c   : > { %v4029_v57 = vmul.f32 %v3951_v28, %v6223_v47  ;;  %v5290_v43 = vpop.f32.mrb[86].mxu1  ;;  %v7375_v28 = vld [vmem:[#allocation13_spill] sm:$0xff] }
 0x84d   : > { %v3966_v20 = vadd.f32 %v5290_v43, %v3835_v44  ;;  %4052 = vperm.xlu0 %5537, %v4030_v29   ;;  %v3960_v33 = vpop.f32.mrb[87].mxu1  ;;  %v7376_v29 = vld [vmem:[#allocation14_spill] sm:$0xff]  ;;  %v7378_v43 = vld [vmem:[#allocation16_spill] sm:$0xff] }
 0x84e   : > { %v3961_v17 = vadd.f32 %v3960_v33, %v3835_v44  ;;  %4047 = vperm.xlu1 %5538, %v4029_v57   ;;  %v7377_v57 = vld [vmem:[#allocation15_spill] sm:$0xff]  ;;  %v7380_v33 = vld [vmem:[#allocation18_spill] sm:$0xff] }
 0x84f   : > { %v4032_v10 = vmul.f32 %v6225_v61, %v3966_v20  ;;  %v7358_v61 = vld [vmem:[#allocation39_spill] sm:$0xff]  ;;  %v7379_v20 = vld [vmem:[#allocation17_spill] sm:$0xff] }
 0x850   : > { %v4031_v53 = vmul.f32 %v3961_v17, %v6227_v63  ;;  %v5293_v9 = vpop.f32.mrb[88].mxu1  ;;  %v7381_v17 = vld [vmem:[#allocation19_spill] sm:$0xff] }
 0x851   : > { %v3976_v5 = vadd.f32 %v5293_v9, %v3835_v44  ;;  %v3970_v51 = vpop.f32.mrb[89].mxu1  ;;  %v7383_v9 = vld [vmem:[#allocation21_spill] sm:$0xff] }
 0x852   : > { %v3971_v35 = vadd.f32 %v3970_v51, %v3835_v44  ;;  %4062 = vperm.xlu1 %5538, %v4032_v10   ;;  %v7382_v10 = vld [vmem:[#allocation20_spill] sm:$0xff] }
 0x853   : > { %v4034_v32 = vmul.f32 %v6229_v1, %v3976_v5 }
 0x854   : > { %v4033_v8 = vmul.f32 %v3971_v35, %v7356_v60  ;;  %v5296_v47 = vpop.f32.mrb[90].mxu1  ;;  %v7384_v35 = vld [vmem:[#allocation22_spill] sm:$0xff] }
 0x855   : > { %v3986_v40 = vadd.f32 %v5296_v47, %v3835_v44  ;;  %v3980_v52 = vpop.f32.mrb[91].mxu1 }
 0x856   : > { %v3981_v21 = vadd.f32 %v3980_v52, %v3835_v44  ;;  %4057 = vperm.xlu1 %5538, %v4031_v53   ;;  %4067 = vperm.xlu0 %5537, %v4033_v8   ;;  %v7385_v52 = vld [vmem:[#allocation23_spill] sm:$0xff] }
 0x857   : > { %v4036_v31 = vmul.f32 %v7357_v27, %v3986_v40  ;;  %v7386_v27 = vld [vmem:[#allocation24_spill] sm:$0xff] }
 0x858   : > { %v4035_v25 = vmul.f32 %v3981_v21, %v7358_v61  ;;  %v5299_v63 = vpop.f32.mrb[92].mxu1 }
 0x859   : > { %v3996_v45 = vadd.f32 %v5299_v63, %v3835_v44  ;;  %v3990_v0 = vpop.f32.mrb[93].mxu1 }
 0x85a   : > { %v3991_v16 = vadd.f32 %v3990_v0, %v3835_v44  ;;  %4072 = vperm.xlu1 %5538, %v4034_v32   ;;  %4077 = vperm.xlu0 %5537, %v4035_v25  }
 0x85b   : > { %v4038_v1 = vmul.f32 %v7359_v14, %v3996_v45  ;;  %v7387_v45 = vld [vmem:[#allocation26_spill] sm:$0xff] }
 0x85c   : > { %v4037_v48 = vmul.f32 %v3991_v16, %v7360_v2  ;;  %v5302_v23 = vpop.f32.mrb[94].mxu1  ;;  %v7388_v16 = vld [vmem:[#allocation25_spill] sm:$0xff] }
 0x85d   : > { %v4006_v6 = vadd.f32 %v5302_v23, %v3835_v44  ;;  %v4000_v24 = vpop.f32.mrb[95].mxu1  ;;  %v7389_v23 = vld [vmem:[#allocation28_spill] sm:$0xff] }
 0x85e   : > { %v4001_v59 = vadd.f32 %v4000_v24, %v3835_v44  ;;  %4082 = vperm.xlu1 %5538, %v4036_v31   ;;  %4087 = vperm.xlu0 %5537, %v4037_v48   ;;  %v7390_v24 = vld [vmem:[#allocation27_spill] sm:$0xff] }
 0x85f   : > { %v4040_v42 = vmul.f32 %v7361_v26, %v4006_v6 }
 0x860   : > { %v4039_v38 = vmul.f32 %v4001_v59, %v7362_v12  ;;  %v5305_v30 = vpop.f32.mrb[96].mxu1 }
 0x861   : > { %v4016_v19 = vadd.f32 %v5305_v30, %v3835_v44  ;;  %v4010_v50 = vpop.f32.mrb[97].mxu1 }
 0x862   : > { %v4011_v22 = vadd.f32 %v4010_v50, %v3835_v44  ;;  %4092 = vperm.xlu1 %5538, %v4038_v1   ;;  %4097 = vperm.xlu0 %5537, %v4039_v38   ;;  %v7391_v38 = vld [vmem:[#allocation30_spill] sm:$0xff] }
 0x863   : > { %v4042_v34 = vmul.f32 %v7363_v37, %v4016_v19  ;;  %v7392_v19 = vld [vmem:[#allocation29_spill] sm:$0xff] }
 0x864   : > { %v4041_v55 = vmul.f32 %v4011_v22, %v7364_v58  ;;  %v5308_v11 = vpop.f32.mrb[98].mxu1  ;;  %v7393_v58 = vld [vmem:[#allocation32_spill] sm:$0xff] }
 0x865   : > { %v4026_v54 = vadd.f32 %v5308_v11, %v3835_v44  ;;  %v4020_v41 = vpop.f32.mrb[99].mxu1  ;;  %v7394_v11 = vld [vmem:[#allocation31_spill] sm:$0xff] }
 0x866   : > { %v4021_v4 = vadd.f32 %v4020_v41, %v3835_v44  ;;  %4102 = vperm.xlu1 %5538, %v4040_v42   ;;  %4107 = vperm.xlu0 %5537, %v4041_v55   ;;  %v7372_v44 = vld [vmem:[#allocation10_spill] sm:$0xff] }
 0x867   : > { %v4044_v3 = vmul.f32 %v7365_v62, %v4026_v54  ;;  %v7395_v62 = vld [vmem:[#allocation34_spill] sm:$0xff] }
 0x868   : > { %v4043_v7 = vmul.f32 %v4021_v4, %v7366_v15  ;;  %v7396_v15 = vld [vmem:[#allocation33_spill] sm:$0xff] }
 0x86a   : > { %4112 = vperm.xlu1 %5538, %v4042_v34   ;;  %4117 = vperm.xlu0 %5537, %v4043_v7  }
 0x86e   : > { %4122 = vperm.xlu1 %5538, %v4044_v3  }
 0x888   : > { %4149 = vxpose.xlu0.b32.start [1/16] (narrow) %v7367_v49, 64 }
 0x88c   : > { %4150 = vxpose.xlu0.b32.cont [2/16] (narrow) %v7368_v46, 64 }
 0x890   : > { %4151 = vxpose.xlu0.b32.cont [3/16] (narrow) %v7369_v18, 64 }
 0x894   : > { %4152 = vxpose.xlu0.b32.cont [4/16] (narrow) %v7370_v36, 64  ;;  %v7397_v36 = vld [vmem:[#allocation36_spill] sm:$0xff] }
 0x898   : > { %4153 = vxpose.xlu0.b32.cont [5/16] (narrow) %v7371_v13, 64 }
 0x89c   : > { %4154 = vxpose.xlu0.b32.cont [6/16] (narrow) %v7372_v44, 64  ;;  %v7398_v44 = vld [vmem:[#allocation35_spill] sm:$0xff] }
 0x8a0   : > { %4155 = vxpose.xlu0.b32.cont [7/16] (narrow) %v7373_v39, 64 }
 0x8a4   : > { %4156 = vxpose.xlu0.b32.cont [8/16] (narrow) %v7374_v56, 64 }
 0x8a8   : > { %4157 = vxpose.xlu0.b32.cont [9/16] (narrow) %v7375_v28, 64 }
 0x8ac   : > { %4158 = vxpose.xlu0.b32.cont [10/16] (narrow) %v7376_v29, 64 }
 0x8b0   : > { %4159 = vxpose.xlu0.b32.cont [11/16] (narrow) %v7377_v57, 64 }
 0x8b4   : > { %4160 = vxpose.xlu0.b32.cont [12/16] (narrow) %v7378_v43, 64 }
 0x8b8   : > { %4161 = vxpose.xlu0.b32.cont [13/16] (narrow) %v7379_v20, 64 }
 0x8bc   : > { %4162 = vxpose.xlu0.b32.cont [14/16] (narrow) %v7380_v33, 64 }
 0x8c0   : > { %4163 = vxpose.xlu0.b32.cont [15/16] (narrow) %v7381_v17, 64 }
 0x8c4   : > { %4164 = vxpose.xlu0.b32.end [16/16] (narrow) %v7382_v10, 64 }
 0x8cc   : > { %v4053_v53 = vpop.permute.xlu0 %4052 }
 0x8cd   : > { %v4126_v5 = vmul.f32 %v7383_v9, %v4053_v53  ;;  %v4048_v51 = vpop.permute.xlu1 %4047  ;;  %v4142_v53 = vld [vmem:[#allocation2 + $0x8] sm:$0xff]  ;;  %v4141_v9 = vld [vmem:[#allocation2] sm:$0xff] }
 0x8ce   : > { %v4125_v32 = vmul.f32 %v4048_v51, %v7384_v35 }
 0x8d0   : > { %v5481_v60 = vpack.c.bf16 %v4126_v5, %v4125_v32 }
 0x8d1   : > { %v4063_v8 = vpop.permute.xlu1 %4062 }
 0x8d2   : > { %5482 = vmatprep.subr.bf16.mxu0 %v5481_v60  ;;  %v4128_v21 = vmul.f32 %v7385_v52, %v4063_v8  ;;  %v4143_v8 = vld [vmem:[#allocation2 + $0x10] sm:$0xff] }
 0x8d3   : > { %5484 = vmatpush3.bf16.msra.mxu0 %v5481_v60  ;;  %v4144_v60 = vld [vmem:[#allocation2 + $0x18] sm:$0xff] }
 0x8d5   : > { %v4068_v47 = vpop.permute.xlu0 %4067  ;;  %v4058_v40 = vpop.permute.xlu1 %4057 }
 0x8d6   : > { %v4127_v31 = vmul.f32 %v4058_v40, %v7386_v27  ;;  %v4129_v0 = vmul.f32 %v4068_v47, %v7387_v45  ;;  %v4146_v27 = vld [vmem:[#allocation2 + $0x28] sm:$0xff] }
 0x8d8   : > { %v5485_v61 = vpack.c.bf16 %v4128_v21, %v4127_v31  ;;  %v4145_v31 = vld [vmem:[#allocation2 + $0x20] sm:$0xff] }
 0x8d9   : > { %v4078_v25 = vpop.permute.xlu0 %4077  ;;  %v4073_v63 = vpop.permute.xlu1 %4072 }
 0x8da   : > { %v4130_v14 = vmul.f32 %v7388_v16, %v4073_v63  ;;  %5486 = vmatprep.subr.bf16.mxu0 %v5485_v61  ;;  %v4131_v6 = vmul.f32 %v4078_v25, %v7389_v23  ;;  %v4147_v16 = vld [vmem:[#allocation2 + $0x30] sm:$0xff] }
 0x8db   : > { %5488 = vmatpush3.bf16.msra.mxu0 %v5485_v61 }
 0x8dc   : > { %v5489_v1 = vpack.c.bf16 %v4130_v14, %v4129_v0  ;;  %v4148_v0 = vld [vmem:[#allocation2 + $0x38] sm:$0xff] }
 0x8dd   : > { %v4088_v2 = vpop.permute.xlu0 %4087  ;;  %v4083_v48 = vpop.permute.xlu1 %4082 }
 0x8de   : > { %v4132_v59 = vmul.f32 %v7390_v24, %v4083_v48  ;;  %5490 = vmatprep.subr.bf16.mxu0 %v5489_v1  ;;  %v4133_v30 = vmul.f32 %v4088_v2, %v7391_v38 }
 0x8df   : > { %5492 = vmatpush3.bf16.msra.mxu0 %v5489_v1 }
 0x8e0   : > { %v5493_v26 = vpack.c.bf16 %v4132_v59, %v4131_v6 }
 0x8e1   : > { %v4098_v42 = vpop.permute.xlu0 %4097  ;;  %v4093_v12 = vpop.permute.xlu1 %4092 }
 0x8e2   : > { %v4134_v50 = vmul.f32 %v7392_v19, %v4093_v12  ;;  %5494 = vmatprep.subr.bf16.mxu0 %v5493_v26  ;;  %v4135_v55 = vmul.f32 %v4098_v42, %v7393_v58 }
 0x8e3   : > { %5496 = vmatpush3.bf16.msra.mxu0 %v5493_v26 }
 0x8e4   : > { %v5497_v22 = vpack.c.bf16 %v4134_v50, %v4133_v30 }
 0x8e5   : > { %v4108_v37 = vpop.permute.xlu0 %4107  ;;  %v4103_v34 = vpop.permute.xlu1 %4102 }
 0x8e6   : > { %v4136_v54 = vmul.f32 %v7394_v11, %v4103_v34  ;;  %5498 = vmatprep.subr.bf16.mxu0 %v5497_v22  ;;  %v4137_v3 = vmul.f32 %v4108_v37, %v7395_v62 }
 0x8e7   : > { %5500 = vmatpush3.bf16.msra.mxu0 %v5497_v22 }
 0x8e8   : > { %v5501_v41 = vpack.c.bf16 %v4136_v54, %v4135_v55 }
 0x8e9   : > { %v4113_v4 = vpop.permute.xlu1 %4112  ;;  %v4118_v49 = vpop.permute.xlu0 %4117 }
 0x8ea   : > { %v4138_v7 = vmul.f32 %v7396_v15, %v4113_v4  ;;  %5502 = vmatprep.subr.bf16.mxu0 %v5501_v41  ;;  %v4139_v13 = vmul.f32 %v4118_v49, %v7397_v36 }
 0x8eb   : > { %5504 = vmatpush3.bf16.msra.mxu0 %v5501_v41 }
 0x8ec   : > { %v5505_v46 = vpack.c.bf16 %v4138_v7, %v4137_v3 }
 0x8ed   : > { %v4123_v18 = vpop.permute.xlu1 %4122 }
 0x8ee   : > { %v4140_v39 = vmul.f32 %v7398_v44, %v4123_v18  ;;  %5506 = vmatprep.subr.bf16.mxu0 %v5505_v46 }
 0x8ef   : > { %5508 = vmatpush3.bf16.msra.mxu0 %v5505_v46 }
 0x8f0   : > { %v5509_v56 = vpack.c.bf16 %v4140_v39, %v4139_v13 }
 0x8f2   : > { %5510 = vmatprep.subr.bf16.mxu0 %v5509_v56 }
 0x8f3   : > { %5512 = vmatpush3.bf16.msra.mxu0 %v5509_v56 }
 0x908   : > { %v4165_v28 = vpop.trf.xlu0 }
 0x909   : > { %5341 = vmatprep.mubr.f32.mxu0 %v4165_v28 }
 0x90c   : > { %v4166_v29 = vpop.trf.xlu0 }
 0x90d   : > { %5342 = vmatmul.mubr.f32.vlgmr.msra.gmra.mrb[92].mxu0 %v4166_v29 }
 0x910   : > { %v4167_v57 = vpop.trf.xlu0 }
 0x911   : > { %5344 = vmatprep.mubr.f32.mxu0 %v4167_v57 }
 0x914   : > { %v4168_v43 = vpop.trf.xlu0 }
 0x915   : > { %5345 = vmatmul.mubr.f32.gmra.mrb[94].mxu0 %v4168_v43 }
 0x918   : > { %v4169_v20 = vpop.trf.xlu0 }
 0x919   : > { %5347 = vmatprep.mubr.f32.mxu0 %v4169_v20 }
 0x91c   : > { %v4170_v33 = vpop.trf.xlu0 }
 0x91d   : > { %5348 = vmatmul.mubr.f32.gmra.mrb[96].mxu0 %v4170_v33 }
 0x920   : > { %v4171_v17 = vpop.trf.xlu0 }
 0x921   : > { %5350 = vmatprep.mubr.f32.mxu0 %v4171_v17 }
 0x924   : > { %v4172_v10 = vpop.trf.xlu0 }
 0x925   : > { %5351 = vmatmul.mubr.f32.gmra.mrb[98].mxu0 %v4172_v10 }
 0x9e0   : > { %v5343_v5 = vpop.f32.mrb[92].mxu0 }
 0x9e1   : > { %v4287_v51 = vadd.f32 %v5343_v5, %v4142_v53  ;;  %v4247_v35 = vpop.f32.mrb[93].mxu0 }
 0x9e2   : > { %v4286_v32 = vadd.f32 %v4247_v35, %v4141_v9 }
 0x9e3   : > { %4295 = vst [vmem:[#allocation2 + $0x8] sm:$0xff] %v4287_v51 }
 0x9e4   : > { %4294 = vst [vmem:[#allocation2] sm:$0xff] %v4286_v32 }
 0x9e8   : > { %v5346_v47 = vpop.f32.mrb[94].mxu0 }
 0x9e9   : > { %v4289_v40 = vadd.f32 %v5346_v47, %v4144_v60  ;;  %v4257_v52 = vpop.f32.mrb[95].mxu0 }
 0x9ea   : > { %v4288_v21 = vadd.f32 %v4257_v52, %v4143_v8 }
 0x9eb   : > { %4297 = vst [vmem:[#allocation2 + $0x18] sm:$0xff] %v4289_v40 }
 0x9ec   : > { %4296 = vst [vmem:[#allocation2 + $0x10] sm:$0xff] %v4288_v21 }
 0x9f0   : > { %v5349_v61 = vpop.f32.mrb[96].mxu0 }
 0x9f1   : > { %v4291_v25 = vadd.f32 %v5349_v61, %v4146_v27  ;;  %v4267_v63 = vpop.f32.mrb[97].mxu0 }
 0x9f2   : > { %v4290_v45 = vadd.f32 %v4267_v63, %v4145_v31 }
 0x9f3   : > { %4299 = vst [vmem:[#allocation2 + $0x28] sm:$0xff] %v4291_v25 }
 0x9f4   : > { %4298 = vst [vmem:[#allocation2 + $0x20] sm:$0xff] %v4290_v45 }
 0x9f8   : > { %v5352_v14 = vpop.f32.mrb[98].mxu0 }
 0x9f9   : > { %v4293_v1 = vadd.f32 %v5352_v14, %v4148_v0  ;;  %v4277_v2 = vpop.f32.mrb[99].mxu0 }
 0x9fa   : > { %v4292_v48 = vadd.f32 %v4277_v2, %v4147_v16 }
 0x9fb   : > { %4301 = vst [vmem:[#allocation2 + $0x38] sm:$0xff] %v4293_v1 }
 0x9fc   : > { %4300 = vst [vmem:[#allocation2 + $0x30] sm:$0xff] %v4292_v48 }
 0x9fd   : > { %5650 = shalt.err (!%p5647_p12)
}
 0x9fe   : > { %s5651_s1 = scalar_lea.hbm %s7292_s17, 1024 }
 0x9ff   : > { %p5652_p13 = scmp.ne.s32.totalorder %s7292_s17, %s5651_s1  ;;  %p5657_p2 = scmp.lt.u32.totalorder %s5651_s1, %s7292_s17 }
 0xa01   : > { %p5653_p0 = pnand %p5652_p13, %p5521_p5 }
 0xa03   : > { %p5654_p1 = pneg %p5653_p0 }
 0xa05   : > { %p5659_p3 = pnand %p5657_p2, %p5654_p1 }
 0xa07   : > { %5662 = shalt.err (!%p5659_p3)
}
 0xa08   : > { %s5679_s27 = smov 128   ;;  %s5680_s28 = smov 8  }
 0xa09   : > { %5518 = dma.vmem_to_hbm [thread:$0]  (%p5521_p5), %s4309_s0, 1024, %s7292_s17, [#allocation3], %s5679_s27, %s5679_s27, %s5680_s28  }
 0xa0a   : > { %5668 = dma.done.wait (%p5521_p5), [#allocation3], 1024  }
 0xa0b   : > { %5670 = vsyncadd (%p5521_p5), [#allocation3], 4294966272 }
 0xa0c PF: > { %s28_s24 = sadd.s32 1, %s5673_s24  }
 0xa0d   : > { %p25_p4 = scmp.ge.s32.totalorder %s28_s24, 5  }
 0xa0f   :  { %27 = sbr.rel (!%p25_p4) target bundleno = 4 (0x4), region = 125 }
 0xa16   :  { %4324 = vsyncpa [#allocation3], 1 }
 0xa17   :  { %4326 = vsyncpa [#allocation3 + $0x1], 1 }

</bundles_post_ra>
